<compile_context>
chip_gen: v7x
topology: tpu7x:2x2x1
jax: 0.10.0
libtpu: 0.0.40
codegen_flags: <defaults>
</compile_context>

<pallas_src>
import jax
import jax.numpy as jnp
from jax import lax
from jax.experimental import pallas as pl
from jax.experimental.pallas import tpu as pltpu

LEAKY_SLOPE = 0.01   # nn.LeakyReLU default
BN_EPS = 1e-5        # nn.BatchNorm1d default eps
IN_EPS = 1e-5        # InstanceNorm eps (added to variance)


def _make_encoder_kernel(pack: int, seg_len: int, n_blocks: int):
    """Build the per-grid-step kernel (pack batch elements per step)."""
    T = seg_len
    PT = pack * T

    def kernel(x_ref, wf_ref, bf_ref, w1_ref, b1_ref, w2_ref, b2_ref,
               wl_ref, bl_ref, content_ref, means_ref, stds_ref):
        wf, bf = wf_ref[...], bf_ref[...]
        w1, b1 = w1_ref[...], b1_ref[...]
        w2, b2 = w2_ref[...], b2_ref[...]
        wl, bl = wl_ref[...], bl_ref[...]

        # Pack `pack` batch elements along lanes: (melbins, pack*T).
        if pack == 1:
            x = x_ref[0]
        else:
            x = jnp.concatenate([x_ref[p] for p in range(pack)], axis=1)

        # first_conv1d (kernel_size=1); accumulate in f32.
        h = jnp.dot(wf, x, preferred_element_type=jnp.float32) + bf   # (hidden, PT)
        c = h.shape[0]
        inv_ct = 1.0 / (c * T)

        # Loop-invariant (1, PT) lane masks — broadcast along sublanes, no
        # (C, T) int32 masks kept live across the block loop.
        pos = lax.broadcasted_iota(jnp.int32, (1, PT), 1)
        is_first = pos == 0
        is_last = pos == (T - 1)
        for p in range(1, pack):
            is_first = jnp.logical_or(is_first, pos == p * T)
            is_last = jnp.logical_or(is_last, pos == ((p + 1) * T - 1))
        not_first = jnp.logical_not(is_first).astype(jnp.float32)
        not_last = jnp.logical_not(is_last).astype(jnp.float32)
        seg_masks = [
            jnp.logical_and(pos >= p * T, pos < (p + 1) * T).astype(jnp.float32)
            for p in range(pack)
        ]

        def conv3(v, w_stk, b):
            # 'same' k=3 conv: the 3 taps are stacked along OUTPUT rows in the
            # wrapper -> one (3C, C) x (C, PT) MXU matmul; the per-tap outputs
            # are shifted with an XLU roll and zeroed at the per-batch-segment
            # boundaries (no (3C, PT) input concat is ever materialized).
            z = jnp.dot(w_stk, v.astype(w_stk.dtype),
                        preferred_element_type=jnp.float32)           # (3C, PT) f32
            z0, z1, z2 = z[:c], z[c:2 * c], z[2 * c:]
            out = z1 + pltpu.roll(z0, 1, 1) * not_first                # tap on v[:, t-1]
            out = out + pltpu.roll(z2, PT - 1, 1) * not_last           # tap on v[:, t+1]
            return out + b

        mean_vals = [[None] * n_blocks for _ in range(pack)]
        std_vals = [[None] * n_blocks for _ in range(pack)]

        # Static (unrolled) block loop: n_blocks is a trace-time constant, so
        # the scheduler sees the whole chain.  All blocks share ONE weight set.
        for blk in range(n_blocks):
            y = conv3(h, w1, b1)                        # BatchNorm folded into w1/b1
            y = jnp.where(y >= 0, y, LEAKY_SLOPE * y)   # LeakyReLU
            y = conv3(y, w2, b2)
            h = h + y                                   # residual

            # InstanceNorm per packed batch segment, one pass: E[h^2] - mean^2.
            colsum = jnp.sum(h, axis=0, keepdims=True)      # (1, PT)
            colsq = jnp.sum(h * h, axis=0, keepdims=True)   # (1, PT)
            mean_row = jnp.zeros((1, PT), jnp.float32)
            rstd_row = jnp.zeros((1, PT), jnp.float32)
            for p in range(pack):
                sl = slice(p * T, (p + 1) * T)
                s = jnp.sum(colsum[:, sl], axis=1, keepdims=True)   # (1, 1)
                sq = jnp.sum(colsq[:, sl], axis=1, keepdims=True)   # (1, 1)
                m = s * inv_ct
                var = jnp.maximum(sq * inv_ct - m * m, 0.0)
                std = jnp.sqrt(var + IN_EPS)                         # exact, for output
                rstd = lax.rsqrt(var + IN_EPS)
                mean_row = mean_row + m * seg_masks[p]
                rstd_row = rstd_row + rstd * seg_masks[p]
                mean_vals[p][blk] = m
                std_vals[p][blk] = std
            h = (h - mean_row) * rstd_row                # fused normalize (rsqrt-mul)

        # last_conv1d (kernel_size=1)
        content = jnp.dot(wl, h.astype(wl.dtype),
                          preferred_element_type=jnp.float32) + bl   # (melbins_out, PT)
        for p in range(pack):
            content_ref[p] = content[:, p * T:(p + 1) * T]

        # means/stds written once as a tiny (pack, n_blocks) tile.
        means_ref[0] = jnp.concatenate(
            [jnp.concatenate(mean_vals[p], axis=1) for p in range(pack)], axis=0)
        stds_ref[0] = jnp.concatenate(
            [jnp.concatenate(std_vals[p], axis=1) for p in range(pack)], axis=0)

    return kernel


def encoder_pallas(x, params, compute_dtype=jnp.float32, pack=None):
    B, melbins, T = x.shape
    hidden = params["w_first"].shape[0]
    melbins_out = params["w_last"].shape[0]
    n_blocks = params["conv_blocks_num"]

    # Pack 2 batch elements per grid step (256-lane MXU fill on v6e/v7x) while
    # keeping >= 2 grid steps so "parallel" can still split across TensorCores.
    if pack is None:
        pack = 2 if (B % 2 == 0 and B >= 4) else 1
    assert B % pack == 0, "batch must be divisible by pack"
    steps = B // pack

    cdt = compute_dtype
    col = lambda v: v.reshape(-1, 1).astype(jnp.float32)
    # Stack the 3 conv taps along OUTPUT rows: (C_out, C_in, 3) -> (3*C_out, C_in).
    stack_taps = lambda w: jnp.concatenate(
        [w[:, :, 0], w[:, :, 1], w[:, :, 2]], axis=0).astype(cdt)

    # Fold eval-mode BatchNorm into conv-block-1's weights/bias (trace-time, free).
    bn_scale = params["bn_gamma"] / jnp.sqrt(params["bn_running_var"] + BN_EPS)
    bn_shift = params["bn_beta"] - params["bn_running_mean"] * bn_scale
    w1_folded = params["w_block1"] * bn_scale[:, None, None]
    b1_folded = params["b_block1"] * bn_scale + bn_shift

    args = (
        x.astype(cdt),
        params["w_first"].astype(cdt), col(params["b_first"]),
        stack_taps(w1_folded), col(b1_folded),
        stack_taps(params["w_block2"]), col(params["b_block2"]),
        params["w_last"].astype(cdt), col(params["b_last"]),
    )

    def invariant(shape):
        nd = len(shape)
        return pl.BlockSpec(shape, lambda b, _n=nd: (0,) * _n)

    in_specs = [pl.BlockSpec((pack, melbins, T), lambda b: (b, 0, 0))]
    in_specs += [invariant(a.shape) for a in args[1:]]

    out_shape = (
        jax.ShapeDtypeStruct((B, melbins_out, T), jnp.float32),
        jax.ShapeDtypeStruct((steps, pack, n_blocks), jnp.float32),
        jax.ShapeDtypeStruct((steps, pack, n_blocks), jnp.float32),
    )
    out_specs = [
        pl.BlockSpec((pack, melbins_out, T), lambda b: (b, 0, 0)),
        pl.BlockSpec((1, pack, n_blocks), lambda b: (b, 0, 0)),
        pl.BlockSpec((1, pack, n_blocks), lambda b: (b, 0, 0)),
    ]

    # Advisory cost hint for XLA's scheduler.
    flops = int(2 * B * T * (hidden * melbins
                             + n_blocks * 2 * 3 * hidden * hidden
                             + melbins_out * hidden))
    bytes_accessed = int(sum(int(a.size) * a.dtype.itemsize for a in args)
                         + (B * melbins_out * T + 2 * B * n_blocks) * 4)
    cost = pl.CostEstimate(flops=flops,
                           transcendentals=int(2 * B * n_blocks),
                           bytes_accessed=bytes_accessed)

    kernel = _make_encoder_kernel(pack, T, n_blocks)

    content, means, stds = pl.pallas_call(
        kernel,
        out_shape=out_shape,
        grid_spec=pltpu.PrefetchScalarGridSpec(
            num_scalar_prefetch=0,
            grid=(steps,),
            in_specs=in_specs,
            out_specs=out_specs,
        ),
        compiler_params=pltpu.CompilerParams(dimension_semantics=("parallel",)),
        cost_estimate=cost,
    )(*args)

    # Match PyTorch return layout: (steps, pack, n_blocks) -> (n_blocks, B, 1, 1).
    means = jnp.transpose(means.reshape(B, n_blocks), (1, 0))[..., None, None]
    stds = jnp.transpose(stds.reshape(B, n_blocks), (1, 0))[..., None, None]
    return content, means, stds


# ---------------- pure-JAX reference (for correctness check) ----------------
def _conv1d_same(x, w, b):
    # x: (B, Cin, T), w: (Cout, Cin, K), b: (Cout,)
    K = w.shape[-1]
    pad = (K - 1) // 2
    xp = jnp.pad(x, ((0, 0), (0, 0), (pad, pad)))
    T = x.shape[-1]
    out = jnp.zeros((x.shape[0], w.shape[0], T), jnp.float32)
    for k in range(K):
        out = out + jnp.einsum("oi,bit->bot", w[:, :, k], xp[:, :, k:k + T])
    return out + b[None, :, None]


def encoder_reference(x, params):
    n_blocks = params["conv_blocks_num"]
    bn_scale = params["bn_gamma"] / jnp.sqrt(params["bn_running_var"] + BN_EPS)
    bn_shift = params["bn_beta"] - params["bn_running_mean"] * bn_scale

    h = _conv1d_same(x, params["w_first"][:, :, None], params["b_first"])
    means, stds = [], []
    for _ in range(n_blocks):
        y = _conv1d_same(h, params["w_block1"], params["b_block1"])
        y = y * bn_scale[None, :, None] + bn_shift[None, :, None]
        y = jnp.where(y >= 0, y, LEAKY_SLOPE * y)
        y = _conv1d_same(y, params["w_block2"], params["b_block2"])
        h = h + y
        mean = jnp.mean(h, axis=(1, 2), keepdims=True)
        std = jnp.sqrt(jnp.mean((h - mean) ** 2, axis=(1, 2), keepdims=True) + IN_EPS)
        h = (h - mean) / std
        means.append(mean)
        stds.append(std)
    content = _conv1d_same(h, params["w_last"][:, :, None], params["b_last"])
    return content, jnp.stack(means, 0), jnp.stack(stds, 0)


if __name__ == "__main__":
    # B=4 exercises the 2-per-step lane packing (256 lanes) with 2 grid steps.
    B, melbins, melbins_out, hidden, T, n_blocks = 4, 8, 4, 32, 128, 3

    key = jax.random.PRNGKey(0)
    ks = jax.random.split(key, 12)
    rnd = lambda k, shape, s=0.1: s * jax.random.normal(k, shape, jnp.float32)

    params = {
        "conv_blocks_num": n_blocks,
        "w_first": rnd(ks[0], (hidden, melbins)),
        "b_first": rnd(ks[1], (hidden,)),
        # shared weights of the single EncoderConvBlock instance:
        "w_block1": rnd(ks[2], (hidden, hidden, 3)),
        "b_block1": rnd(ks[3], (hidden,)),
        "bn_gamma": 1.0 + rnd(ks[4], (hidden,)),
        "bn_beta": rnd(ks[5], (hidden,)),
        "bn_running_mean": jnp.zeros((hidden,), jnp.float32),
        "bn_running_var": jnp.ones((hidden,), jnp.float32),
        "w_block2": rnd(ks[6], (hidden, hidden, 3)),
        "b_block2": rnd(ks[7], (hidden,)),
        "w_last": rnd(ks[8], (melbins_out, hidden)),
        "b_last": rnd(ks[9], (melbins_out,)),
    }
    x = jax.random.normal(ks[10], (B, melbins, T), jnp.float32)

    c_ref, m_ref, s_ref = encoder_reference(x, params)

    # f32 path, 2-per-step lane packing: tight correctness check.
    content, means, stds = encoder_pallas(x, params, compute_dtype=jnp.float32)
    jax.block_until_ready((content, means, stds))
    assert content.shape == (B, melbins_out, T)
    assert means.shape == (n_blocks, B, 1, 1) and stds.shape == (n_blocks, B, 1, 1)
    assert jnp.allclose(content, c_ref, atol=5e-4, rtol=5e-4), "content mismatch (f32, packed)"
    assert jnp.allclose(means, m_ref, atol=1e-4, rtol=1e-3), "means mismatch (f32, packed)"
    assert jnp.allclose(stds, s_ref, atol=1e-4, rtol=1e-3), "stds mismatch (f32, packed)"

    # f32 path, unpacked (pack=1) — validates the v5e-style configuration.
    content1, means1, stds1 = encoder_pallas(x, params, compute_dtype=jnp.float32, pack=1)
    jax.block_until_ready((content1, means1, stds1))
    assert jnp.allclose(content1, c_ref, atol=5e-4, rtol=5e-4), "content mismatch (f32, pack=1)"
    assert jnp.allclose(means1, m_ref, atol=1e-4, rtol=1e-3), "means mismatch (f32, pack=1)"
    assert jnp.allclose(stds1, s_ref, atol=1e-4, rtol=1e-3), "stds mismatch (f32, pack=1)"

    # bf16 matmul path (MXU-native rate, f32 accumulation): loose sanity check.
    content_bf, means_bf, stds_bf = encoder_pallas(x, params, compute_dtype=jnp.bfloat16)
    jax.block_until_ready((content_bf, means_bf, stds_bf))
    assert jnp.allclose(content_bf, c_ref, atol=1e-1, rtol=1e-1), "content mismatch (bf16)"
    assert jnp.allclose(means_bf, m_ref, atol=5e-2, rtol=1e-1), "means mismatch (bf16)"
    assert jnp.allclose(stds_bf, s_ref, atol=5e-2, rtol=1e-1), "stds mismatch (bf16)"

    print("KERNEL_OK")
</pallas_src>

<mosaic_0001>
module attributes {stable_mosaic.version = 11 : i64} {
  func.func @kernel(%arg0: i32, %arg1: memref<2x8x128xf32, #tpu.memory_space<vmem>>, %arg2: memref<32x8xf32, #tpu.memory_space<vmem>>, %arg3: memref<32x1xf32, #tpu.memory_space<vmem>>, %arg4: memref<96x32xf32, #tpu.memory_space<vmem>>, %arg5: memref<32x1xf32, #tpu.memory_space<vmem>>, %arg6: memref<96x32xf32, #tpu.memory_space<vmem>>, %arg7: memref<32x1xf32, #tpu.memory_space<vmem>>, %arg8: memref<4x32xf32, #tpu.memory_space<vmem>>, %arg9: memref<4x1xf32, #tpu.memory_space<vmem>>, %arg10: memref<2x4x128xf32, #tpu.memory_space<vmem>>, %arg11: memref<1x2x3xf32, #tpu.memory_space<vmem>>, %arg12: memref<1x2x3xf32, #tpu.memory_space<vmem>>) attributes {dimension_semantics = [#tpu.dimension_semantics<parallel>], iteration_bounds = array<i64: 2>, scalar_prefetch = 0 : i64, scratch_operands = 0 : i64, tpu.core_type = #tpu.core_type<tc>, window_params = [{transform_indices = @transform_0, window_bounds = array<i64: 2, 8, 128>}, {pipeline_mode = #tpu.pipeline_mode<synchronous>, transform_indices = @transform_1, window_bounds = array<i64: 32, 8>}, {pipeline_mode = #tpu.pipeline_mode<synchronous>, transform_indices = @transform_2, window_bounds = array<i64: 32, 1>}, {pipeline_mode = #tpu.pipeline_mode<synchronous>, transform_indices = @transform_3, window_bounds = array<i64: 96, 32>}, {pipeline_mode = #tpu.pipeline_mode<synchronous>, transform_indices = @transform_4, window_bounds = array<i64: 32, 1>}, {pipeline_mode = #tpu.pipeline_mode<synchronous>, transform_indices = @transform_5, window_bounds = array<i64: 96, 32>}, {pipeline_mode = #tpu.pipeline_mode<synchronous>, transform_indices = @transform_6, window_bounds = array<i64: 32, 1>}, {pipeline_mode = #tpu.pipeline_mode<synchronous>, transform_indices = @transform_7, window_bounds = array<i64: 4, 32>}, {pipeline_mode = #tpu.pipeline_mode<synchronous>, transform_indices = @transform_8, window_bounds = array<i64: 4, 1>}, {transform_indices = @transform_9, window_bounds = array<i64: 2, 4, 128>}, {transform_indices = @transform_10, window_bounds = array<i64: 1, 2, 3>}, {transform_indices = @transform_11, window_bounds = array<i64: 1, 2, 3>}]} {
    %c0 = arith.constant 0 : index
    %c0_0 = arith.constant 0 : index
    %0 = vector.load %arg2[%c0, %c0_0] : memref<32x8xf32, #tpu.memory_space<vmem>>, vector<32x8xf32>
    %c0_1 = arith.constant 0 : index
    %c0_2 = arith.constant 0 : index
    %1 = vector.load %arg3[%c0_1, %c0_2] : memref<32x1xf32, #tpu.memory_space<vmem>>, vector<32x1xf32>
    %c0_3 = arith.constant 0 : index
    %c0_4 = arith.constant 0 : index
    %2 = vector.load %arg4[%c0_3, %c0_4] : memref<96x32xf32, #tpu.memory_space<vmem>>, vector<96x32xf32>
    %c0_5 = arith.constant 0 : index
    %c0_6 = arith.constant 0 : index
    %3 = vector.load %arg5[%c0_5, %c0_6] : memref<32x1xf32, #tpu.memory_space<vmem>>, vector<32x1xf32>
    %c0_7 = arith.constant 0 : index
    %c0_8 = arith.constant 0 : index
    %4 = vector.load %arg6[%c0_7, %c0_8] : memref<96x32xf32, #tpu.memory_space<vmem>>, vector<96x32xf32>
    %c0_9 = arith.constant 0 : index
    %c0_10 = arith.constant 0 : index
    %5 = vector.load %arg7[%c0_9, %c0_10] : memref<32x1xf32, #tpu.memory_space<vmem>>, vector<32x1xf32>
    %c0_11 = arith.constant 0 : index
    %c0_12 = arith.constant 0 : index
    %6 = vector.load %arg8[%c0_11, %c0_12] : memref<4x32xf32, #tpu.memory_space<vmem>>, vector<4x32xf32>
    %c0_13 = arith.constant 0 : index
    %c0_14 = arith.constant 0 : index
    %7 = vector.load %arg9[%c0_13, %c0_14] : memref<4x1xf32, #tpu.memory_space<vmem>>, vector<4x1xf32>
    %c0_15 = arith.constant 0 : index
    %c0_16 = arith.constant 0 : index
    %c0_17 = arith.constant 0 : index
    %8 = vector.load %arg1[%c0_15, %c0_16, %c0_17] : memref<2x8x128xf32, #tpu.memory_space<vmem>>, vector<1x8x128xf32>
    %9 = vector.shape_cast %8 : vector<1x8x128xf32> to vector<8x128xf32>
    %c1 = arith.constant 1 : index
    %c0_18 = arith.constant 0 : index
    %c0_19 = arith.constant 0 : index
    %10 = vector.load %arg1[%c1, %c0_18, %c0_19] : memref<2x8x128xf32, #tpu.memory_space<vmem>>, vector<1x8x128xf32>
    %11 = vector.shape_cast %10 : vector<1x8x128xf32> to vector<8x128xf32>
    %12 = tpu.concatenate %9, %11 in 1 : vector<8x128xf32>, vector<8x128xf32> -> vector<8x256xf32>
    %cst = arith.constant dense<0.000000e+00> : vector<32x256xf32>
    %13 = tpu.matmul %0, %12, %cst {dimension_numbers = #tpu.dot_dimension_numbers<[1], [0], [0], [1], [0, 0, 1, 1], [], []>} : vector<32x8xf32>, vector<8x256xf32>, vector<32x256xf32> -> vector<32x256xf32>
    %14 = vector.broadcast %1 : vector<32x1xf32> to vector<32x256xf32>
    %15 = arith.addf %13, %14 : vector<32x256xf32>
    %16 = tpu.iota {dimensions = array<i32: 1>} : vector<1x256xi32>
    %c0_i32 = arith.constant 0 : i32
    %17 = vector.broadcast %c0_i32 : i32 to vector<1x256xi32>
    %18 = arith.cmpi eq, %16, %17 : vector<1x256xi32>
    %c127_i32 = arith.constant 127 : i32
    %19 = vector.broadcast %c127_i32 : i32 to vector<1x256xi32>
    %20 = arith.cmpi eq, %16, %19 : vector<1x256xi32>
    %c128_i32 = arith.constant 128 : i32
    %21 = vector.broadcast %c128_i32 : i32 to vector<1x256xi32>
    %22 = arith.cmpi eq, %16, %21 : vector<1x256xi32>
    %23 = arith.ori %18, %22 : vector<1x256xi1>
    %c255_i32 = arith.constant 255 : i32
    %24 = vector.broadcast %c255_i32 : i32 to vector<1x256xi32>
    %25 = arith.cmpi eq, %16, %24 : vector<1x256xi32>
    %26 = arith.ori %20, %25 : vector<1x256xi1>
    %cst_20 = arith.constant dense<true> : vector<1x256xi1>
    %27 = arith.xori %23, %cst_20 : vector<1x256xi1>
    %28 = arith.extui %27 : vector<1x256xi1> to vector<1x256xi32>
    %29 = arith.sitofp %28 : vector<1x256xi32> to vector<1x256xf32>
    %cst_21 = arith.constant dense<true> : vector<1x256xi1>
    %30 = arith.xori %26, %cst_21 : vector<1x256xi1>
    %31 = arith.extui %30 : vector<1x256xi1> to vector<1x256xi32>
    %32 = arith.sitofp %31 : vector<1x256xi32> to vector<1x256xf32>
    %c0_i32_22 = arith.constant 0 : i32
    %33 = vector.broadcast %c0_i32_22 : i32 to vector<1x256xi32>
    %34 = arith.cmpi sge, %16, %33 : vector<1x256xi32>
    %c128_i32_23 = arith.constant 128 : i32
    %35 = vector.broadcast %c128_i32_23 : i32 to vector<1x256xi32>
    %36 = arith.cmpi slt, %16, %35 : vector<1x256xi32>
    %37 = arith.andi %34, %36 : vector<1x256xi1>
    %38 = arith.extui %37 : vector<1x256xi1> to vector<1x256xi32>
    %39 = arith.sitofp %38 : vector<1x256xi32> to vector<1x256xf32>
    %c128_i32_24 = arith.constant 128 : i32
    %40 = vector.broadcast %c128_i32_24 : i32 to vector<1x256xi32>
    %41 = arith.cmpi sge, %16, %40 : vector<1x256xi32>
    %c256_i32 = arith.constant 256 : i32
    %42 = vector.broadcast %c256_i32 : i32 to vector<1x256xi32>
    %43 = arith.cmpi slt, %16, %42 : vector<1x256xi32>
    %44 = arith.andi %41, %43 : vector<1x256xi1>
    %45 = arith.extui %44 : vector<1x256xi1> to vector<1x256xi32>
    %46 = arith.sitofp %45 : vector<1x256xi32> to vector<1x256xf32>
    %cst_25 = arith.constant dense<0.000000e+00> : vector<96x256xf32>
    %47 = tpu.matmul %2, %15, %cst_25 {dimension_numbers = #tpu.dot_dimension_numbers<[1], [0], [0], [1], [0, 0, 1, 1], [], []>} : vector<96x32xf32>, vector<32x256xf32>, vector<96x256xf32> -> vector<96x256xf32>
    %48 = vector.extract_strided_slice %47 {offsets = [0, 0], sizes = [32, 256], strides = [1, 1]} : vector<96x256xf32> to vector<32x256xf32>
    %49 = vector.extract_strided_slice %47 {offsets = [32, 0], sizes = [32, 256], strides = [1, 1]} : vector<96x256xf32> to vector<32x256xf32>
    %50 = vector.extract_strided_slice %47 {offsets = [64, 0], sizes = [32, 256], strides = [1, 1]} : vector<96x256xf32> to vector<32x256xf32>
    %c1_i32 = arith.constant 1 : i32
    %51 = tpu.dynamic_rotate %48 by %c1_i32 dim 1 : vector<32x256xf32>, i32 -> vector<32x256xf32>
    %52 = vector.broadcast %29 : vector<1x256xf32> to vector<32x256xf32>
    %53 = arith.mulf %51, %52 : vector<32x256xf32>
    %54 = arith.addf %49, %53 : vector<32x256xf32>
    %c255_i32_26 = arith.constant 255 : i32
    %55 = tpu.dynamic_rotate %50 by %c255_i32_26 dim 1 : vector<32x256xf32>, i32 -> vector<32x256xf32>
    %56 = vector.broadcast %32 : vector<1x256xf32> to vector<32x256xf32>
    %57 = arith.mulf %55, %56 : vector<32x256xf32>
    %58 = arith.addf %54, %57 : vector<32x256xf32>
    %59 = vector.broadcast %3 : vector<32x1xf32> to vector<32x256xf32>
    %60 = arith.addf %58, %59 : vector<32x256xf32>
    %cst_27 = arith.constant 0.000000e+00 : f32
    %61 = vector.broadcast %cst_27 : f32 to vector<32x256xf32>
    %62 = arith.cmpf oge, %60, %61 : vector<32x256xf32>
    %cst_28 = arith.constant 0.00999999977 : f32
    %63 = vector.broadcast %cst_28 : f32 to vector<32x256xf32>
    %64 = arith.mulf %63, %60 : vector<32x256xf32>
    %65 = arith.select %62, %60, %64 : vector<32x256xi1>, vector<32x256xf32>
    %cst_29 = arith.constant dense<0.000000e+00> : vector<96x256xf32>
    %66 = tpu.matmul %4, %65, %cst_29 {dimension_numbers = #tpu.dot_dimension_numbers<[1], [0], [0], [1], [0, 0, 1, 1], [], []>} : vector<96x32xf32>, vector<32x256xf32>, vector<96x256xf32> -> vector<96x256xf32>
    %67 = vector.extract_strided_slice %66 {offsets = [0, 0], sizes = [32, 256], strides = [1, 1]} : vector<96x256xf32> to vector<32x256xf32>
    %68 = vector.extract_strided_slice %66 {offsets = [32, 0], sizes = [32, 256], strides = [1, 1]} : vector<96x256xf32> to vector<32x256xf32>
    %69 = vector.extract_strided_slice %66 {offsets = [64, 0], sizes = [32, 256], strides = [1, 1]} : vector<96x256xf32> to vector<32x256xf32>
    %c1_i32_30 = arith.constant 1 : i32
    %70 = tpu.dynamic_rotate %67 by %c1_i32_30 dim 1 : vector<32x256xf32>, i32 -> vector<32x256xf32>
    %71 = vector.broadcast %29 : vector<1x256xf32> to vector<32x256xf32>
    %72 = arith.mulf %70, %71 : vector<32x256xf32>
    %73 = arith.addf %68, %72 : vector<32x256xf32>
    %c255_i32_31 = arith.constant 255 : i32
    %74 = tpu.dynamic_rotate %69 by %c255_i32_31 dim 1 : vector<32x256xf32>, i32 -> vector<32x256xf32>
    %75 = vector.broadcast %32 : vector<1x256xf32> to vector<32x256xf32>
    %76 = arith.mulf %74, %75 : vector<32x256xf32>
    %77 = arith.addf %73, %76 : vector<32x256xf32>
    %78 = vector.broadcast %5 : vector<32x1xf32> to vector<32x256xf32>
    %79 = arith.addf %77, %78 : vector<32x256xf32>
    %80 = arith.addf %15, %79 : vector<32x256xf32>
    %cst_32 = arith.constant dense<0.000000e+00> : vector<256xf32>
    %81 = vector.multi_reduction <add>, %80, %cst_32 [0] : vector<32x256xf32> to vector<256xf32>
    %82 = vector.shape_cast %81 : vector<256xf32> to vector<1x256xf32>
    %83 = arith.mulf %80, %80 : vector<32x256xf32>
    %cst_33 = arith.constant dense<0.000000e+00> : vector<256xf32>
    %84 = vector.multi_reduction <add>, %83, %cst_33 [0] : vector<32x256xf32> to vector<256xf32>
    %85 = vector.shape_cast %84 : vector<256xf32> to vector<1x256xf32>
    %cst_34 = arith.constant 0.000000e+00 : f32
    %86 = vector.broadcast %cst_34 : f32 to vector<1x256xf32>
    %cst_35 = arith.constant 0.000000e+00 : f32
    %87 = vector.broadcast %cst_35 : f32 to vector<1x256xf32>
    %88 = vector.extract_strided_slice %82 {offsets = [0, 0], sizes = [1, 128], strides = [1, 1]} : vector<1x256xf32> to vector<1x128xf32>
    %cst_36 = arith.constant dense<0.000000e+00> : vector<1xf32>
    %89 = vector.multi_reduction <add>, %88, %cst_36 [1] : vector<1x128xf32> to vector<1xf32>
    %90 = vector.shape_cast %89 : vector<1xf32> to vector<1x1xf32>
    %91 = vector.extract_strided_slice %85 {offsets = [0, 0], sizes = [1, 128], strides = [1, 1]} : vector<1x256xf32> to vector<1x128xf32>
    %cst_37 = arith.constant dense<0.000000e+00> : vector<1xf32>
    %92 = vector.multi_reduction <add>, %91, %cst_37 [1] : vector<1x128xf32> to vector<1xf32>
    %93 = vector.shape_cast %92 : vector<1xf32> to vector<1x1xf32>
    %cst_38 = arith.constant 2.44140625E-4 : f32
    %94 = vector.broadcast %cst_38 : f32 to vector<1x1xf32>
    %95 = arith.mulf %90, %94 : vector<1x1xf32>
    %cst_39 = arith.constant 2.44140625E-4 : f32
    %96 = vector.broadcast %cst_39 : f32 to vector<1x1xf32>
    %97 = arith.mulf %93, %96 : vector<1x1xf32>
    %98 = arith.mulf %95, %95 : vector<1x1xf32>
    %99 = arith.subf %97, %98 : vector<1x1xf32>
    %cst_40 = arith.constant 0.000000e+00 : f32
    %100 = vector.broadcast %cst_40 : f32 to vector<1x1xf32>
    %101 = arith.maximumf %99, %100 : vector<1x1xf32>
    %cst_41 = arith.constant 9.99999974E-6 : f32
    %102 = vector.broadcast %cst_41 : f32 to vector<1x1xf32>
    %103 = arith.addf %101, %102 : vector<1x1xf32>
    %104 = math.sqrt %103 : vector<1x1xf32>
    %cst_42 = arith.constant 9.99999974E-6 : f32
    %105 = vector.broadcast %cst_42 : f32 to vector<1x1xf32>
    %106 = arith.addf %101, %105 : vector<1x1xf32>
    %107 = math.rsqrt %106 : vector<1x1xf32>
    %108 = vector.broadcast %95 : vector<1x1xf32> to vector<1x256xf32>
    %109 = arith.mulf %108, %39 : vector<1x256xf32>
    %110 = arith.addf %86, %109 : vector<1x256xf32>
    %111 = vector.broadcast %107 : vector<1x1xf32> to vector<1x256xf32>
    %112 = arith.mulf %111, %39 : vector<1x256xf32>
    %113 = arith.addf %87, %112 : vector<1x256xf32>
    %114 = vector.extract_strided_slice %82 {offsets = [0, 128], sizes = [1, 128], strides = [1, 1]} : vector<1x256xf32> to vector<1x128xf32>
    %cst_43 = arith.constant dense<0.000000e+00> : vector<1xf32>
    %115 = vector.multi_reduction <add>, %114, %cst_43 [1] : vector<1x128xf32> to vector<1xf32>
    %116 = vector.shape_cast %115 : vector<1xf32> to vector<1x1xf32>
    %117 = vector.extract_strided_slice %85 {offsets = [0, 128], sizes = [1, 128], strides = [1, 1]} : vector<1x256xf32> to vector<1x128xf32>
    %cst_44 = arith.constant dense<0.000000e+00> : vector<1xf32>
    %118 = vector.multi_reduction <add>, %117, %cst_44 [1] : vector<1x128xf32> to vector<1xf32>
    %119 = vector.shape_cast %118 : vector<1xf32> to vector<1x1xf32>
    %cst_45 = arith.constant 2.44140625E-4 : f32
    %120 = vector.broadcast %cst_45 : f32 to vector<1x1xf32>
    %121 = arith.mulf %116, %120 : vector<1x1xf32>
    %cst_46 = arith.constant 2.44140625E-4 : f32
    %122 = vector.broadcast %cst_46 : f32 to vector<1x1xf32>
    %123 = arith.mulf %119, %122 : vector<1x1xf32>
    %124 = arith.mulf %121, %121 : vector<1x1xf32>
    %125 = arith.subf %123, %124 : vector<1x1xf32>
    %cst_47 = arith.constant 0.000000e+00 : f32
    %126 = vector.broadcast %cst_47 : f32 to vector<1x1xf32>
    %127 = arith.maximumf %125, %126 : vector<1x1xf32>
    %cst_48 = arith.constant 9.99999974E-6 : f32
    %128 = vector.broadcast %cst_48 : f32 to vector<1x1xf32>
    %129 = arith.addf %127, %128 : vector<1x1xf32>
    %130 = math.sqrt %129 : vector<1x1xf32>
    %cst_49 = arith.constant 9.99999974E-6 : f32
    %131 = vector.broadcast %cst_49 : f32 to vector<1x1xf32>
    %132 = arith.addf %127, %131 : vector<1x1xf32>
    %133 = math.rsqrt %132 : vector<1x1xf32>
    %134 = vector.broadcast %121 : vector<1x1xf32> to vector<1x256xf32>
    %135 = arith.mulf %134, %46 : vector<1x256xf32>
    %136 = arith.addf %110, %135 : vector<1x256xf32>
    %137 = vector.broadcast %133 : vector<1x1xf32> to vector<1x256xf32>
    %138 = arith.mulf %137, %46 : vector<1x256xf32>
    %139 = arith.addf %113, %138 : vector<1x256xf32>
    %140 = vector.broadcast %136 : vector<1x256xf32> to vector<32x256xf32>
    %141 = arith.subf %80, %140 : vector<32x256xf32>
    %142 = vector.broadcast %139 : vector<1x256xf32> to vector<32x256xf32>
    %143 = arith.mulf %141, %142 : vector<32x256xf32>
    %cst_50 = arith.constant dense<0.000000e+00> : vector<96x256xf32>
    %144 = tpu.matmul %2, %143, %cst_50 {dimension_numbers = #tpu.dot_dimension_numbers<[1], [0], [0], [1], [0, 0, 1, 1], [], []>} : vector<96x32xf32>, vector<32x256xf32>, vector<96x256xf32> -> vector<96x256xf32>
    %145 = vector.extract_strided_slice %144 {offsets = [0, 0], sizes = [32, 256], strides = [1, 1]} : vector<96x256xf32> to vector<32x256xf32>
    %146 = vector.extract_strided_slice %144 {offsets = [32, 0], sizes = [32, 256], strides = [1, 1]} : vector<96x256xf32> to vector<32x256xf32>
    %147 = vector.extract_strided_slice %144 {offsets = [64, 0], sizes = [32, 256], strides = [1, 1]} : vector<96x256xf32> to vector<32x256xf32>
    %c1_i32_51 = arith.constant 1 : i32
    %148 = tpu.dynamic_rotate %145 by %c1_i32_51 dim 1 : vector<32x256xf32>, i32 -> vector<32x256xf32>
    %149 = vector.broadcast %29 : vector<1x256xf32> to vector<32x256xf32>
    %150 = arith.mulf %148, %149 : vector<32x256xf32>
    %151 = arith.addf %146, %150 : vector<32x256xf32>
    %c255_i32_52 = arith.constant 255 : i32
    %152 = tpu.dynamic_rotate %147 by %c255_i32_52 dim 1 : vector<32x256xf32>, i32 -> vector<32x256xf32>
    %153 = vector.broadcast %32 : vector<1x256xf32> to vector<32x256xf32>
    %154 = arith.mulf %152, %153 : vector<32x256xf32>
    %155 = arith.addf %151, %154 : vector<32x256xf32>
    %156 = vector.broadcast %3 : vector<32x1xf32> to vector<32x256xf32>
    %157 = arith.addf %155, %156 : vector<32x256xf32>
    %cst_53 = arith.constant 0.000000e+00 : f32
    %158 = vector.broadcast %cst_53 : f32 to vector<32x256xf32>
    %159 = arith.cmpf oge, %157, %158 : vector<32x256xf32>
    %cst_54 = arith.constant 0.00999999977 : f32
    %160 = vector.broadcast %cst_54 : f32 to vector<32x256xf32>
    %161 = arith.mulf %160, %157 : vector<32x256xf32>
    %162 = arith.select %159, %157, %161 : vector<32x256xi1>, vector<32x256xf32>
    %cst_55 = arith.constant dense<0.000000e+00> : vector<96x256xf32>
    %163 = tpu.matmul %4, %162, %cst_55 {dimension_numbers = #tpu.dot_dimension_numbers<[1], [0], [0], [1], [0, 0, 1, 1], [], []>} : vector<96x32xf32>, vector<32x256xf32>, vector<96x256xf32> -> vector<96x256xf32>
    %164 = vector.extract_strided_slice %163 {offsets = [0, 0], sizes = [32, 256], strides = [1, 1]} : vector<96x256xf32> to vector<32x256xf32>
    %165 = vector.extract_strided_slice %163 {offsets = [32, 0], sizes = [32, 256], strides = [1, 1]} : vector<96x256xf32> to vector<32x256xf32>
    %166 = vector.extract_strided_slice %163 {offsets = [64, 0], sizes = [32, 256], strides = [1, 1]} : vector<96x256xf32> to vector<32x256xf32>
    %c1_i32_56 = arith.constant 1 : i32
    %167 = tpu.dynamic_rotate %164 by %c1_i32_56 dim 1 : vector<32x256xf32>, i32 -> vector<32x256xf32>
    %168 = vector.broadcast %29 : vector<1x256xf32> to vector<32x256xf32>
    %169 = arith.mulf %167, %168 : vector<32x256xf32>
    %170 = arith.addf %165, %169 : vector<32x256xf32>
    %c255_i32_57 = arith.constant 255 : i32
    %171 = tpu.dynamic_rotate %166 by %c255_i32_57 dim 1 : vector<32x256xf32>, i32 -> vector<32x256xf32>
    %172 = vector.broadcast %32 : vector<1x256xf32> to vector<32x256xf32>
    %173 = arith.mulf %171, %172 : vector<32x256xf32>
    %174 = arith.addf %170, %173 : vector<32x256xf32>
    %175 = vector.broadcast %5 : vector<32x1xf32> to vector<32x256xf32>
    %176 = arith.addf %174, %175 : vector<32x256xf32>
    %177 = arith.addf %143, %176 : vector<32x256xf32>
    %cst_58 = arith.constant dense<0.000000e+00> : vector<256xf32>
    %178 = vector.multi_reduction <add>, %177, %cst_58 [0] : vector<32x256xf32> to vector<256xf32>
    %179 = vector.shape_cast %178 : vector<256xf32> to vector<1x256xf32>
    %180 = arith.mulf %177, %177 : vector<32x256xf32>
    %cst_59 = arith.constant dense<0.000000e+00> : vector<256xf32>
    %181 = vector.multi_reduction <add>, %180, %cst_59 [0] : vector<32x256xf32> to vector<256xf32>
    %182 = vector.shape_cast %181 : vector<256xf32> to vector<1x256xf32>
    %cst_60 = arith.constant 0.000000e+00 : f32
    %183 = vector.broadcast %cst_60 : f32 to vector<1x256xf32>
    %cst_61 = arith.constant 0.000000e+00 : f32
    %184 = vector.broadcast %cst_61 : f32 to vector<1x256xf32>
    %185 = vector.extract_strided_slice %179 {offsets = [0, 0], sizes = [1, 128], strides = [1, 1]} : vector<1x256xf32> to vector<1x128xf32>
    %cst_62 = arith.constant dense<0.000000e+00> : vector<1xf32>
    %186 = vector.multi_reduction <add>, %185, %cst_62 [1] : vector<1x128xf32> to vector<1xf32>
    %187 = vector.shape_cast %186 : vector<1xf32> to vector<1x1xf32>
    %188 = vector.extract_strided_slice %182 {offsets = [0, 0], sizes = [1, 128], strides = [1, 1]} : vector<1x256xf32> to vector<1x128xf32>
    %cst_63 = arith.constant dense<0.000000e+00> : vector<1xf32>
    %189 = vector.multi_reduction <add>, %188, %cst_63 [1] : vector<1x128xf32> to vector<1xf32>
    %190 = vector.shape_cast %189 : vector<1xf32> to vector<1x1xf32>
    %cst_64 = arith.constant 2.44140625E-4 : f32
    %191 = vector.broadcast %cst_64 : f32 to vector<1x1xf32>
    %192 = arith.mulf %187, %191 : vector<1x1xf32>
    %cst_65 = arith.constant 2.44140625E-4 : f32
    %193 = vector.broadcast %cst_65 : f32 to vector<1x1xf32>
    %194 = arith.mulf %190, %193 : vector<1x1xf32>
    %195 = arith.mulf %192, %192 : vector<1x1xf32>
    %196 = arith.subf %194, %195 : vector<1x1xf32>
    %cst_66 = arith.constant 0.000000e+00 : f32
    %197 = vector.broadcast %cst_66 : f32 to vector<1x1xf32>
    %198 = arith.maximumf %196, %197 : vector<1x1xf32>
    %cst_67 = arith.constant 9.99999974E-6 : f32
    %199 = vector.broadcast %cst_67 : f32 to vector<1x1xf32>
    %200 = arith.addf %198, %199 : vector<1x1xf32>
    %201 = math.sqrt %200 : vector<1x1xf32>
    %cst_68 = arith.constant 9.99999974E-6 : f32
    %202 = vector.broadcast %cst_68 : f32 to vector<1x1xf32>
    %203 = arith.addf %198, %202 : vector<1x1xf32>
    %204 = math.rsqrt %203 : vector<1x1xf32>
    %205 = vector.broadcast %192 : vector<1x1xf32> to vector<1x256xf32>
    %206 = arith.mulf %205, %39 : vector<1x256xf32>
    %207 = arith.addf %183, %206 : vector<1x256xf32>
    %208 = vector.broadcast %204 : vector<1x1xf32> to vector<1x256xf32>
    %209 = arith.mulf %208, %39 : vector<1x256xf32>
    %210 = arith.addf %184, %209 : vector<1x256xf32>
    %211 = vector.extract_strided_slice %179 {offsets = [0, 128], sizes = [1, 128], strides = [1, 1]} : vector<1x256xf32> to vector<1x128xf32>
    %cst_69 = arith.constant dense<0.000000e+00> : vector<1xf32>
    %212 = vector.multi_reduction <add>, %211, %cst_69 [1] : vector<1x128xf32> to vector<1xf32>
    %213 = vector.shape_cast %212 : vector<1xf32> to vector<1x1xf32>
    %214 = vector.extract_strided_slice %182 {offsets = [0, 128], sizes = [1, 128], strides = [1, 1]} : vector<1x256xf32> to vector<1x128xf32>
    %cst_70 = arith.constant dense<0.000000e+00> : vector<1xf32>
    %215 = vector.multi_reduction <add>, %214, %cst_70 [1] : vector<1x128xf32> to vector<1xf32>
    %216 = vector.shape_cast %215 : vector<1xf32> to vector<1x1xf32>
    %cst_71 = arith.constant 2.44140625E-4 : f32
    %217 = vector.broadcast %cst_71 : f32 to vector<1x1xf32>
    %218 = arith.mulf %213, %217 : vector<1x1xf32>
    %cst_72 = arith.constant 2.44140625E-4 : f32
    %219 = vector.broadcast %cst_72 : f32 to vector<1x1xf32>
    %220 = arith.mulf %216, %219 : vector<1x1xf32>
    %221 = arith.mulf %218, %218 : vector<1x1xf32>
    %222 = arith.subf %220, %221 : vector<1x1xf32>
    %cst_73 = arith.constant 0.000000e+00 : f32
    %223 = vector.broadcast %cst_73 : f32 to vector<1x1xf32>
    %224 = arith.maximumf %222, %223 : vector<1x1xf32>
    %cst_74 = arith.constant 9.99999974E-6 : f32
    %225 = vector.broadcast %cst_74 : f32 to vector<1x1xf32>
    %226 = arith.addf %224, %225 : vector<1x1xf32>
    %227 = math.sqrt %226 : vector<1x1xf32>
    %cst_75 = arith.constant 9.99999974E-6 : f32
    %228 = vector.broadcast %cst_75 : f32 to vector<1x1xf32>
    %229 = arith.addf %224, %228 : vector<1x1xf32>
    %230 = math.rsqrt %229 : vector<1x1xf32>
    %231 = vector.broadcast %218 : vector<1x1xf32> to vector<1x256xf32>
    %232 = arith.mulf %231, %46 : vector<1x256xf32>
    %233 = arith.addf %207, %232 : vector<1x256xf32>
    %234 = vector.broadcast %230 : vector<1x1xf32> to vector<1x256xf32>
    %235 = arith.mulf %234, %46 : vector<1x256xf32>
    %236 = arith.addf %210, %235 : vector<1x256xf32>
    %237 = vector.broadcast %233 : vector<1x256xf32> to vector<32x256xf32>
    %238 = arith.subf %177, %237 : vector<32x256xf32>
    %239 = vector.broadcast %236 : vector<1x256xf32> to vector<32x256xf32>
    %240 = arith.mulf %238, %239 : vector<32x256xf32>
    %cst_76 = arith.constant dense<0.000000e+00> : vector<96x256xf32>
    %241 = tpu.matmul %2, %240, %cst_76 {dimension_numbers = #tpu.dot_dimension_numbers<[1], [0], [0], [1], [0, 0, 1, 1], [], []>} : vector<96x32xf32>, vector<32x256xf32>, vector<96x256xf32> -> vector<96x256xf32>
    %242 = vector.extract_strided_slice %241 {offsets = [0, 0], sizes = [32, 256], strides = [1, 1]} : vector<96x256xf32> to vector<32x256xf32>
    %243 = vector.extract_strided_slice %241 {offsets = [32, 0], sizes = [32, 256], strides = [1, 1]} : vector<96x256xf32> to vector<32x256xf32>
    %244 = vector.extract_strided_slice %241 {offsets = [64, 0], sizes = [32, 256], strides = [1, 1]} : vector<96x256xf32> to vector<32x256xf32>
    %c1_i32_77 = arith.constant 1 : i32
    %245 = tpu.dynamic_rotate %242 by %c1_i32_77 dim 1 : vector<32x256xf32>, i32 -> vector<32x256xf32>
    %246 = vector.broadcast %29 : vector<1x256xf32> to vector<32x256xf32>
    %247 = arith.mulf %245, %246 : vector<32x256xf32>
    %248 = arith.addf %243, %247 : vector<32x256xf32>
    %c255_i32_78 = arith.constant 255 : i32
    %249 = tpu.dynamic_rotate %244 by %c255_i32_78 dim 1 : vector<32x256xf32>, i32 -> vector<32x256xf32>
    %250 = vector.broadcast %32 : vector<1x256xf32> to vector<32x256xf32>
    %251 = arith.mulf %249, %250 : vector<32x256xf32>
    %252 = arith.addf %248, %251 : vector<32x256xf32>
    %253 = vector.broadcast %3 : vector<32x1xf32> to vector<32x256xf32>
    %254 = arith.addf %252, %253 : vector<32x256xf32>
    %cst_79 = arith.constant 0.000000e+00 : f32
    %255 = vector.broadcast %cst_79 : f32 to vector<32x256xf32>
    %256 = arith.cmpf oge, %254, %255 : vector<32x256xf32>
    %cst_80 = arith.constant 0.00999999977 : f32
    %257 = vector.broadcast %cst_80 : f32 to vector<32x256xf32>
    %258 = arith.mulf %257, %254 : vector<32x256xf32>
    %259 = arith.select %256, %254, %258 : vector<32x256xi1>, vector<32x256xf32>
    %cst_81 = arith.constant dense<0.000000e+00> : vector<96x256xf32>
    %260 = tpu.matmul %4, %259, %cst_81 {dimension_numbers = #tpu.dot_dimension_numbers<[1], [0], [0], [1], [0, 0, 1, 1], [], []>} : vector<96x32xf32>, vector<32x256xf32>, vector<96x256xf32> -> vector<96x256xf32>
    %261 = vector.extract_strided_slice %260 {offsets = [0, 0], sizes = [32, 256], strides = [1, 1]} : vector<96x256xf32> to vector<32x256xf32>
    %262 = vector.extract_strided_slice %260 {offsets = [32, 0], sizes = [32, 256], strides = [1, 1]} : vector<96x256xf32> to vector<32x256xf32>
    %263 = vector.extract_strided_slice %260 {offsets = [64, 0], sizes = [32, 256], strides = [1, 1]} : vector<96x256xf32> to vector<32x256xf32>
    %c1_i32_82 = arith.constant 1 : i32
    %264 = tpu.dynamic_rotate %261 by %c1_i32_82 dim 1 : vector<32x256xf32>, i32 -> vector<32x256xf32>
    %265 = vector.broadcast %29 : vector<1x256xf32> to vector<32x256xf32>
    %266 = arith.mulf %264, %265 : vector<32x256xf32>
    %267 = arith.addf %262, %266 : vector<32x256xf32>
    %c255_i32_83 = arith.constant 255 : i32
    %268 = tpu.dynamic_rotate %263 by %c255_i32_83 dim 1 : vector<32x256xf32>, i32 -> vector<32x256xf32>
    %269 = vector.broadcast %32 : vector<1x256xf32> to vector<32x256xf32>
    %270 = arith.mulf %268, %269 : vector<32x256xf32>
    %271 = arith.addf %267, %270 : vector<32x256xf32>
    %272 = vector.broadcast %5 : vector<32x1xf32> to vector<32x256xf32>
    %273 = arith.addf %271, %272 : vector<32x256xf32>
    %274 = arith.addf %240, %273 : vector<32x256xf32>
    %cst_84 = arith.constant dense<0.000000e+00> : vector<256xf32>
    %275 = vector.multi_reduction <add>, %274, %cst_84 [0] : vector<32x256xf32> to vector<256xf32>
    %276 = vector.shape_cast %275 : vector<256xf32> to vector<1x256xf32>
    %277 = arith.mulf %274, %274 : vector<32x256xf32>
    %cst_85 = arith.constant dense<0.000000e+00> : vector<256xf32>
    %278 = vector.multi_reduction <add>, %277, %cst_85 [0] : vector<32x256xf32> to vector<256xf32>
    %279 = vector.shape_cast %278 : vector<256xf32> to vector<1x256xf32>
    %cst_86 = arith.constant 0.000000e+00 : f32
    %280 = vector.broadcast %cst_86 : f32 to vector<1x256xf32>
    %cst_87 = arith.constant 0.000000e+00 : f32
    %281 = vector.broadcast %cst_87 : f32 to vector<1x256xf32>
    %282 = vector.extract_strided_slice %276 {offsets = [0, 0], sizes = [1, 128], strides = [1, 1]} : vector<1x256xf32> to vector<1x128xf32>
    %cst_88 = arith.constant dense<0.000000e+00> : vector<1xf32>
    %283 = vector.multi_reduction <add>, %282, %cst_88 [1] : vector<1x128xf32> to vector<1xf32>
    %284 = vector.shape_cast %283 : vector<1xf32> to vector<1x1xf32>
    %285 = vector.extract_strided_slice %279 {offsets = [0, 0], sizes = [1, 128], strides = [1, 1]} : vector<1x256xf32> to vector<1x128xf32>
    %cst_89 = arith.constant dense<0.000000e+00> : vector<1xf32>
    %286 = vector.multi_reduction <add>, %285, %cst_89 [1] : vector<1x128xf32> to vector<1xf32>
    %287 = vector.shape_cast %286 : vector<1xf32> to vector<1x1xf32>
    %cst_90 = arith.constant 2.44140625E-4 : f32
    %288 = vector.broadcast %cst_90 : f32 to vector<1x1xf32>
    %289 = arith.mulf %284, %288 : vector<1x1xf32>
    %cst_91 = arith.constant 2.44140625E-4 : f32
    %290 = vector.broadcast %cst_91 : f32 to vector<1x1xf32>
    %291 = arith.mulf %287, %290 : vector<1x1xf32>
    %292 = arith.mulf %289, %289 : vector<1x1xf32>
    %293 = arith.subf %291, %292 : vector<1x1xf32>
    %cst_92 = arith.constant 0.000000e+00 : f32
    %294 = vector.broadcast %cst_92 : f32 to vector<1x1xf32>
    %295 = arith.maximumf %293, %294 : vector<1x1xf32>
    %cst_93 = arith.constant 9.99999974E-6 : f32
    %296 = vector.broadcast %cst_93 : f32 to vector<1x1xf32>
    %297 = arith.addf %295, %296 : vector<1x1xf32>
    %298 = math.sqrt %297 : vector<1x1xf32>
    %cst_94 = arith.constant 9.99999974E-6 : f32
    %299 = vector.broadcast %cst_94 : f32 to vector<1x1xf32>
    %300 = arith.addf %295, %299 : vector<1x1xf32>
    %301 = math.rsqrt %300 : vector<1x1xf32>
    %302 = vector.broadcast %289 : vector<1x1xf32> to vector<1x256xf32>
    %303 = arith.mulf %302, %39 : vector<1x256xf32>
    %304 = arith.addf %280, %303 : vector<1x256xf32>
    %305 = vector.broadcast %301 : vector<1x1xf32> to vector<1x256xf32>
    %306 = arith.mulf %305, %39 : vector<1x256xf32>
    %307 = arith.addf %281, %306 : vector<1x256xf32>
    %308 = vector.extract_strided_slice %276 {offsets = [0, 128], sizes = [1, 128], strides = [1, 1]} : vector<1x256xf32> to vector<1x128xf32>
    %cst_95 = arith.constant dense<0.000000e+00> : vector<1xf32>
    %309 = vector.multi_reduction <add>, %308, %cst_95 [1] : vector<1x128xf32> to vector<1xf32>
    %310 = vector.shape_cast %309 : vector<1xf32> to vector<1x1xf32>
    %311 = vector.extract_strided_slice %279 {offsets = [0, 128], sizes = [1, 128], strides = [1, 1]} : vector<1x256xf32> to vector<1x128xf32>
    %cst_96 = arith.constant dense<0.000000e+00> : vector<1xf32>
    %312 = vector.multi_reduction <add>, %311, %cst_96 [1] : vector<1x128xf32> to vector<1xf32>
    %313 = vector.shape_cast %312 : vector<1xf32> to vector<1x1xf32>
    %cst_97 = arith.constant 2.44140625E-4 : f32
    %314 = vector.broadcast %cst_97 : f32 to vector<1x1xf32>
    %315 = arith.mulf %310, %314 : vector<1x1xf32>
    %cst_98 = arith.constant 2.44140625E-4 : f32
    %316 = vector.broadcast %cst_98 : f32 to vector<1x1xf32>
    %317 = arith.mulf %313, %316 : vector<1x1xf32>
    %318 = arith.mulf %315, %315 : vector<1x1xf32>
    %319 = arith.subf %317, %318 : vector<1x1xf32>
    %cst_99 = arith.constant 0.000000e+00 : f32
    %320 = vector.broadcast %cst_99 : f32 to vector<1x1xf32>
    %321 = arith.maximumf %319, %320 : vector<1x1xf32>
    %cst_100 = arith.constant 9.99999974E-6 : f32
    %322 = vector.broadcast %cst_100 : f32 to vector<1x1xf32>
    %323 = arith.addf %321, %322 : vector<1x1xf32>
    %324 = math.sqrt %323 : vector<1x1xf32>
    %cst_101 = arith.constant 9.99999974E-6 : f32
    %325 = vector.broadcast %cst_101 : f32 to vector<1x1xf32>
    %326 = arith.addf %321, %325 : vector<1x1xf32>
    %327 = math.rsqrt %326 : vector<1x1xf32>
    %328 = vector.broadcast %315 : vector<1x1xf32> to vector<1x256xf32>
    %329 = arith.mulf %328, %46 : vector<1x256xf32>
    %330 = arith.addf %304, %329 : vector<1x256xf32>
    %331 = vector.broadcast %327 : vector<1x1xf32> to vector<1x256xf32>
    %332 = arith.mulf %331, %46 : vector<1x256xf32>
    %333 = arith.addf %307, %332 : vector<1x256xf32>
    %334 = vector.broadcast %330 : vector<1x256xf32> to vector<32x256xf32>
    %335 = arith.subf %274, %334 : vector<32x256xf32>
    %336 = vector.broadcast %333 : vector<1x256xf32> to vector<32x256xf32>
    %337 = arith.mulf %335, %336 : vector<32x256xf32>
    %cst_102 = arith.constant dense<0.000000e+00> : vector<4x256xf32>
    %338 = tpu.matmul %6, %337, %cst_102 {dimension_numbers = #tpu.dot_dimension_numbers<[1], [0], [0], [1], [0, 0, 1, 1], [], []>} : vector<4x32xf32>, vector<32x256xf32>, vector<4x256xf32> -> vector<4x256xf32>
    %339 = vector.broadcast %7 : vector<4x1xf32> to vector<4x256xf32>
    %340 = arith.addf %338, %339 : vector<4x256xf32>
    %341 = vector.extract_strided_slice %340 {offsets = [0, 0], sizes = [4, 128], strides = [1, 1]} : vector<4x256xf32> to vector<4x128xf32>
    %c0_103 = arith.constant 0 : index
    %c0_104 = arith.constant 0 : index
    %c0_105 = arith.constant 0 : index
    %342 = vector.load %arg10[%c0_103, %c0_104, %c0_105] : memref<2x4x128xf32, #tpu.memory_space<vmem>>, vector<1x4x128xf32>
    %343 = vector.shape_cast %342 : vector<1x4x128xf32> to vector<4x128xf32>
    %344 = vector.shape_cast %341 : vector<4x128xf32> to vector<1x4x128xf32>
    tpu.vector_store %arg10[%c0_103, %c0_104, %c0_105], %344 {strides = array<i32>} : memref<2x4x128xf32, #tpu.memory_space<vmem>>, vector<1x4x128xf32>,
    %345 = vector.extract_strided_slice %340 {offsets = [0, 128], sizes = [4, 128], strides = [1, 1]} : vector<4x256xf32> to vector<4x128xf32>
    %c1_106 = arith.constant 1 : index
    %c0_107 = arith.constant 0 : index
    %c0_108 = arith.constant 0 : index
    %346 = vector.load %arg10[%c1_106, %c0_107, %c0_108] : memref<2x4x128xf32, #tpu.memory_space<vmem>>, vector<1x4x128xf32>
    %347 = vector.shape_cast %346 : vector<1x4x128xf32> to vector<4x128xf32>
    %348 = vector.shape_cast %345 : vector<4x128xf32> to vector<1x4x128xf32>
    tpu.vector_store %arg10[%c1_106, %c0_107, %c0_108], %348 {strides = array<i32>} : memref<2x4x128xf32, #tpu.memory_space<vmem>>, vector<1x4x128xf32>,
    %349 = tpu.concatenate %95, %192, %289 in 1 : vector<1x1xf32>, vector<1x1xf32>, vector<1x1xf32> -> vector<1x3xf32>
    %350 = tpu.concatenate %121, %218, %315 in 1 : vector<1x1xf32>, vector<1x1xf32>, vector<1x1xf32> -> vector<1x3xf32>
    %351 = tpu.concatenate %349, %350 in 0 : vector<1x3xf32>, vector<1x3xf32> -> vector<2x3xf32>
    %c0_109 = arith.constant 0 : index
    %c0_110 = arith.constant 0 : index
    %c0_111 = arith.constant 0 : index
    %352 = vector.load %arg11[%c0_109, %c0_110, %c0_111] : memref<1x2x3xf32, #tpu.memory_space<vmem>>, vector<1x2x3xf32>
    %353 = vector.shape_cast %352 : vector<1x2x3xf32> to vector<2x3xf32>
    %354 = vector.shape_cast %351 : vector<2x3xf32> to vector<1x2x3xf32>
    tpu.vector_store %arg11[%c0_109, %c0_110, %c0_111], %354 {strides = array<i32>} : memref<1x2x3xf32, #tpu.memory_space<vmem>>, vector<1x2x3xf32>,
    %355 = tpu.concatenate %104, %201, %298 in 1 : vector<1x1xf32>, vector<1x1xf32>, vector<1x1xf32> -> vector<1x3xf32>
    %356 = tpu.concatenate %130, %227, %324 in 1 : vector<1x1xf32>, vector<1x1xf32>, vector<1x1xf32> -> vector<1x3xf32>
    %357 = tpu.concatenate %355, %356 in 0 : vector<1x3xf32>, vector<1x3xf32> -> vector<2x3xf32>
    %c0_112 = arith.constant 0 : index
    %c0_113 = arith.constant 0 : index
    %c0_114 = arith.constant 0 : index
    %358 = vector.load %arg12[%c0_112, %c0_113, %c0_114] : memref<1x2x3xf32, #tpu.memory_space<vmem>>, vector<1x2x3xf32>
    %359 = vector.shape_cast %358 : vector<1x2x3xf32> to vector<2x3xf32>
    %360 = vector.shape_cast %357 : vector<2x3xf32> to vector<1x2x3xf32>
    tpu.vector_store %arg12[%c0_112, %c0_113, %c0_114], %360 {strides = array<i32>} : memref<1x2x3xf32, #tpu.memory_space<vmem>>, vector<1x2x3xf32>,
    return
  }
  func.func @transform_0(%arg0: i32) -> (i32, i32, i32) {
    %c0_i32 = arith.constant 0 : i32
    %c0_i32_0 = arith.constant 0 : i32
    %c0_i32_1 = arith.constant 0 : i32
    return %arg0, %c0_i32, %c0_i32_0 : i32, i32, i32
  }
  func.func @transform_1(%arg0: i32) -> (i32, i32) {
    %c0_i32 = arith.constant 0 : i32
    %c0_i32_0 = arith.constant 0 : i32
    %c0_i32_1 = arith.constant 0 : i32
    return %c0_i32, %c0_i32_0 : i32, i32
  }
  func.func @transform_2(%arg0: i32) -> (i32, i32) {
    %c0_i32 = arith.constant 0 : i32
    %c0_i32_0 = arith.constant 0 : i32
    %c0_i32_1 = arith.constant 0 : i32
    return %c0_i32, %c0_i32_0 : i32, i32
  }
  func.func @transform_3(%arg0: i32) -> (i32, i32) {
    %c0_i32 = arith.constant 0 : i32
    %c0_i32_0 = arith.constant 0 : i32
    %c0_i32_1 = arith.constant 0 : i32
    return %c0_i32, %c0_i32_0 : i32, i32
  }
  func.func @transform_4(%arg0: i32) -> (i32, i32) {
    %c0_i32 = arith.constant 0 : i32
    %c0_i32_0 = arith.constant 0 : i32
    %c0_i32_1 = arith.constant 0 : i32
    return %c0_i32, %c0_i32_0 : i32, i32
  }
  func.func @transform_5(%arg0: i32) -> (i32, i32) {
    %c0_i32 = arith.constant 0 : i32
    %c0_i32_0 = arith.constant 0 : i32
    %c0_i32_1 = arith.constant 0 : i32
    return %c0_i32, %c0_i32_0 : i32, i32
  }
  func.func @transform_6(%arg0: i32) -> (i32, i32) {
    %c0_i32 = arith.constant 0 : i32
    %c0_i32_0 = arith.constant 0 : i32
    %c0_i32_1 = arith.constant 0 : i32
    return %c0_i32, %c0_i32_0 : i32, i32
  }
  func.func @transform_7(%arg0: i32) -> (i32, i32) {
    %c0_i32 = arith.constant 0 : i32
    %c0_i32_0 = arith.constant 0 : i32
    %c0_i32_1 = arith.constant 0 : i32
    return %c0_i32, %c0_i32_0 : i32, i32
  }
  func.func @transform_8(%arg0: i32) -> (i32, i32) {
    %c0_i32 = arith.constant 0 : i32
    %c0_i32_0 = arith.constant 0 : i32
    %c0_i32_1 = arith.constant 0 : i32
    return %c0_i32, %c0_i32_0 : i32, i32
  }
  func.func @transform_9(%arg0: i32) -> (i32, i32, i32) {
    %c0_i32 = arith.constant 0 : i32
    %c0_i32_0 = arith.constant 0 : i32
    %c0_i32_1 = arith.constant 0 : i32
    return %arg0, %c0_i32, %c0_i32_0 : i32, i32, i32
  }
  func.func @transform_10(%arg0: i32) -> (i32, i32, i32) {
    %c0_i32 = arith.constant 0 : i32
    %c0_i32_0 = arith.constant 0 : i32
    %c0_i32_1 = arith.constant 0 : i32
    return %arg0, %c0_i32, %c0_i32_0 : i32, i32, i32
  }
  func.func @transform_11(%arg0: i32) -> (i32, i32, i32) {
    %c0_i32 = arith.constant 0 : i32
    %c0_i32_0 = arith.constant 0 : i32
    %c0_i32_1 = arith.constant 0 : i32
    return %arg0, %c0_i32, %c0_i32_0 : i32, i32, i32
  }
}

</mosaic_0001>

<bundles_post_ra>
// kernel: tpu_custom_call.1
= control target key start
LH: loop header
LB: loop body
LE: loop exit
PB: predicated region body
PF: predicated region fallthrough
CT: control target
= control target key end

     0   :  { %s4719_s0 = inlined_call_operand.vmem [shape: f32[4,8,128], index: 0, kind: input, shape index: {}]   ;;  %s4720_s1 = inlined_call_operand.vmem [shape: f32[32,8], index: 1, kind: input, shape index: {}]   ;;  %s4721_s2 = inlined_call_operand.vmem [shape: f32[32,1], index: 2, kind: input, shape index: {}]   ;;  %s4722_s3 = inlined_call_operand.vmem [shape: f32[96,32], index: 3, kind: input, shape index: {}]   ;;  %s4723_s4 = inlined_call_operand.vmem [shape: f32[32,1], index: 4, kind: input, shape index: {}]   ;;  %s4724_s5 = inlined_call_operand.vmem [shape: f32[96,32], index: 5, kind: input, shape index: {}]   ;;  %s4725_s6 = inlined_call_operand.vmem [shape: f32[32,1], index: 6, kind: input, shape index: {}]   ;;  %s4726_s7 = inlined_call_operand.vmem [shape: f32[4,32], index: 7, kind: input, shape index: {}]   ;;  %s4727_s8 = inlined_call_operand.vmem [shape: f32[4,1], index: 8, kind: input, shape index: {}]   ;;  %s4728_s9 = inlined_call_operand.hbm [shape: f32[4,4,128], index: 9, kind: output, shape index: {0}]   ;;  %s4729_s10 = inlined_call_operand.hbm [shape: f32[2,2,3], index: 10, kind: output, shape index: {1}]   ;;  %s4730_s11 = inlined_call_operand.hbm [shape: f32[2,2,3], index: 11, kind: output, shape index: {2}]  }
   0x1   :  { %4748 = sst [smem:[#allocation23_spill]] %s4719_s0 }
   0x2   :  { %17 = vsyncpa [#allocation3], 0 }
   0x3   :  { %19 = vsyncpa [#allocation3 + $0x1], 0 }
   0x4   :  { %20 = vsyncpa [#allocation5], 0 }
   0x5   :  { %22 = vsyncpa [#allocation5 + $0x1], 0  ;;  %s3242_s17 = smov 0   ;;  %s3244_s18 = smov 0  }
   0x6   :  { %s3246_s19 = smov 0   ;;  %s3248_s20 = smov 0  }
   0x7 LB: > { %4749 = sst [smem:[#allocation9_spill]] %s3166_s19  ;;  %s3263_s21 = sadd.s32 4294967295, %s3170_s20   ;;  %s3170_s20 = sphi %s3248_s20, %s4779_s20   ;;  %s3166_s19 = sphi %s3246_s19, %s4781_s19   ;;  %s3162_s18 = sphi %s3244_s18, %s4783_s18   ;;  %s3158_s17 = sphi %s3242_s17, %s4782_s17  }
   0x8   : > { %s4731_s22 = sadd.s32 4294967294, %s3170_s20   ;;  %s3267_s23 = sadd.s32 1, %s3170_s20  }
   0x9   : > { %4750 = sst [smem:[#allocation10_spill]] %s3267_s23  ;;  %s229_s24 = sadd.s32 1, %s3166_s19 }
   0xa   : > { %s226_s25 = ssub.s32 %s3170_s20, %s3267_s23  ;;  %p239_p0 = scmp.ne.s32.totalorder %s3166_s19, %s3162_s18 }
   0xb   : > { %p227_p1 = scmp.eq.s32.totalorder %s226_s25, 0  ;;  %p240_p2 = scmp.eq.s32.totalorder %s3263_s21, 1 }
   0xc   : > { %p245_p3 = scmp.ne.s32.totalorder %s3162_s18, %s3158_s17  ;;  %p246_p4 = scmp.eq.s32.totalorder %s4731_s22, 1 }
   0xd   : > { %s3280_s26 = scalar_select %p227_p1, %s3166_s19, %s229_s24  }
   0xe   : > { %p3282_p5 = por %p240_p2, %p239_p0  ;;  %p3286_p6 = por %p246_p4, %p245_p3 }
   0xf   : > { %4751 = sst [smem:[#allocation11_spill]] %s3280_s26  ;;  %p2797_p7 = scmp.ge.s32.totalorder %s3170_s20, 1 }
  0x10   : > { %p349_p8 = scmp.lt.s32.totalorder %s3170_s20, 3 }
  0x12   : > { %p350_p9 = pnand %p2797_p7, %p349_p8 }
  0x14   : > { %353 = sbr.rel (%p350_p9) target bundleno = 3416 (0xd58), region = 56 }
  0x1b   : > { %s2801_s29 = sshll.u32 %s3263_s21, 1  ;;  %v4735_v0 = vmov 0.0   ;;  %v410_v1 = vld [vmem:[%s4721_s2] sm:$0xff]  ;;  %v412_v2 = vld [vmem:[%s4721_s2 + $0x10] sm:$0xff]  ;;  %v3173_v3 = vmov 0   ;;  %v411_v4 = vld [vmem:[%s4721_s2 + $0x8] sm:$0xff] }
  0x1c   : > { %p400_p10 = scmp.lt.s32.totalorder %s2801_s29, 3  ;;  %548 = vmatprep.mubr.f32.mxu0 %v4735_v0  ;;  %560 = vmatprep.mubr.f32.mxu1 %v4735_v0  ;;  %v413_v5 = vld [vmem:[%s4721_s2 + $0x18] sm:$0xff]  ;;  %s4754_s0 = sld [smem:[#allocation23_spill]]  ;;  %v406_v6 = vld [vmem:[%s4720_s1] sm:$0xff]  ;;  %vm471_vm0 = vcmask 64512   ;;  %v408_v9 = vld [vmem:[%s4720_s1 + $0x10] sm:$0xff] }
  0x1d   : > { %3010 = vset.pattern.permute.xlu0 %v3173_v3  ;;  %3011 = vset.pattern.permute.xlu1 %v3173_v3  ;;  %v426_v10 = vld [vmem:[%s4723_s4] sm:$0xff]  ;;  %v427_v11 = vld [vmem:[%s4723_s4 + $0x8] sm:$0xff]  ;;  %v409_v13 = vld [vmem:[%s4720_s1 + $0x18] sm:$0xff]  ;;  %vm620_vm1 = vcmask 261120   ;;  %s3174_s12 = smov 1   ;;  %vm3176_vm4 = vmmov 1  }
  0x1e   : > { %s4785_s29 = smov (!%p400_p10, %s2801_s29), 3  ;;  %453 = vperm.xlu0 %3010, %v410_v1   ;;  %463 = vperm.xlu1 %3011, %v412_v2   ;;  %v407_v12 = vld [vmem:[%s4720_s1 + $0x8] sm:$0xff]  ;;  %v428_v14 = vld [vmem:[%s4723_s4 + $0x10] sm:$0xff]  ;;  %v429_v15 = vld [vmem:[%s4723_s4 + $0x18] sm:$0xff]  ;;  %s4570_s15 = sand.u32 1, %s3162_s18  }
  0x1f   : > { %s2802_s30 = sshll.u32 %s4785_s29, 3  ;;  %v3369_v40 = vld [vmem:[%s4722_s3] sm:$0xff]  ;;  %v3377_v41 = vld [vmem:[%s4722_s3 + $0x8] sm:$0xff]  ;;  %v3385_v42 = vld [vmem:[%s4722_s3 + $0x10] sm:$0xff]  ;;  %s2799_s26 = sshll.u32 %s4570_s15, 1 }
  0x20   : > { %v3393_v43 = vld [vmem:[%s4722_s3 + $0x18] sm:$0xff]  ;;  %v3401_v44 = vld [vmem:[%s4722_s3 + $0x20] sm:$0xff]  ;;  %v3409_v45 = vld [vmem:[%s4722_s3 + $0x28] sm:$0xff]  ;;  %s4584_s19 = scalar_lea.vmem [#allocation4], %s2799_s26  ;;  %s4603_s23 = scalar_lea.vmem [#allocation6], %s2799_s26 }
  0x21   : > { %v3417_v46 = vld [vmem:[%s4722_s3 + $0x30] sm:$0xff]  ;;  %v3425_v47 = vld [vmem:[%s4722_s3 + $0x38] sm:$0xff]  ;;  %v3433_v48 = vld [vmem:[%s4722_s3 + $0x40] sm:$0xff]  ;;  %s2626_s25 = sand.u32 1, %s3263_s21   ;;  %s3177_s16 = smov [#allocation4]  }
  0x22   : > { %s403_s13 = scalar_lea.vmem %s4754_s0, %s2802_s30  ;;  %458 = vperm.xlu0 %3010, %v411_v4   ;;  %468 = vperm.xlu1 %3011, %v413_v5   ;;  %v3441_v49 = vld [vmem:[%s4722_s3 + $0x48] sm:$0xff]  ;;  %v3449_v50 = vld [vmem:[%s4722_s3 + $0x50] sm:$0xff]  ;;  %v3457_v51 = vld [vmem:[%s4722_s3 + $0x58] sm:$0xff]  ;;  %s2891_s30 = sshll.u32 %s3263_s21, 5 }
  0x23   : > { %v2803_v7 = vld [vmem:[%s403_s13 + $0x8] sm:$0xff]  ;;  %v448_v8 = vld [vmem:[%s403_s13] sm:$0xff]  ;;  %s3175_s13 = smov 127   ;;  %s4618_s22 = scalar_lea.hbm %s4729_s10, %s2891_s30 }
  0x24   : > { %484 = vmatprep.subr.mxu0 %v2803_v7  ;;  %2952 = vmatprep.subr.mxu1 %v2803_v7  ;;  %s3052_s24 = sshll.u32 %s3177_s16, 4  ;;  %s3053_s24 = int_to_ptr.vmem [resolvable:$false] %s3052_s24 }
  0x25   : > { %485 = vmatpush1.msra.mxu0 %v448_v8  ;;  %2953 = vmatpush1.msra.mxu1 %v448_v8  ;;  %s3054_s0 = scalar_lea.vmem %s3053_s24, 64 }
  0x26   : > { %2804 = vmatmul.mubr.msk.f32.vlgmr.msra.gmra.mrb[0].mxu0 %vm471_vm0, %v406_v6  ;;  %2806 = vmatmul.mubr.msk.f32.vlgmr.msra.gmra.mrb[0].mxu1 %vm471_vm0, %v408_v9 }
  0x27   : > { %554 = vmatprep.mubr.f32.mxu0 %v4735_v0  ;;  %566 = vmatprep.mubr.f32.mxu1 %v4735_v0 }
  0x28   : > { %878 = vperm.xlu0 %3010, %v426_v10   ;;  %883 = vperm.xlu1 %3011, %v427_v11  }
  0x2a   : > { %2805 = vmatmul.mubr.msk.f32.gmra.mrb[2].mxu0 %vm471_vm0, %v407_v12  ;;  %2807 = vmatmul.mubr.msk.f32.gmra.mrb[2].mxu1 %vm471_vm0, %v409_v13  ;;  %v442_v13 = vld [vmem:[%s4725_s6] sm:$0xff] }
  0x2b   : > { %721 = vmatprep.mubr.f32.mxu1 %v4735_v0  ;;  %1028 = vmatprep.mubr.f32.mxu0 %v4735_v0 }
  0x2c   : > { %888 = vperm.xlu0 %3010, %v428_v14   ;;  %893 = vperm.xlu1 %3011, %v429_v15   ;;  %v444_v14 = vld [vmem:[%s4725_s6 + $0x10] sm:$0xff]  ;;  %v443_v15 = vld [vmem:[%s4725_s6 + $0x8] sm:$0xff] }
  0x9d   : > { %v454_v16 = vpop.permute.xlu0 %453  ;;  %v464_v17 = vpop.permute.xlu1 %463 }
  0xa1   : > { %v459_v22 = vpop.permute.xlu0 %458  ;;  %v469_v23 = vpop.permute.xlu1 %468 }
  0xf9   : > { %v550_v18 = vpop.f32.mrb[0].mxu0  ;;  %v562_v19 = vpop.f32.mrb[0].mxu1 }
  0xfa   : > { %v552_v20 = vpop.f32.mrb[1].mxu0  ;;  %v564_v21 = vpop.f32.mrb[1].mxu1  ;;  %v3352_v33 = vadd.f32 %v550_v18, %v454_v16  ;;  %v3356_v35 = vadd.f32 %v562_v19, %v464_v17 }
  0xfb   : > { %v3344_v29 = vadd.f32 %v552_v20, %v454_v16  ;;  %v3346_v30 = vadd.f32 %v564_v21, %v464_v17  ;;  %v445_v16 = vld [vmem:[%s4725_s6 + $0x18] sm:$0xff]  ;;  %v3506_v17 = vpop.permute.xlu0 %878  ;;  %v3508_v18 = vpop.permute.xlu1 %883 }
  0xfd   : > { %v556_v24 = vpop.f32.mrb[2].mxu0  ;;  %v568_v25 = vpop.f32.mrb[2].mxu1 }
  0xfe   : > { %v3342_v26 = vadd.f32 %v556_v24, %v459_v22  ;;  %v558_v27 = vpop.f32.mrb[3].mxu0  ;;  %v570_v28 = vpop.f32.mrb[3].mxu1  ;;  %v3360_v37 = vadd.f32 %v568_v25, %v469_v23 }
  0xff   : > { %v3348_v31 = vadd.f32 %v558_v27, %v459_v22  ;;  %v3350_v32 = vadd.f32 %v570_v28, %v469_v23  ;;  %v3510_v19 = vpop.permute.xlu0 %888  ;;  %v3512_v20 = vpop.permute.xlu1 %893  ;;  %v573_v22 = vlaneseq }
 0x100   : > { %v2898_v36 = vpack.c.bf16 %v3342_v26, %v3352_v33  ;;  %v2902_v39 = vpack.c.bf16 %v3360_v37, %v3356_v35 }
 0x101   : > { %v2896_v34 = vpack.c.bf16 %v3348_v31, %v3344_v29  ;;  %v2900_v38 = vpack.c.bf16 %v3350_v32, %v3346_v30  ;;  %v3514_v24 = vand.u32 127, %v573_v22 }
 0x103   : > { %2897 = vmatprep.subr.bf16.mxu1 %v2896_v34  ;;  %v575_v27 = vadd.s32 128, %v3514_v24  ;;  %vm576_vm2 = vcmp.eq.s32.totalorder %v3514_v24, 0  ;;  %vm810_vm7 = vcmp.lt.s32.totalorder %v3514_v24, 1  ;;  %vm578_vm8 = vcmp.eq.s32.totalorder %v3514_v24, 127 }
 0x104   : > { %2899 = vmatpush1.bf16.msra.mxu1 %v2898_v36  ;;  %vm588_vm5 = vmxor %vm576_vm2, %vm3176_vm4  ;;  %vm851_vm12 = vcmp.lt.s32.totalorder %v3514_v24, 127 }
 0x105   : > { %2901 = vmatprep.subr.bf16.mxu1 %v2900_v38  ;;  %vm581_vm3 = vcmp.eq.s32.totalorder %v575_v27, 128  ;;  %v3522_v38 = vsel %vm588_vm5, 1.0, %v4735_v0  ;;  %vm585_vm9 = vcmp.eq.s32.totalorder %v575_v27, 255  ;;  %vm594_vm10 = vmxor %vm578_vm8, %vm3176_vm4 }
 0x106   : > { %vm589_vm6 = vmxor %vm581_vm3, %vm3176_vm4 }
 0x107   : > { %vm595_vm11 = vmxor %vm585_vm9, %vm3176_vm4 }
 0x108   : > { %2903 = vmatpush1.bf16.msra.mxu1 %v2902_v39 }
 0x10b   : > { %2812 = vmatmul.mubr.msk.f32.vlgmr.msra.gmra.mrb[4].mxu1 %vm620_vm1, %v3369_v40 }
 0x10c   : > { %727 = vmatprep.mubr.f32.mxu1 %v4735_v0 }
 0x10f   : > { %2813 = vmatmul.mubr.msk.f32.gmra.mrb[6].mxu1 %vm620_vm1, %v3377_v41 }
 0x110   : > { %733 = vmatprep.mubr.f32.mxu1 %v4735_v0 }
 0x113   : > { %2814 = vmatmul.mubr.msk.f32.gmra.mrb[8].mxu1 %vm620_vm1, %v3385_v42 }
 0x114   : > { %739 = vmatprep.mubr.f32.mxu1 %v4735_v0 }
 0x117   : > { %2815 = vmatmul.mubr.msk.f32.gmra.mrb[10].mxu1 %vm620_vm1, %v3393_v43 }
 0x118   : > { %745 = vmatprep.mubr.f32.mxu1 %v4735_v0 }
 0x11b   : > { %2816 = vmatmul.mubr.msk.f32.gmra.mrb[12].mxu1 %vm620_vm1, %v3401_v44 }
 0x11c   : > { %751 = vmatprep.mubr.f32.mxu1 %v4735_v0 }
 0x11f   : > { %2817 = vmatmul.mubr.msk.f32.gmra.mrb[14].mxu1 %vm620_vm1, %v3409_v45 }
 0x120   : > { %757 = vmatprep.mubr.f32.mxu1 %v4735_v0 }
 0x123   : > { %2818 = vmatmul.mubr.msk.f32.gmra.mrb[16].mxu1 %vm620_vm1, %v3417_v46 }
 0x124   : > { %763 = vmatprep.mubr.f32.mxu1 %v4735_v0 }
 0x127   : > { %2819 = vmatmul.mubr.msk.f32.gmra.mrb[18].mxu1 %vm620_vm1, %v3425_v47 }
 0x128   : > { %769 = vmatprep.mubr.f32.mxu1 %v4735_v0 }
 0x12b   : > { %2820 = vmatmul.mubr.msk.f32.gmra.mrb[20].mxu1 %vm620_vm1, %v3433_v48 }
 0x12c   : > { %775 = vmatprep.mubr.f32.mxu1 %v4735_v0 }
 0x12f   : > { %2821 = vmatmul.mubr.msk.f32.gmra.mrb[22].mxu1 %vm620_vm1, %v3441_v49 }
 0x130   : > { %781 = vmatprep.mubr.f32.mxu1 %v4735_v0 }
 0x133   : > { %2822 = vmatmul.mubr.msk.f32.gmra.mrb[24].mxu1 %vm620_vm1, %v3449_v50 }
 0x134   : > { %787 = vmatprep.mubr.f32.mxu1 %v4735_v0 }
 0x137   : > { %2823 = vmatmul.mubr.msk.f32.gmra.mrb[26].mxu1 %vm620_vm1, %v3457_v51 }
 0x138   : > { %1393 = vmatprep.mubr.f32.mxu1 %v4735_v0 }
 0x1de   : > { %v723_v52 = vpop.f32.mrb[4].mxu1 }
 0x1df   : > { %794 = vrot.lane.b32.xlu0 %v723_v52, %s3174_s12  ;;  %v725_v53 = vpop.f32.mrb[5].mxu1  ;;  %v3526_v52 = vsel %vm589_vm6, 1.0, %v4735_v0 }
 0x1e2   : > { %v729_v54 = vpop.f32.mrb[6].mxu1 }
 0x1e3   : > { %802 = vrot.lane.b32.xlu0 %v725_v53, %s3174_s12  ;;  %796 = vrot.lane.b32.xlu1 %v729_v54, %s3174_s12  ;;  %v731_v55 = vpop.f32.mrb[7].mxu1 }
 0x1e6   : > { %v735_v56 = vpop.f32.mrb[8].mxu1 }
 0x1e7   : > { %804 = vrot.lane.b32.xlu1 %v731_v55, %s3174_s12  ;;  %798 = vrot.lane.b32.xlu0 %v735_v56, %s3174_s12  ;;  %v737_v57 = vpop.f32.mrb[9].mxu1 }
 0x1ea   : > { %v741_v58 = vpop.f32.mrb[10].mxu1 }
 0x1eb   : > { %806 = vrot.lane.b32.xlu0 %v737_v57, %s3174_s12  ;;  %800 = vrot.lane.b32.xlu1 %v741_v58, %s3174_s12  ;;  %v743_v59 = vpop.f32.mrb[11].mxu1 }
 0x1ee   : > { %v3469_v60 = vpop.f32.mrb[12].mxu1 }
 0x1ef   : > { %808 = vrot.lane.b32.xlu1 %v743_v59, %s3174_s12  ;;  %v3472_v61 = vpop.f32.mrb[13].mxu1 }
 0x1f2   : > { %v3474_v62 = vpop.f32.mrb[14].mxu1 }
 0x1f3   : > { %v3476_v63 = vpop.f32.mrb[15].mxu1 }
 0x1f6   : > { %v3478_v1 = vpop.f32.mrb[16].mxu1 }
 0x1f7   : > { %v3480_v2 = vpop.f32.mrb[17].mxu1 }
 0x1fa   : > { %v3482_v3 = vpop.f32.mrb[18].mxu1 }
 0x1fb   : > { %v3484_v4 = vpop.f32.mrb[19].mxu1 }
 0x1fe   : > { %v771_v5 = vpop.f32.mrb[20].mxu1 }
 0x1ff   : > { %835 = vrot.lane.b32.xlu0 %v771_v5, %s3175_s13  ;;  %v773_v6 = vpop.f32.mrb[21].mxu1 }
 0x202   : > { %v777_v7 = vpop.f32.mrb[22].mxu1 }
 0x203   : > { %843 = vrot.lane.b32.xlu0 %v773_v6, %s3175_s13  ;;  %837 = vrot.lane.b32.xlu1 %v777_v7, %s3175_s13  ;;  %v779_v8 = vpop.f32.mrb[23].mxu1  ;;  %v3542_v6 = vsel %vm594_vm10, 1.0, %v4735_v0  ;;  %v3545_v7 = vsel %vm595_vm11, 1.0, %v4735_v0 }
 0x206   : > { %v783_v9 = vpop.f32.mrb[24].mxu1 }
 0x207   : > { %845 = vrot.lane.b32.xlu1 %v779_v8, %s3175_s13  ;;  %839 = vrot.lane.b32.xlu0 %v783_v9, %s3175_s13  ;;  %v785_v10 = vpop.f32.mrb[25].mxu1 }
 0x20a   : > { %v789_v11 = vpop.f32.mrb[26].mxu1 }
 0x20b   : > { %847 = vrot.lane.b32.xlu0 %v785_v10, %s3175_s13  ;;  %841 = vrot.lane.b32.xlu1 %v789_v11, %s3175_s13  ;;  %v791_v12 = vpop.f32.mrb[27].mxu1 }
 0x20f   : > { %1183 = vperm.xlu0 %3010, %v442_v13   ;;  %849 = vrot.lane.b32.xlu1 %v791_v12, %s3175_s13 }
 0x213   : > { %1193 = vperm.xlu0 %3010, %v444_v14   ;;  %1188 = vperm.xlu1 %3011, %v443_v15  }
 0x217   : > { %1198 = vperm.xlu1 %3011, %v445_v16  }
 0x251   : > { %v795_v21 = vpop.permute.xlu0 %794 }
 0x255   : > { %v797_v23 = vpop.permute.xlu1 %796  ;;  %v803_v25 = vpop.permute.xlu0 %802 }
 0x256   : > { %v811_v53 = vsel %vm810_vm7, %v795_v21, %v803_v25  ;;  %v815_v54 = vsel %vm810_vm7, %v803_v25, %v795_v21 }
 0x257   : > { %v819_v55 = vmul.f32 %v3522_v38, %v815_v54  ;;  %v820_v56 = vmul.f32 %v3526_v52, %v811_v53 }
 0x259   : > { %v805_v28 = vpop.permute.xlu1 %804  ;;  %v799_v34 = vpop.permute.xlu0 %798  ;;  %v827_v8 = vadd.f32 %v819_v55, %v3469_v60  ;;  %v828_v9 = vadd.f32 %v820_v56, %v3472_v61 }
 0x25a   : > { %v812_v59 = vsel %vm810_vm7, %v797_v23, %v805_v28  ;;  %v816_v5 = vsel %vm810_vm7, %v805_v28, %v797_v23 }
 0x25b   : > { %v821_v10 = vmul.f32 %v3522_v38, %v816_v5  ;;  %v822_v11 = vmul.f32 %v3526_v52, %v812_v59 }
 0x25d   : > { %v801_v36 = vpop.permute.xlu1 %800  ;;  %v807_v39 = vpop.permute.xlu0 %806 }
 0x25e   : > { %v813_v14 = vsel %vm810_vm7, %v799_v34, %v807_v39  ;;  %v817_v15 = vsel %vm810_vm7, %v807_v39, %v799_v34 }
 0x25f   : > { %v823_v25 = vmul.f32 %v3522_v38, %v817_v15  ;;  %v824_v27 = vmul.f32 %v3526_v52, %v813_v14 }
 0x261   : > { %v809_v57 = vpop.permute.xlu1 %808  ;;  %v832_v14 = vadd.f32 %v824_v27, %v3480_v2 }
 0x262   : > { %v814_v61 = vsel %vm810_vm7, %v801_v36, %v809_v57  ;;  %v818_v21 = vsel %vm810_vm7, %v809_v57, %v801_v36  ;;  %v829_v57 = vadd.f32 %v821_v10, %v3474_v62 }
 0x263   : > { %v825_v54 = vmul.f32 %v3522_v38, %v818_v21  ;;  %v826_v55 = vmul.f32 %v3526_v52, %v814_v61 }
 0x265   : > { %v833_v62 = vadd.f32 %v825_v54, %v3482_v3 }
 0x271   : > { %v836_v58 = vpop.permute.xlu0 %835 }
 0x275   : > { %v844_v12 = vpop.permute.xlu0 %843  ;;  %v838_v13 = vpop.permute.xlu1 %837 }
 0x276   : > { %v852_v16 = vsel %vm851_vm12, %v836_v58, %v844_v12  ;;  %v856_v60 = vsel %vm851_vm12, %v844_v12, %v836_v58  ;;  %v830_v58 = vadd.f32 %v822_v11, %v3476_v63  ;;  %v831_v12 = vadd.f32 %v823_v25, %v3478_v1 }
 0x277   : > { %v860_v22 = vmul.f32 %v3542_v6, %v852_v16  ;;  %v861_v23 = vmul.f32 %v3545_v7, %v856_v60  ;;  %v834_v63 = vadd.f32 %v826_v55, %v3484_v4 }
 0x279   : > { %v868_v28 = vadd.f32 %v860_v22, %v827_v8  ;;  %v869_v34 = vadd.f32 %v861_v23, %v828_v9  ;;  %v846_v39 = vpop.permute.xlu1 %845  ;;  %v840_v53 = vpop.permute.xlu0 %839 }
 0x27a   : > { %v853_v56 = vsel %vm851_vm12, %v838_v13, %v846_v39  ;;  %v857_v36 = vsel %vm851_vm12, %v846_v39, %v838_v13 }
 0x27b   : > { %v862_v59 = vmul.f32 %v3542_v6, %v853_v56  ;;  %v863_v5 = vmul.f32 %v3545_v7, %v857_v36  ;;  %v896_v8 = vadd.f32 %v3506_v17, %v868_v28  ;;  %v897_v9 = vadd.f32 %v3506_v17, %v869_v34 }
 0x27d   : > { %v870_v15 = vadd.f32 %v862_v59, %v829_v57  ;;  %v871_v16 = vadd.f32 %v863_v5, %v830_v58  ;;  %v848_v60 = vpop.permute.xlu0 %847  ;;  %v842_v13 = vpop.permute.xlu1 %841  ;;  %vm905_vm13 = vcmp.ge.f32.partialorder %v897_v9, 0.0  ;;  %v913_v22 = vmul.f32 0.01, %v897_v9 }
 0x27e   : > { %v854_v10 = vsel %vm851_vm12, %v840_v53, %v848_v60  ;;  %v858_v11 = vsel %vm851_vm12, %v848_v60, %v840_v53  ;;  %vm904_vm14 = vcmp.ge.f32.partialorder %v896_v8, 0.0  ;;  %v912_v3 = vmul.f32 0.01, %v896_v8 }
 0x27f   : > { %v898_v61 = vadd.f32 %v3508_v18, %v870_v15  ;;  %v899_v1 = vadd.f32 %v3508_v18, %v871_v16  ;;  %v864_v2 = vmul.f32 %v3542_v6, %v854_v10  ;;  %v865_v21 = vmul.f32 %v3545_v7, %v858_v11 }
 0x280   : > { %v921_v36 = vsel %vm905_vm13, %v897_v9, %v913_v22  ;;  %v920_v58 = vsel %vm904_vm14, %v896_v8, %v912_v3  ;;  %v3614_v22 = vld [vmem:[%s4724_s5 + $0x8] sm:$0xff]  ;;  %v3622_v3 = vld [vmem:[%s4724_s5 + $0x10] sm:$0xff] }
 0x281   : > { %v872_v23 = vadd.f32 %v864_v2, %v831_v12  ;;  %v873_v4 = vadd.f32 %v865_v21, %v832_v14  ;;  %v850_v25 = vpop.permute.xlu1 %849  ;;  %vm907_vm15 = vcmp.ge.f32.partialorder %v899_v1, 0.0  ;;  %v915_v27 = vmul.f32 0.01, %v899_v1  ;;  %v3606_v21 = vld [vmem:[%s4724_s5] sm:$0xff]  ;;  %4755 = vst [vmem:[#allocation12_spill] sm:$0xff] %v3614_v22  ;;  %4756 = vst [vmem:[#allocation13_spill] sm:$0xff] %v3622_v3 }
 0x282   : > { %v855_v28 = vsel %vm851_vm12, %v842_v13, %v850_v25  ;;  %v859_v34 = vsel %vm851_vm12, %v850_v25, %v842_v13  ;;  %vm906_vm0 = vcmp.ge.f32.partialorder %v898_v61, 0.0  ;;  %v914_v39 = vmul.f32 0.01, %v898_v61  ;;  %v3646_v25 = vld [vmem:[%s4724_s5 + $0x28] sm:$0xff] }
 0x283   : > { %v900_v53 = vadd.f32 %v3510_v19, %v872_v23  ;;  %v901_v54 = vadd.f32 %v3510_v19, %v873_v4  ;;  %v866_v55 = vmul.f32 %v3542_v6, %v855_v28  ;;  %v867_v56 = vmul.f32 %v3545_v7, %v859_v34  ;;  %v3630_v23 = vld [vmem:[%s4724_s5 + $0x18] sm:$0xff]  ;;  %v3638_v4 = vld [vmem:[%s4724_s5 + $0x20] sm:$0xff]  ;;  %4759 = vst [vmem:[#allocation16_spill] sm:$0xff] %v3646_v25 }
 0x284   : > { %v923_v57 = vsel %vm907_vm15, %v899_v1, %v915_v27  ;;  %v922_v59 = vsel %vm906_vm0, %v898_v61, %v914_v39  ;;  %4757 = vst [vmem:[#allocation14_spill] sm:$0xff] %v3630_v23  ;;  %4758 = vst [vmem:[#allocation15_spill] sm:$0xff] %v3638_v4  ;;  %v3654_v27 = vld [vmem:[%s4724_s5 + $0x30] sm:$0xff]  ;;  %v3662_v28 = vld [vmem:[%s4724_s5 + $0x38] sm:$0xff] }
 0x285   : > { %v874_v5 = vadd.f32 %v866_v55, %v833_v62  ;;  %v875_v12 = vadd.f32 %v867_v56, %v834_v63  ;;  %v2904_v14 = vpack.c.bf16 %v923_v57, %v921_v36  ;;  %v2906_v15 = vpack.c.bf16 %v922_v59, %v920_v58  ;;  %4760 = vst [vmem:[#allocation17_spill] sm:$0xff] %v3654_v27  ;;  %v3670_v34 = vld [vmem:[%s4724_s5 + $0x40] sm:$0xff]  ;;  %v3678_v39 = vld [vmem:[%s4724_s5 + $0x48] sm:$0xff] }
 0x286   : > { %v917_v13 = vmul.f32 0.01, %v901_v54  ;;  %v916_v10 = vmul.f32 0.01, %v900_v53  ;;  %vm909_vm2 = vcmp.ge.f32.partialorder %v901_v54, 0.0  ;;  %vm908_vm3 = vcmp.ge.f32.partialorder %v900_v53, 0.0 }
 0x287   : > { %v902_v16 = vadd.f32 %v3512_v20, %v874_v5  ;;  %v903_v60 = vadd.f32 %v3512_v20, %v875_v12  ;;  %2905 = vmatprep.subr.bf16.mxu0 %v2904_v14  ;;  %4761 = vst [vmem:[#allocation18_spill] sm:$0xff] %v3662_v28  ;;  %4762 = vst [vmem:[#allocation19_spill] sm:$0xff] %v3670_v34 }
 0x288   : > { %2907 = vmatpush1.bf16.msra.mxu0 %v2906_v15  ;;  %v925_v8 = vsel %vm909_vm2, %v901_v54, %v917_v13  ;;  %v924_v62 = vsel %vm908_vm3, %v900_v53, %v916_v10  ;;  %4763 = vst [vmem:[#allocation20_spill] sm:$0xff] %v3678_v39  ;;  %v3686_v53 = vld [vmem:[%s4724_s5 + $0x50] sm:$0xff]  ;;  %v3694_v54 = vld [vmem:[%s4724_s5 + $0x58] sm:$0xff] }
 0x289   : > { %v918_v11 = vmul.f32 0.01, %v902_v16  ;;  %vm911_vm4 = vcmp.ge.f32.partialorder %v903_v60, 0.0  ;;  %v919_v9 = vmul.f32 0.01, %v903_v60  ;;  %vm910_vm5 = vcmp.ge.f32.partialorder %v902_v16, 0.0 }
 0x28a   : > { %4764 = vst [vmem:[#allocation21_spill] sm:$0xff] %v3686_v53  ;;  %4765 = vst [vmem:[#allocation22_spill] sm:$0xff] %v3694_v54 }
 0x28b   : > { %v927_v61 = vsel %vm911_vm4, %v903_v60, %v919_v9  ;;  %v926_v63 = vsel %vm910_vm5, %v902_v16, %v918_v11  ;;  %vm2599_vm5 = vcmask 7168  }
 0x28c   : > { %v2908_v1 = vpack.c.bf16 %v927_v61, %v925_v8  ;;  %v2910_v2 = vpack.c.bf16 %v926_v63, %v924_v62 }
 0x28e   : > { %2909 = vmatprep.subr.bf16.mxu0 %v2908_v1 }
 0x28f   : > { %2911 = vmatpush1.bf16.msra.mxu0 %v2910_v2 }
 0x292   : > { %2824 = vmatmul.mubr.msk.f32.vlgmr.msra.gmra.mrb[4].mxu0 %vm620_vm1, %v3606_v21 }
 0x293   : > { %1034 = vmatprep.mubr.f32.mxu0 %v4735_v0 }
 0x296   : > { %2825 = vmatmul.mubr.msk.f32.gmra.mrb[6].mxu0 %vm620_vm1, %v3614_v22 }
 0x297   : > { %1040 = vmatprep.mubr.f32.mxu0 %v4735_v0 }
 0x29a   : > { %2826 = vmatmul.mubr.msk.f32.gmra.mrb[8].mxu0 %vm620_vm1, %v3622_v3 }
 0x29b   : > { %1046 = vmatprep.mubr.f32.mxu0 %v4735_v0 }
 0x29e   : > { %2827 = vmatmul.mubr.msk.f32.gmra.mrb[10].mxu0 %vm620_vm1, %v3630_v23 }
 0x29f   : > { %1052 = vmatprep.mubr.f32.mxu0 %v4735_v0 }
 0x2a2   : > { %2828 = vmatmul.mubr.msk.f32.gmra.mrb[12].mxu0 %vm620_vm1, %v3638_v4 }
 0x2a3   : > { %1058 = vmatprep.mubr.f32.mxu0 %v4735_v0 }
 0x2a6   : > { %2829 = vmatmul.mubr.msk.f32.gmra.mrb[14].mxu0 %vm620_vm1, %v3646_v25 }
 0x2a7   : > { %1064 = vmatprep.mubr.f32.mxu0 %v4735_v0 }
 0x2aa   : > { %2830 = vmatmul.mubr.msk.f32.gmra.mrb[16].mxu0 %vm620_vm1, %v3654_v27 }
 0x2ab   : > { %1070 = vmatprep.mubr.f32.mxu0 %v4735_v0 }
 0x2ae   : > { %2831 = vmatmul.mubr.msk.f32.gmra.mrb[18].mxu0 %vm620_vm1, %v3662_v28 }
 0x2af   : > { %1076 = vmatprep.mubr.f32.mxu0 %v4735_v0 }
 0x2b2   : > { %2832 = vmatmul.mubr.msk.f32.gmra.mrb[20].mxu0 %vm620_vm1, %v3670_v34 }
 0x2b3   : > { %1082 = vmatprep.mubr.f32.mxu0 %v4735_v0 }
 0x2b6   : > { %2833 = vmatmul.mubr.msk.f32.gmra.mrb[22].mxu0 %vm620_vm1, %v3678_v39 }
 0x2b7   : > { %1088 = vmatprep.mubr.f32.mxu0 %v4735_v0 }
 0x2ba   : > { %2834 = vmatmul.mubr.msk.f32.gmra.mrb[24].mxu0 %vm620_vm1, %v3686_v53 }
 0x2bb   : > { %1094 = vmatprep.mubr.f32.mxu0 %v4735_v0 }
 0x2be   : > { %2835 = vmatmul.mubr.msk.f32.gmra.mrb[26].mxu0 %vm620_vm1, %v3694_v54 }
 0x2bf   : > { %1642 = vmatprep.mubr.f32.mxu0 %v4735_v0 }
 0x365   : > { %v1030_v55 = vpop.f32.mrb[4].mxu0 }
 0x366   : > { %1101 = vrot.lane.b32.xlu0 %v1030_v55, %s3174_s12  ;;  %v1032_v56 = vpop.f32.mrb[5].mxu0 }
 0x369   : > { %v1036_v36 = vpop.f32.mrb[6].mxu0 }
 0x36a   : > { %1109 = vrot.lane.b32.xlu0 %v1032_v56, %s3174_s12  ;;  %1103 = vrot.lane.b32.xlu1 %v1036_v36, %s3174_s12  ;;  %v1038_v57 = vpop.f32.mrb[7].mxu0  ;;  %v3723_v36 = vpop.permute.xlu0 %1183 }
 0x36d   : > { %v1042_v58 = vpop.f32.mrb[8].mxu0 }
 0x36e   : > { %1111 = vrot.lane.b32.xlu1 %v1038_v57, %s3174_s12  ;;  %1105 = vrot.lane.b32.xlu0 %v1042_v58, %s3174_s12  ;;  %v1044_v59 = vpop.f32.mrb[9].mxu0  ;;  %v3725_v57 = vpop.permute.xlu1 %1188 }
 0x36f   : > { %v3727_v58 = vpop.permute.xlu0 %1193 }
 0x371   : > { %v1048_v5 = vpop.f32.mrb[10].mxu0 }
 0x372   : > { %1113 = vrot.lane.b32.xlu1 %v1044_v59, %s3174_s12  ;;  %v1050_v12 = vpop.f32.mrb[11].mxu0  ;;  %v3729_v59 = vpop.permute.xlu1 %1198 }
 0x373   : > { %1115 = vrot.lane.b32.xlu0 %v1050_v12, %s3174_s12 }
 0x375   : > { %v1054_v14 = vpop.f32.mrb[12].mxu0 }
 0x376   : > { %1107 = vrot.lane.b32.xlu1 %v1048_v5, %s3174_s12  ;;  %v1056_v15 = vpop.f32.mrb[13].mxu0 }
 0x379   : > { %v1060_v16 = vpop.f32.mrb[14].mxu0 }
 0x37a   : > { %v1062_v60 = vpop.f32.mrb[15].mxu0 }
 0x37d   : > { %v3707_v13 = vpop.f32.mrb[16].mxu0 }
 0x37e   : > { %v3709_v10 = vpop.f32.mrb[17].mxu0 }
 0x381   : > { %v3711_v11 = vpop.f32.mrb[18].mxu0 }
 0x382   : > { %v3713_v9 = vpop.f32.mrb[19].mxu0 }
 0x385   : > { %v1078_v8 = vpop.f32.mrb[20].mxu0 }
 0x386   : > { %1141 = vrot.lane.b32.xlu0 %v1078_v8, %s3175_s13  ;;  %v1080_v61 = vpop.f32.mrb[21].mxu0 }
 0x389   : > { %v1084_v62 = vpop.f32.mrb[22].mxu0 }
 0x38a   : > { %1149 = vrot.lane.b32.xlu0 %v1080_v61, %s3175_s13  ;;  %1143 = vrot.lane.b32.xlu1 %v1084_v62, %s3175_s13  ;;  %v1086_v63 = vpop.f32.mrb[23].mxu0 }
 0x38d   : > { %v1090_v1 = vpop.f32.mrb[24].mxu0 }
 0x38e   : > { %1151 = vrot.lane.b32.xlu1 %v1086_v63, %s3175_s13  ;;  %v1092_v2 = vpop.f32.mrb[25].mxu0 }
 0x38f   : > { %1153 = vrot.lane.b32.xlu0 %v1092_v2, %s3175_s13 }
 0x391   : > { %v1096_v55 = vpop.f32.mrb[26].mxu0 }
 0x392   : > { %1145 = vrot.lane.b32.xlu1 %v1090_v1, %s3175_s13  ;;  %v1098_v56 = vpop.f32.mrb[27].mxu0 }
 0x393   : > { %1147 = vrot.lane.b32.xlu0 %v1096_v55, %s3175_s13 }
 0x396   : > { %1155 = vrot.lane.b32.xlu1 %v1098_v56, %s3175_s13 }
 0x3d8   : > { %v1102_v5 = vpop.permute.xlu0 %1101 }
 0x3dc   : > { %v1104_v12 = vpop.permute.xlu1 %1103  ;;  %v1110_v8 = vpop.permute.xlu0 %1109 }
 0x3dd   : > { %v1117_v2 = vsel %vm810_vm7, %v1102_v5, %v1110_v8  ;;  %v1121_v55 = vsel %vm810_vm7, %v1110_v8, %v1102_v5 }
 0x3de   : > { %v1125_v54 = vmul.f32 %v3522_v38, %v1121_v55  ;;  %v1126_v53 = vmul.f32 %v3526_v52, %v1117_v2 }
 0x3e0   : > { %v1112_v61 = vpop.permute.xlu1 %1111  ;;  %v1106_v62 = vpop.permute.xlu0 %1105  ;;  %v1133_v25 = vadd.f32 %v1125_v54, %v1054_v14  ;;  %v1134_v4 = vadd.f32 %v1126_v53, %v1056_v15 }
 0x3e1   : > { %v1118_v39 = vsel %vm810_vm7, %v1104_v12, %v1112_v61  ;;  %v1122_v34 = vsel %vm810_vm7, %v1112_v61, %v1104_v12 }
 0x3e2   : > { %v1127_v8 = vmul.f32 %v3522_v38, %v1122_v34  ;;  %v1128_v2 = vmul.f32 %v3526_v52, %v1118_v39 }
 0x3e4   : > { %v1114_v63 = vpop.permute.xlu1 %1113  ;;  %v1135_v39 = vadd.f32 %v1127_v8, %v1060_v16 }
 0x3e5   : > { %v1116_v1 = vpop.permute.xlu0 %1115  ;;  %v1119_v12 = vsel %vm810_vm7, %v1106_v62, %v1114_v63  ;;  %v1123_v53 = vsel %vm810_vm7, %v1114_v63, %v1106_v62 }
 0x3e6   : > { %v1129_v22 = vmul.f32 %v3522_v38, %v1123_v53  ;;  %v1130_v62 = vmul.f32 %v3526_v52, %v1119_v12 }
 0x3e8   : > { %v1108_v56 = vpop.permute.xlu1 %1107 }
 0x3f8   : > { %v1142_v0 = vpop.permute.xlu0 %1141 }
 0x3fc   : > { %v1150_v28 = vpop.permute.xlu0 %1149  ;;  %v1144_v27 = vpop.permute.xlu1 %1143 }
 0x3fd   : > { %v1157_v23 = vsel %vm851_vm12, %v1142_v0, %v1150_v28  ;;  %v1161_v5 = vsel %vm851_vm12, %v1150_v28, %v1142_v0 }
 0x3fe   : > { %v1165_v55 = vmul.f32 %v3542_v6, %v1157_v23  ;;  %v1166_v3 = vmul.f32 %v3545_v7, %v1161_v5  ;;  %v1136_v23 = vadd.f32 %v1128_v2, %v1062_v60 }
 0x400   : > { %v1173_v54 = vadd.f32 %v1165_v55, %v1133_v25  ;;  %v1174_v14 = vadd.f32 %v1166_v3, %v1134_v4  ;;  %v1152_v15 = vpop.permute.xlu1 %1151  ;;  %v1120_v3 = vsel %vm810_vm7, %v1108_v56, %v1116_v1  ;;  %v1124_v4 = vsel %vm810_vm7, %v1116_v1, %v1108_v56 }
 0x401   : > { %v1158_v0 = vsel %vm851_vm12, %v1144_v27, %v1152_v15  ;;  %v1162_v28 = vsel %vm851_vm12, %v1152_v15, %v1144_v27  ;;  %v1154_v34 = vpop.permute.xlu0 %1153  ;;  %v1131_v55 = vmul.f32 %v3522_v38, %v1124_v4  ;;  %v1132_v12 = vmul.f32 %v3526_v52, %v1120_v3 }
 0x402   : > { %v1167_v61 = vmul.f32 %v3542_v6, %v1158_v0  ;;  %v1168_v5 = vmul.f32 %v3545_v7, %v1162_v28  ;;  %v1201_v25 = vadd.f32 %v3723_v36, %v1173_v54  ;;  %v1202_v27 = vadd.f32 %v3723_v36, %v1174_v14 }
 0x403   : > { %v1137_v54 = vadd.f32 %v1129_v22, %v3707_v13  ;;  %v1138_v14 = vadd.f32 %v1130_v62, %v3709_v10 }
 0x404   : > { %v1175_v16 = vadd.f32 %v1167_v61, %v1135_v39  ;;  %v1176_v60 = vadd.f32 %v1168_v5, %v1136_v23  ;;  %v1146_v63 = vpop.permute.xlu1 %1145  ;;  %v3780_v28 = vadd.f32 %v1201_v25, %v3352_v33  ;;  %v1139_v33 = vadd.f32 %v1131_v55, %v3711_v11 }
 0x405   : > { %v1159_v8 = vsel %vm851_vm12, %v1146_v63, %v1154_v34  ;;  %v1163_v2 = vsel %vm851_vm12, %v1154_v34, %v1146_v63  ;;  %v1148_v56 = vpop.permute.xlu0 %1147  ;;  %v3783_v34 = vadd.f32 %v1202_v27, %v3344_v29  ;;  %v1140_v29 = vadd.f32 %v1132_v12, %v3713_v9 }
 0x406   : > { %v1203_v53 = vadd.f32 %v3725_v57, %v1175_v16  ;;  %v1204_v1 = vadd.f32 %v3725_v57, %v1176_v60  ;;  %v1169_v15 = vmul.f32 %v3542_v6, %v1159_v8  ;;  %v1170_v0 = vmul.f32 %v3545_v7, %v1163_v2 }
 0x407   : > { %v1235_v11 = vmul.f32 %v3780_v28, %v3780_v28  ;;  %v1236_v9 = vmul.f32 %v3783_v34, %v3783_v34 }
 0x408   : > { %v3786_v39 = vadd.f32 %v1203_v53, %v3342_v26  ;;  %v3789_v23 = vadd.f32 %v1204_v1, %v3348_v31  ;;  %v1156_v61 = vpop.permute.xlu1 %1155  ;;  %v1177_v22 = vadd.f32 %v1169_v15, %v1137_v54  ;;  %v1178_v13 = vadd.f32 %v1170_v0, %v1138_v14 }
 0x409   : > { %v1160_v10 = vsel %vm851_vm12, %v1148_v56, %v1156_v61  ;;  %v1164_v5 = vsel %vm851_vm12, %v1156_v61, %v1148_v56 }
 0x40a   : > { %v1171_v62 = vmul.f32 %v3542_v6, %v1160_v10  ;;  %v1172_v26 = vmul.f32 %v3545_v7, %v1164_v5  ;;  %v1237_v31 = vmul.f32 %v3786_v39, %v3786_v39  ;;  %v1238_v3 = vmul.f32 %v3789_v23, %v3789_v23 }
 0x40b   : > { %v1205_v4 = vadd.f32 %v3727_v58, %v1177_v22  ;;  %v1206_v25 = vadd.f32 %v3727_v58, %v1178_v13  ;;  %v1226_v55 = vadd.f32 %v3789_v23, %v3783_v34  ;;  %v1217_v12 = vadd.f32 %v3786_v39, %v3780_v28 }
 0x40c   : > { %v1179_v27 = vadd.f32 %v1171_v62, %v1139_v33  ;;  %v1180_v16 = vadd.f32 %v1172_v26, %v1140_v29  ;;  %v1243_v1 = vadd.f32 %v1237_v31, %v1235_v11  ;;  %v1252_v56 = vadd.f32 %v1238_v3, %v1236_v9 }
 0x40d   : > { %v3810_v60 = vadd.f32 %v1205_v4, %v3356_v35  ;;  %v3813_v63 = vadd.f32 %v1206_v25, %v3346_v30 }
 0x40e   : > { %v1207_v8 = vadd.f32 %v3729_v59, %v1179_v27  ;;  %v1208_v2 = vadd.f32 %v3729_v59, %v1180_v16 }
 0x40f   : > { %v1239_v53 = vmul.f32 %v3810_v60, %v3810_v60  ;;  %v1240_v35 = vmul.f32 %v3813_v63, %v3813_v63  ;;  %v1227_v14 = vadd.f32 %v1226_v55, %v3813_v63  ;;  %v1218_v15 = vadd.f32 %v1217_v12, %v3810_v60 }
 0x410   : > { %v3826_v30 = vadd.f32 %v1207_v8, %v3360_v37  ;;  %v3829_v54 = vadd.f32 %v1208_v2, %v3350_v32 }
 0x411   : > { %v1244_v0 = vadd.f32 %v1243_v1, %v1239_v53  ;;  %v1253_v61 = vadd.f32 %v1252_v56, %v1240_v35 }
 0x412   : > { %v1228_v22 = vadd.f32 %v1227_v14, %v3829_v54  ;;  %v1219_v13 = vadd.f32 %v1218_v15, %v3826_v30  ;;  %v1241_v10 = vmul.f32 %v3826_v30, %v3826_v30  ;;  %v1242_v37 = vmul.f32 %v3829_v54, %v3829_v54 }
 0x414   : > { %v1229_v5 = vrot.slane %v1228_v22, 4  ;;  %v1220_v33 = vrot.slane %v1219_v13, 4  ;;  %v1245_v32 = vadd.f32 %v1244_v0, %v1241_v10  ;;  %v1254_v29 = vadd.f32 %v1253_v61, %v1242_v37 }
 0x416   : > { %v1230_v62 = vadd.f32 %v1229_v5, %v1228_v22  ;;  %v1221_v26 = vadd.f32 %v1220_v33, %v1219_v13  ;;  %v1246_v31 = vrot.slane %v1245_v32, 4  ;;  %v1255_v3 = vrot.slane %v1254_v29, 4 }
 0x418   : > { %v1231_v4 = vrot.slane %v1230_v62, 2  ;;  %v1222_v25 = vrot.slane %v1221_v26, 2  ;;  %v1247_v27 = vadd.f32 %v1246_v31, %v1245_v32  ;;  %v1256_v16 = vadd.f32 %v1255_v3, %v1254_v29 }
 0x41a   : > { %v1232_v11 = vadd.f32 %v1231_v4, %v1230_v62  ;;  %v1223_v9 = vadd.f32 %v1222_v25, %v1221_v26  ;;  %v1248_v8 = vrot.slane %v1247_v27, 2  ;;  %v1257_v2 = vrot.slane %v1256_v16, 2 }
 0x41c   : > { %v1233_v55 = vrot.slane %v1232_v11, 1  ;;  %v1224_v12 = vrot.slane %v1223_v9, 1  ;;  %v1249_v53 = vadd.f32 %v1248_v8, %v1247_v27  ;;  %v1258_v14 = vadd.f32 %v1257_v2, %v1256_v16 }
 0x41e   : > { %v1234_v1 = vadd.f32 %v1233_v55, %v1232_v11  ;;  %v1225_v35 = vadd.f32 %v1224_v12, %v1223_v9  ;;  %v1250_v56 = vrot.slane %v1249_v53, 1  ;;  %v1259_v0 = vrot.slane %v1258_v14, 1 }
 0x420   : > { %1287 = vadd.xlane.f32.xlu1 %v1234_v1  ;;  %1261 = vadd.xlane.f32.xlu0 %v1225_v35  ;;  %v1251_v15 = vadd.f32 %v1250_v56, %v1249_v53  ;;  %v1260_v61 = vadd.f32 %v1259_v0, %v1258_v14 }
 0x424   : > { %1263 = vadd.xlane.f32.xlu0 %v1251_v15 }
 0x428   : > { %1289 = vadd.xlane.f32.xlu0 %v1260_v61 }
 0x4ad   : > { %v1262_v22 = vpop.xlane.xlu0 %1261  ;;  %v1288_v10 = vpop.xlane.xlu1 %1287 }
 0x4ae   : > { %v3839_v13 = vmul.f32 0.00024414063, %v1262_v22  ;;  %v3841_v5 = vmul.f32 0.00024414063, %v1288_v10 }
 0x4b0   : > { %v1267_v33 = vmul.f32 %v3839_v13, %v3839_v13  ;;  %v1293_v31 = vmul.f32 %v3841_v5, %v3841_v5  ;;  %v1305_v11 = vmul.f32 0.0, %v3841_v5  ;;  %v1280_v9 = vmul.f32 0.0, %v3839_v13 }
 0x4b1   : > { %v1264_v37 = vpop.xlane.xlu0 %1263 }
 0x4b2   : > { %v1266_v32 = vmul.f32 0.00024414063, %v1264_v37  ;;  %v1307_v2 = vadd.f32 %v1305_v11, %v3839_v13  ;;  %v1308_v55 = vadd.f32 %v3841_v5, %v1280_v9 }
 0x4b4   : > { %v1268_v29 = vsub.f32 %v1266_v32, %v1267_v33  ;;  %v1314_v14 = vsub.f32 %v3783_v34, %v1308_v55  ;;  %v1316_v15 = vsub.f32 %v3789_v23, %v1308_v55  ;;  %v1313_v0 = vsub.f32 %v3780_v28, %v1307_v2 }
 0x4b5   : > { %v1290_v62 = vpop.xlane.xlu0 %1289  ;;  %v1315_v33 = vsub.f32 %v3786_v39, %v1307_v2  ;;  %v1318_v32 = vsub.f32 %v3813_v63, %v1308_v55 }
 0x4b6   : > { %v1269_v26 = vmax.f32 %v1268_v29, 0.0  ;;  %v1292_v3 = vmul.f32 0.00024414063, %v1290_v62  ;;  %v1320_v29 = vsub.f32 %v3829_v54, %v1308_v55  ;;  %v1317_v62 = vsub.f32 %v3810_v60, %v1307_v2 }
 0x4b8   : > { %v1270_v4 = vadd.f32 1e-05, %v1269_v26  ;;  %v1294_v25 = vsub.f32 %v1292_v3, %v1293_v31  ;;  %v1319_v26 = vsub.f32 %v3826_v30, %v1307_v2 }
 0x4ba   : > { %3012 = vrsqrt.f32 %v1270_v4  ;;  %v1295_v27 = vmax.f32 %v1294_v25, 0.0  ;;  %vm1273_vm6 = vcmp.eq.f32.partialorder %v1270_v4, inf  ;;  %v1276_v53 = vand.u32 2147483648, %v1270_v4 }
 0x4bb   : > { %vm1275_vm8 = vcmp.eq.f32.partialorder %v1270_v4, 0.0 }
 0x4bc   : > { %v1296_v16 = vadd.f32 1e-05, %v1295_v27 }
 0x4be   : > { %3014 = vrsqrt.f32 %v1296_v16  ;;  %vm1299_vm9 = vcmp.eq.f32.partialorder %v1296_v16, inf  ;;  %v1302_v31 = vand.u32 2147483648, %v1296_v16  ;;  %vm1301_vm10 = vcmp.eq.f32.partialorder %v1296_v16, 0.0 }
 0x4c4   : > { %v3013_v8 = vpop.eup %3012 }
 0x4c5   : > { %v1272_v12 = vmul.f32 %v3013_v8, %v1270_v4  ;;  %v1284_v1 = vmul.f32 0.0, %v3013_v8 }
 0x4c7   : > { %v1274_v35 = vsel %vm1273_vm6, %v1270_v4, %v1272_v12 }
 0x4c8   : > { %v3015_v56 = vpop.eup %3014  ;;  %v3854_v61 = vsel %vm1275_vm8, %v1276_v53, %v1274_v35 }
 0x4c9   : > { %v1298_v22 = vmul.f32 %v3015_v56, %v1296_v16  ;;  %v1312_v10 = vadd.f32 %v3015_v56, %v1284_v1  ;;  %v1309_v37 = vmul.f32 0.0, %v3015_v56 }
 0x4cb   : > { %v3861_v34 = vmul.f32 %v1314_v14, %v1312_v10  ;;  %v3863_v23 = vmul.f32 %v1316_v15, %v1312_v10  ;;  %v1311_v28 = vadd.f32 %v3013_v8, %v1309_v37  ;;  %v3865_v3 = vmul.f32 %v1318_v32, %v1312_v10 }
 0x4cc   : > { %v3867_v4 = vmul.f32 %v1320_v29, %v1312_v10  ;;  %v1300_v39 = vsel %vm1299_vm9, %v1296_v16, %v1298_v22  ;;  %v4766_v16 = vmov 0.0  }
 0x4cd   : > { %v2912_v63 = vpack.c.bf16 %v3863_v23, %v3861_v34  ;;  %v3871_v54 = vmul.f32 %v1313_v0, %v1311_v28  ;;  %v3873_v60 = vmul.f32 %v1315_v33, %v1311_v28  ;;  %v3875_v30 = vsel %vm1301_vm10, %v1302_v31, %v1300_v39 }
 0x4ce   : > { %v3879_v27 = vmul.f32 %v1317_v62, %v1311_v28  ;;  %v3881_v11 = vmul.f32 %v1319_v26, %v1311_v28  ;;  %v2916_v9 = vpack.c.bf16 %v3867_v4, %v3865_v3 }
 0x4cf   : > { %2913 = vmatprep.subr.bf16.mxu1 %v2912_v63  ;;  %v2914_v25 = vpack.c.bf16 %v3873_v60, %v3871_v54 }
 0x4d0   : > { %v2918_v8 = vpack.c.bf16 %v3881_v11, %v3879_v27 }
 0x4d1   : > { %2915 = vmatpush1.bf16.msra.mxu1 %v2914_v25 }
 0x4d2   : > { %2917 = vmatprep.subr.bf16.mxu1 %v2916_v9 }
 0x4d5   : > { %2919 = vmatpush1.bf16.msra.mxu1 %v2918_v8 }
 0x4d8   : > { %2836 = vmatmul.mubr.msk.f32.vlgmr.msra.gmra.mrb[28].mxu1 %vm620_vm1, %v3369_v40 }
 0x4d9   : > { %1399 = vmatprep.mubr.f32.mxu1 %v4766_v16 }
 0x4dc   : > { %2837 = vmatmul.mubr.msk.f32.gmra.mrb[30].mxu1 %vm620_vm1, %v3377_v41 }
 0x4dd   : > { %1405 = vmatprep.mubr.f32.mxu1 %v4766_v16 }
 0x4e0   : > { %2838 = vmatmul.mubr.msk.f32.gmra.mrb[32].mxu1 %vm620_vm1, %v3385_v42 }
 0x4e1   : > { %1411 = vmatprep.mubr.f32.mxu1 %v4766_v16 }
 0x4e4   : > { %2839 = vmatmul.mubr.msk.f32.gmra.mrb[34].mxu1 %vm620_vm1, %v3393_v43 }
 0x4e5   : > { %1417 = vmatprep.mubr.f32.mxu1 %v4766_v16 }
 0x4e8   : > { %2840 = vmatmul.mubr.msk.f32.gmra.mrb[36].mxu1 %vm620_vm1, %v3401_v44 }
 0x4e9   : > { %1423 = vmatprep.mubr.f32.mxu1 %v4766_v16 }
 0x4ec   : > { %2841 = vmatmul.mubr.msk.f32.gmra.mrb[38].mxu1 %vm620_vm1, %v3409_v45 }
 0x4ed   : > { %1429 = vmatprep.mubr.f32.mxu1 %v4766_v16 }
 0x4f0   : > { %2842 = vmatmul.mubr.msk.f32.gmra.mrb[40].mxu1 %vm620_vm1, %v3417_v46 }
 0x4f1   : > { %1435 = vmatprep.mubr.f32.mxu1 %v4766_v16 }
 0x4f4   : > { %2843 = vmatmul.mubr.msk.f32.gmra.mrb[42].mxu1 %vm620_vm1, %v3425_v47 }
 0x4f5   : > { %1441 = vmatprep.mubr.f32.mxu1 %v4766_v16 }
 0x4f8   : > { %2844 = vmatmul.mubr.msk.f32.gmra.mrb[44].mxu1 %vm620_vm1, %v3433_v48 }
 0x4f9   : > { %1447 = vmatprep.mubr.f32.mxu1 %v4766_v16 }
 0x4fc   : > { %2845 = vmatmul.mubr.msk.f32.gmra.mrb[46].mxu1 %vm620_vm1, %v3441_v49 }
 0x4fd   : > { %1453 = vmatprep.mubr.f32.mxu1 %v4766_v16 }
 0x500   : > { %2846 = vmatmul.mubr.msk.f32.gmra.mrb[48].mxu1 %vm620_vm1, %v3449_v50 }
 0x501   : > { %1459 = vmatprep.mubr.f32.mxu1 %v4766_v16 }
 0x504   : > { %2847 = vmatmul.mubr.msk.f32.gmra.mrb[50].mxu1 %vm620_vm1, %v3457_v51 }
 0x505   : > { %1987 = vmatprep.mubr.f32.mxu1 %v4766_v16 }
 0x5ab   : > { %v1395_v40 = vpop.f32.mrb[28].mxu1 }
 0x5ac   : > { %1466 = vrot.lane.b32.xlu1 %v1395_v40, %s3174_s12  ;;  %v1397_v41 = vpop.f32.mrb[29].mxu1 }
 0x5af   : > { %v1401_v42 = vpop.f32.mrb[30].mxu1 }
 0x5b0   : > { %1474 = vrot.lane.b32.xlu1 %v1397_v41, %s3174_s12  ;;  %1468 = vrot.lane.b32.xlu0 %v1401_v42, %s3174_s12  ;;  %v1403_v43 = vpop.f32.mrb[31].mxu1 }
 0x5b3   : > { %v1407_v44 = vpop.f32.mrb[32].mxu1 }
 0x5b4   : > { %1476 = vrot.lane.b32.xlu1 %v1403_v43, %s3174_s12  ;;  %1470 = vrot.lane.b32.xlu0 %v1407_v44, %s3174_s12  ;;  %v1409_v45 = vpop.f32.mrb[33].mxu1 }
 0x5b7   : > { %v1413_v46 = vpop.f32.mrb[34].mxu1 }
 0x5b8   : > { %1478 = vrot.lane.b32.xlu0 %v1409_v45, %s3174_s12  ;;  %1472 = vrot.lane.b32.xlu1 %v1413_v46, %s3174_s12  ;;  %v1415_v47 = vpop.f32.mrb[35].mxu1 }
 0x5bb   : > { %v1419_v48 = vpop.f32.mrb[36].mxu1 }
 0x5bc   : > { %1480 = vrot.lane.b32.xlu1 %v1415_v47, %s3174_s12  ;;  %v1421_v49 = vpop.f32.mrb[37].mxu1 }
 0x5bf   : > { %v1425_v50 = vpop.f32.mrb[38].mxu1 }
 0x5c0   : > { %v1427_v51 = vpop.f32.mrb[39].mxu1 }
 0x5c3   : > { %v3931_v2 = vpop.f32.mrb[40].mxu1 }
 0x5c4   : > { %v3933_v55 = vpop.f32.mrb[41].mxu1 }
 0x5c7   : > { %v3935_v12 = vpop.f32.mrb[42].mxu1 }
 0x5c8   : > { %v3937_v53 = vpop.f32.mrb[43].mxu1 }
 0x5cb   : > { %v1443_v1 = vpop.f32.mrb[44].mxu1 }
 0x5cc   : > { %1506 = vrot.lane.b32.xlu0 %v1443_v1, %s3175_s13  ;;  %v1445_v35 = vpop.f32.mrb[45].mxu1 }
 0x5cf   : > { %v1449_v56 = vpop.f32.mrb[46].mxu1 }
 0x5d0   : > { %1514 = vrot.lane.b32.xlu0 %v1445_v35, %s3175_s13  ;;  %1508 = vrot.lane.b32.xlu1 %v1449_v56, %s3175_s13  ;;  %v1451_v14 = vpop.f32.mrb[47].mxu1 }
 0x5d3   : > { %v1455_v15 = vpop.f32.mrb[48].mxu1 }
 0x5d4   : > { %1516 = vrot.lane.b32.xlu1 %v1451_v14, %s3175_s13  ;;  %1510 = vrot.lane.b32.xlu0 %v1455_v15, %s3175_s13  ;;  %v1457_v0 = vpop.f32.mrb[49].mxu1 }
 0x5d7   : > { %v1461_v22 = vpop.f32.mrb[50].mxu1 }
 0x5d8   : > { %1518 = vrot.lane.b32.xlu0 %v1457_v0, %s3175_s13  ;;  %1512 = vrot.lane.b32.xlu1 %v1461_v22, %s3175_s13  ;;  %v1463_v10 = vpop.f32.mrb[51].mxu1 }
 0x5dc   : > { %1520 = vrot.lane.b32.xlu1 %v1463_v10, %s3175_s13 }
 0x61e   : > { %v1467_v37 = vpop.permute.xlu1 %1466 }
 0x622   : > { %v1475_v33 = vpop.permute.xlu1 %1474  ;;  %v1469_v32 = vpop.permute.xlu0 %1468 }
 0x623   : > { %v1482_v31 = vsel %vm810_vm7, %v1467_v37, %v1475_v33  ;;  %v1486_v39 = vsel %vm810_vm7, %v1475_v33, %v1467_v37 }
 0x624   : > { %v1490_v63 = vmul.f32 %v3522_v38, %v1486_v39  ;;  %v1491_v25 = vmul.f32 %v3526_v52, %v1482_v31 }
 0x626   : > { %v1477_v29 = vpop.permute.xlu1 %1476  ;;  %v1471_v62 = vpop.permute.xlu0 %1470  ;;  %v1498_v42 = vadd.f32 %v1490_v63, %v1419_v48  ;;  %v1499_v43 = vadd.f32 %v1491_v25, %v1421_v49 }
 0x627   : > { %v1483_v40 = vsel %vm810_vm7, %v1469_v32, %v1477_v29  ;;  %v1487_v41 = vsel %vm810_vm7, %v1477_v29, %v1469_v32 }
 0x628   : > { %v1492_v44 = vmul.f32 %v3522_v38, %v1487_v41  ;;  %v1493_v45 = vmul.f32 %v3526_v52, %v1483_v40 }
 0x62a   : > { %v1473_v26 = vpop.permute.xlu1 %1472  ;;  %v1479_v28 = vpop.permute.xlu0 %1478  ;;  %v1500_v39 = vadd.f32 %v1492_v44, %v1425_v50  ;;  %v1501_v63 = vadd.f32 %v1493_v45, %v1427_v51 }
 0x62b   : > { %v1484_v1 = vsel %vm810_vm7, %v1471_v62, %v1479_v28  ;;  %v1488_v35 = vsel %vm810_vm7, %v1479_v28, %v1471_v62 }
 0x62c   : > { %v1494_v22 = vmul.f32 %v3522_v38, %v1488_v35  ;;  %v1495_v10 = vmul.f32 %v3526_v52, %v1484_v1 }
 0x62e   : > { %v1481_v9 = vpop.permute.xlu1 %1480  ;;  %v1502_v41 = vadd.f32 %v1494_v22, %v3931_v2 }
 0x62f   : > { %v1485_v48 = vsel %vm810_vm7, %v1473_v26, %v1481_v9  ;;  %v1489_v49 = vsel %vm810_vm7, %v1481_v9, %v1473_v26 }
 0x630   : > { %v1496_v62 = vmul.f32 %v3522_v38, %v1489_v49  ;;  %v1497_v28 = vmul.f32 %v3526_v52, %v1485_v48 }
 0x632   : > { %v1505_v50 = vadd.f32 %v1497_v28, %v3937_v53 }
 0x63e   : > { %v1507_v8 = vpop.permute.xlu0 %1506 }
 0x642   : > { %v1515_v46 = vpop.permute.xlu0 %1514  ;;  %v1509_v47 = vpop.permute.xlu1 %1508 }
 0x643   : > { %v1522_v56 = vsel %vm851_vm12, %v1507_v8, %v1515_v46  ;;  %v1526_v14 = vsel %vm851_vm12, %v1515_v46, %v1507_v8 }
 0x644   : > { %v1530_v15 = vmul.f32 %v3542_v6, %v1522_v56  ;;  %v1531_v0 = vmul.f32 %v3545_v7, %v1526_v14 }
 0x646   : > { %v1538_v37 = vadd.f32 %v1530_v15, %v1498_v42  ;;  %v1539_v33 = vadd.f32 %v1531_v0, %v1499_v43  ;;  %v1517_v32 = vpop.permute.xlu1 %1516  ;;  %v1511_v29 = vpop.permute.xlu0 %1510  ;;  %v1503_v42 = vadd.f32 %v1495_v10, %v3933_v55 }
 0x647   : > { %v1523_v31 = vsel %vm851_vm12, %v1509_v47, %v1517_v32  ;;  %v1527_v26 = vsel %vm851_vm12, %v1517_v32, %v1509_v47  ;;  %v1504_v47 = vadd.f32 %v1496_v62, %v3935_v12 }
 0x648   : > { %v1532_v25 = vmul.f32 %v3542_v6, %v1523_v31  ;;  %v1533_v9 = vmul.f32 %v3545_v7, %v1527_v26  ;;  %v1546_v8 = vadd.f32 %v1538_v37, %v3506_v17  ;;  %v1547_v40 = vadd.f32 %v1539_v33, %v3506_v17 }
 0x64a   : > { %v1540_v43 = vadd.f32 %v1532_v25, %v1500_v39  ;;  %v1541_v46 = vadd.f32 %v1533_v9, %v1501_v63  ;;  %v1519_v1 = vpop.permute.xlu0 %1518  ;;  %v1513_v35 = vpop.permute.xlu1 %1512  ;;  %v1562_v14 = vmul.f32 0.01, %v1546_v8  ;;  %vm1555_vm11 = vcmp.ge.f32.partialorder %v1547_v40, 0.0 }
 0x64b   : > { %v1524_v51 = vsel %vm851_vm12, %v1511_v29, %v1519_v1  ;;  %v1528_v44 = vsel %vm851_vm12, %v1519_v1, %v1511_v29  ;;  %v1563_v48 = vmul.f32 0.01, %v1547_v40  ;;  %vm1554_vm13 = vcmp.ge.f32.partialorder %v1546_v8, 0.0 }
 0x64c   : > { %v1548_v45 = vadd.f32 %v1540_v43, %v3508_v18  ;;  %v1549_v2 = vadd.f32 %v1541_v46, %v3508_v18  ;;  %v1534_v55 = vmul.f32 %v3542_v6, %v1524_v51  ;;  %v1535_v56 = vmul.f32 %v3545_v7, %v1528_v44 }
 0x64d   : > { %v1571_v62 = vsel %vm1555_vm11, %v1547_v40, %v1563_v48  ;;  %v1570_v25 = vsel %vm1554_vm13, %v1546_v8, %v1562_v14  ;;  %v4772_v14 = vld [vmem:[#allocation17_spill] sm:$0xff]  ;;  %v4773_v48 = vld [vmem:[#allocation18_spill] sm:$0xff] }
 0x64e   : > { %v1564_v12 = vmul.f32 0.01, %v1548_v45  ;;  %v1542_v53 = vadd.f32 %v1534_v55, %v1502_v41  ;;  %v1543_v49 = vadd.f32 %v1535_v56, %v1503_v42  ;;  %v1521_v15 = vpop.permute.xlu1 %1520  ;;  %vm1557_vm14 = vcmp.ge.f32.partialorder %v1549_v2, 0.0  ;;  %v4769_v55 = vld [vmem:[#allocation14_spill] sm:$0xff]  ;;  %v4770_v56 = vld [vmem:[#allocation15_spill] sm:$0xff] }
 0x64f   : > { %v1525_v0 = vsel %vm851_vm12, %v1513_v35, %v1521_v15  ;;  %v1529_v22 = vsel %vm851_vm12, %v1521_v15, %v1513_v35  ;;  %v1565_v10 = vmul.f32 0.01, %v1549_v2  ;;  %vm1556_vm15 = vcmp.ge.f32.partialorder %v1548_v45, 0.0  ;;  %v4777_v15 = vld [vmem:[#allocation22_spill] sm:$0xff] }
 0x650   : > { %v1550_v37 = vadd.f32 %v1542_v53, %v3510_v19  ;;  %v1551_v33 = vadd.f32 %v1543_v49, %v3510_v19  ;;  %v1536_v32 = vmul.f32 %v3542_v6, %v1525_v0  ;;  %v1537_v29 = vmul.f32 %v3545_v7, %v1529_v22  ;;  %v4775_v53 = vld [vmem:[#allocation20_spill] sm:$0xff]  ;;  %v4776_v49 = vld [vmem:[#allocation21_spill] sm:$0xff] }
 0x651   : > { %v1573_v28 = vsel %vm1557_vm14, %v1549_v2, %v1565_v10  ;;  %v1572_v31 = vsel %vm1556_vm15, %v1548_v45, %v1564_v12  ;;  %v4767_v45 = vld [vmem:[#allocation12_spill] sm:$0xff]  ;;  %v4768_v2 = vld [vmem:[#allocation13_spill] sm:$0xff]  ;;  %v4774_v12 = vld [vmem:[#allocation19_spill] sm:$0xff] }
 0x652   : > { %v1544_v26 = vadd.f32 %v1536_v32, %v1504_v47  ;;  %v1545_v39 = vadd.f32 %v1537_v29, %v1505_v50  ;;  %v2920_v63 = vpack.c.bf16 %v1573_v28, %v1571_v62  ;;  %v2922_v9 = vpack.c.bf16 %v1572_v31, %v1570_v25 }
 0x653   : > { %v1566_v41 = vmul.f32 0.01, %v1550_v37  ;;  %v1567_v46 = vmul.f32 0.01, %v1551_v33  ;;  %vm1559_vm0 = vcmp.ge.f32.partialorder %v1551_v33, 0.0  ;;  %vm1558_vm2 = vcmp.ge.f32.partialorder %v1550_v37, 0.0 }
 0x654   : > { %v1552_v42 = vadd.f32 %v1544_v26, %v3512_v20  ;;  %v1553_v43 = vadd.f32 %v1545_v39, %v3512_v20  ;;  %2921 = vmatprep.subr.bf16.mxu0 %v2920_v63 }
 0x655   : > { %2923 = vmatpush1.bf16.msra.mxu0 %v2922_v9  ;;  %v1575_v35 = vsel %vm1559_vm0, %v1551_v33, %v1567_v46  ;;  %v1574_v50 = vsel %vm1558_vm2, %v1550_v37, %v1566_v41 }
 0x656   : > { %v1568_v1 = vmul.f32 0.01, %v1552_v42  ;;  %vm1561_vm3 = vcmp.ge.f32.partialorder %v1553_v43, 0.0  ;;  %v1569_v40 = vmul.f32 0.01, %v1553_v43  ;;  %vm1560_vm4 = vcmp.ge.f32.partialorder %v1552_v42, 0.0 }
 0x658   : > { %v1577_v47 = vsel %vm1561_vm3, %v1553_v43, %v1569_v40  ;;  %v1576_v51 = vsel %vm1560_vm4, %v1552_v42, %v1568_v1 }
 0x659   : > { %v2924_v8 = vpack.c.bf16 %v1577_v47, %v1575_v35  ;;  %v2926_v44 = vpack.c.bf16 %v1576_v51, %v1574_v50 }
 0x65b   : > { %2925 = vmatprep.subr.bf16.mxu0 %v2924_v8 }
 0x65c   : > { %2927 = vmatpush1.bf16.msra.mxu0 %v2926_v44 }
 0x65f   : > { %2848 = vmatmul.mubr.msk.f32.vlgmr.msra.gmra.mrb[28].mxu0 %vm620_vm1, %v3606_v21  ;;  %v4771_v21 = vld [vmem:[#allocation16_spill] sm:$0xff] }
 0x660   : > { %1648 = vmatprep.mubr.f32.mxu0 %v4766_v16 }
 0x663   : > { %2849 = vmatmul.mubr.msk.f32.gmra.mrb[30].mxu0 %vm620_vm1, %v4767_v45 }
 0x664   : > { %1654 = vmatprep.mubr.f32.mxu0 %v4766_v16 }
 0x667   : > { %2850 = vmatmul.mubr.msk.f32.gmra.mrb[32].mxu0 %vm620_vm1, %v4768_v2 }
 0x668   : > { %1660 = vmatprep.mubr.f32.mxu0 %v4766_v16 }
 0x66b   : > { %2851 = vmatmul.mubr.msk.f32.gmra.mrb[34].mxu0 %vm620_vm1, %v4769_v55 }
 0x66c   : > { %1666 = vmatprep.mubr.f32.mxu0 %v4766_v16 }
 0x66f   : > { %2852 = vmatmul.mubr.msk.f32.gmra.mrb[36].mxu0 %vm620_vm1, %v4770_v56 }
 0x670   : > { %1672 = vmatprep.mubr.f32.mxu0 %v4766_v16 }
 0x673   : > { %2853 = vmatmul.mubr.msk.f32.gmra.mrb[38].mxu0 %vm620_vm1, %v4771_v21 }
 0x674   : > { %1678 = vmatprep.mubr.f32.mxu0 %v4766_v16 }
 0x677   : > { %2854 = vmatmul.mubr.msk.f32.gmra.mrb[40].mxu0 %vm620_vm1, %v4772_v14 }
 0x678   : > { %1684 = vmatprep.mubr.f32.mxu0 %v4766_v16 }
 0x67b   : > { %2855 = vmatmul.mubr.msk.f32.gmra.mrb[42].mxu0 %vm620_vm1, %v4773_v48 }
 0x67c   : > { %1690 = vmatprep.mubr.f32.mxu0 %v4766_v16 }
 0x67f   : > { %2856 = vmatmul.mubr.msk.f32.gmra.mrb[44].mxu0 %vm620_vm1, %v4774_v12 }
 0x680   : > { %1696 = vmatprep.mubr.f32.mxu0 %v4766_v16 }
 0x683   : > { %2857 = vmatmul.mubr.msk.f32.gmra.mrb[46].mxu0 %vm620_vm1, %v4775_v53 }
 0x684   : > { %1702 = vmatprep.mubr.f32.mxu0 %v4766_v16 }
 0x687   : > { %2858 = vmatmul.mubr.msk.f32.gmra.mrb[48].mxu0 %vm620_vm1, %v4776_v49 }
 0x688   : > { %1708 = vmatprep.mubr.f32.mxu0 %v4766_v16 }
 0x68b   : > { %2859 = vmatmul.mubr.msk.f32.gmra.mrb[50].mxu0 %vm620_vm1, %v4777_v15 }
 0x68c   : > { %2236 = vmatprep.mubr.f32.mxu0 %v4766_v16 }
 0x732   : > { %v1644_v0 = vpop.f32.mrb[28].mxu0 }
 0x733   : > { %1715 = vrot.lane.b32.xlu0 %v1644_v0, %s3174_s12  ;;  %v1646_v22 = vpop.f32.mrb[29].mxu0 }
 0x736   : > { %v1650_v10 = vpop.f32.mrb[30].mxu0 }
 0x737   : > { %1723 = vrot.lane.b32.xlu0 %v1646_v22, %s3174_s12  ;;  %1717 = vrot.lane.b32.xlu1 %v1650_v10, %s3174_s12  ;;  %v1652_v37 = vpop.f32.mrb[31].mxu0 }
 0x73a   : > { %v1656_v33 = vpop.f32.mrb[32].mxu0 }
 0x73b   : > { %1725 = vrot.lane.b32.xlu1 %v1652_v37, %s3174_s12  ;;  %1719 = vrot.lane.b32.xlu0 %v1656_v33, %s3174_s12  ;;  %v1658_v32 = vpop.f32.mrb[33].mxu0 }
 0x73e   : > { %v1662_v29 = vpop.f32.mrb[34].mxu0 }
 0x73f   : > { %1727 = vrot.lane.b32.xlu1 %v1658_v32, %s3174_s12  ;;  %1721 = vrot.lane.b32.xlu0 %v1662_v29, %s3174_s12  ;;  %v1664_v62 = vpop.f32.mrb[35].mxu0 }
 0x742   : > { %v1668_v28 = vpop.f32.mrb[36].mxu0 }
 0x743   : > { %1729 = vrot.lane.b32.xlu1 %v1664_v62, %s3174_s12  ;;  %v1670_v31 = vpop.f32.mrb[37].mxu0 }
 0x746   : > { %v1674_v26 = vpop.f32.mrb[38].mxu0 }
 0x747   : > { %v1676_v39 = vpop.f32.mrb[39].mxu0 }
 0x74a   : > { %v4053_v63 = vpop.f32.mrb[40].mxu0 }
 0x74b   : > { %v4055_v25 = vpop.f32.mrb[41].mxu0 }
 0x74e   : > { %v4057_v9 = vpop.f32.mrb[42].mxu0 }
 0x74f   : > { %v4059_v41 = vpop.f32.mrb[43].mxu0 }
 0x752   : > { %v1692_v42 = vpop.f32.mrb[44].mxu0 }
 0x753   : > { %1755 = vrot.lane.b32.xlu0 %v1692_v42, %s3175_s13  ;;  %v1694_v43 = vpop.f32.mrb[45].mxu0 }
 0x756   : > { %v1698_v46 = vpop.f32.mrb[46].mxu0 }
 0x757   : > { %1763 = vrot.lane.b32.xlu0 %v1694_v43, %s3175_s13  ;;  %1757 = vrot.lane.b32.xlu1 %v1698_v46, %s3175_s13  ;;  %v1700_v1 = vpop.f32.mrb[47].mxu0 }
 0x75a   : > { %v1704_v40 = vpop.f32.mrb[48].mxu0 }
 0x75b   : > { %1765 = vrot.lane.b32.xlu1 %v1700_v1, %s3175_s13  ;;  %v1706_v35 = vpop.f32.mrb[49].mxu0  ;;  %1759 = vrot.lane.b32.xlu0 %v1704_v40, %s3175_s13 }
 0x75e   : > { %v1710_v47 = vpop.f32.mrb[50].mxu0 }
 0x75f   : > { %1767 = vrot.lane.b32.xlu1 %v1706_v35, %s3175_s13  ;;  %v1712_v50 = vpop.f32.mrb[51].mxu0  ;;  %1761 = vrot.lane.b32.xlu0 %v1710_v47, %s3175_s13 }
 0x763   : > { %1769 = vrot.lane.b32.xlu1 %v1712_v50, %s3175_s13 }
 0x7a5   : > { %v1716_v51 = vpop.permute.xlu0 %1715 }
 0x7a9   : > { %v1718_v8 = vpop.permute.xlu1 %1717  ;;  %v1724_v44 = vpop.permute.xlu0 %1723 }
 0x7aa   : > { %v1731_v21 = vsel %vm810_vm7, %v1716_v51, %v1724_v44  ;;  %v1735_v14 = vsel %vm810_vm7, %v1724_v44, %v1716_v51 }
 0x7ab   : > { %v1739_v53 = vmul.f32 %v3522_v38, %v1735_v14  ;;  %v1740_v49 = vmul.f32 %v3526_v52, %v1731_v21 }
 0x7ad   : > { %v1726_v45 = vpop.permute.xlu1 %1725  ;;  %v1720_v2 = vpop.permute.xlu0 %1719  ;;  %v1747_v37 = vadd.f32 %v1739_v53, %v1668_v28  ;;  %v1748_v33 = vadd.f32 %v1740_v49, %v1670_v31 }
 0x7ae   : > { %v1732_v15 = vsel %vm810_vm7, %v1718_v8, %v1726_v45  ;;  %v1736_v0 = vsel %vm810_vm7, %v1726_v45, %v1718_v8 }
 0x7af   : > { %v1741_v62 = vmul.f32 %v3522_v38, %v1736_v0  ;;  %v1742_v42 = vmul.f32 %v3526_v52, %v1732_v15 }
 0x7b1   : > { %v1728_v55 = vpop.permute.xlu1 %1727  ;;  %v1722_v56 = vpop.permute.xlu0 %1721  ;;  %v1749_v8 = vadd.f32 %v1741_v62, %v1674_v26  ;;  %v1750_v44 = vadd.f32 %v1742_v42, %v1676_v39 }
 0x7b2   : > { %v1733_v1 = vsel %vm810_vm7, %v1720_v2, %v1728_v55  ;;  %v1737_v28 = vsel %vm810_vm7, %v1728_v55, %v1720_v2 }
 0x7b3   : > { %v1743_v14 = vmul.f32 %v3522_v38, %v1737_v28  ;;  %v1744_v2 = vmul.f32 %v3526_v52, %v1733_v1 }
 0x7b5   : > { %v1730_v48 = vpop.permute.xlu1 %1729 }
 0x7b6   : > { %v1734_v55 = vsel %vm810_vm7, %v1722_v56, %v1730_v48 }
 0x7c5   : > { %v1756_v12 = vpop.permute.xlu0 %1755 }
 0x7c9   : > { %v1764_v22 = vpop.permute.xlu0 %1763  ;;  %v1758_v10 = vpop.permute.xlu1 %1757 }
 0x7ca   : > { %v1771_v32 = vsel %vm851_vm12, %v1756_v12, %v1764_v22  ;;  %v1775_v29 = vsel %vm851_vm12, %v1764_v22, %v1756_v12  ;;  %v1738_v12 = vsel %vm810_vm7, %v1730_v48, %v1722_v56 }
 0x7cb   : > { %v1779_v43 = vmul.f32 %v3542_v6, %v1771_v32  ;;  %v1780_v46 = vmul.f32 %v3545_v7, %v1775_v29  ;;  %v1751_v32 = vadd.f32 %v1743_v14, %v4053_v63  ;;  %v1752_v29 = vadd.f32 %v1744_v2, %v4055_v25 }
 0x7cd   : > { %v1787_v31 = vadd.f32 %v1779_v43, %v1747_v37  ;;  %v1788_v40 = vadd.f32 %v1780_v46, %v1748_v33  ;;  %v1766_v35 = vpop.permute.xlu1 %1765  ;;  %v1760_v47 = vpop.permute.xlu0 %1759  ;;  %v1746_v37 = vmul.f32 %v3526_v52, %v1734_v55 }
 0x7ce   : > { %v1772_v50 = vsel %vm851_vm12, %v1758_v10, %v1766_v35  ;;  %v1776_v51 = vsel %vm851_vm12, %v1766_v35, %v1758_v10  ;;  %v1745_v10 = vmul.f32 %v3522_v38, %v1738_v12 }
 0x7cf   : > { %v1781_v45 = vmul.f32 %v3542_v6, %v1772_v50  ;;  %v1782_v21 = vmul.f32 %v3545_v7, %v1776_v51  ;;  %v1795_v53 = vadd.f32 %v1787_v31, %v3723_v36  ;;  %v1796_v49 = vadd.f32 %v1788_v40, %v3723_v36 }
 0x7d1   : > { %v1789_v26 = vadd.f32 %v1781_v45, %v1749_v8  ;;  %v1790_v39 = vadd.f32 %v1782_v21, %v1750_v44  ;;  %v1768_v15 = vpop.permute.xlu1 %1767  ;;  %v1762_v48 = vpop.permute.xlu0 %1761  ;;  %v4118_v43 = vadd.f32 %v1795_v53, %v3871_v54  ;;  %v4121_v46 = vadd.f32 %v1796_v49, %v3861_v34 }
 0x7d2   : > { %v1773_v0 = vsel %vm851_vm12, %v1760_v47, %v1768_v15  ;;  %v1777_v22 = vsel %vm851_vm12, %v1768_v15, %v1760_v47  ;;  %v1753_v54 = vadd.f32 %v1745_v10, %v4057_v9  ;;  %v1754_v34 = vadd.f32 %v1746_v37, %v4059_v41 }
 0x7d3   : > { %v1797_v33 = vadd.f32 %v1789_v26, %v3725_v57  ;;  %v1798_v56 = vadd.f32 %v1790_v39, %v3725_v57  ;;  %v1783_v62 = vmul.f32 %v3542_v6, %v1773_v0  ;;  %v1784_v42 = vmul.f32 %v3545_v7, %v1777_v22 }
 0x7d4   : > { %v1829_v9 = vmul.f32 %v4118_v43, %v4118_v43  ;;  %v1830_v41 = vmul.f32 %v4121_v46, %v4121_v46 }
 0x7d5   : > { %v4124_v1 = vadd.f32 %v1797_v33, %v3873_v60  ;;  %v4127_v28 = vadd.f32 %v1798_v56, %v3863_v23  ;;  %v1770_v31 = vpop.permute.xlu1 %1769  ;;  %v1791_v63 = vadd.f32 %v1783_v62, %v1751_v32  ;;  %v1792_v40 = vadd.f32 %v1784_v42, %v1752_v29 }
 0x7d6   : > { %v1774_v25 = vsel %vm851_vm12, %v1762_v48, %v1770_v31  ;;  %v1778_v35 = vsel %vm851_vm12, %v1770_v31, %v1762_v48 }
 0x7d7   : > { %v1785_v47 = vmul.f32 %v3542_v6, %v1774_v25  ;;  %v1786_v60 = vmul.f32 %v3545_v7, %v1778_v35  ;;  %v1831_v23 = vmul.f32 %v4124_v1, %v4124_v1  ;;  %v1832_v50 = vmul.f32 %v4127_v28, %v4127_v28 }
 0x7d8   : > { %v1799_v51 = vadd.f32 %v1791_v63, %v3727_v58  ;;  %v1800_v8 = vadd.f32 %v1792_v40, %v3727_v58  ;;  %v1820_v12 = vadd.f32 %v4127_v28, %v4121_v46  ;;  %v1811_v53 = vadd.f32 %v4124_v1, %v4118_v43 }
 0x7d9   : > { %v1793_v44 = vadd.f32 %v1785_v47, %v1753_v54  ;;  %v1794_v45 = vadd.f32 %v1786_v60, %v1754_v34  ;;  %v1837_v26 = vadd.f32 %v1831_v23, %v1829_v9  ;;  %v1846_v39 = vadd.f32 %v1832_v50, %v1830_v41 }
 0x7da   : > { %v4148_v21 = vadd.f32 %v1799_v51, %v3879_v27  ;;  %v4151_v14 = vadd.f32 %v1800_v8, %v3865_v3 }
 0x7db   : > { %v1801_v2 = vadd.f32 %v1793_v44, %v3729_v59  ;;  %v1802_v55 = vadd.f32 %v1794_v45, %v3729_v59 }
 0x7dc   : > { %v1833_v49 = vmul.f32 %v4148_v21, %v4148_v21  ;;  %v1834_v27 = vmul.f32 %v4151_v14, %v4151_v14  ;;  %v1821_v0 = vadd.f32 %v1820_v12, %v4151_v14  ;;  %v1812_v22 = vadd.f32 %v1811_v53, %v4148_v21 }
 0x7dd   : > { %v4164_v3 = vadd.f32 %v1801_v2, %v3881_v11  ;;  %v4167_v15 = vadd.f32 %v1802_v55, %v3867_v4 }
 0x7de   : > { %v1838_v10 = vadd.f32 %v1837_v26, %v1833_v49  ;;  %v1847_v37 = vadd.f32 %v1846_v39, %v1834_v27 }
 0x7df   : > { %v1822_v33 = vadd.f32 %v1821_v0, %v4167_v15  ;;  %v1813_v56 = vadd.f32 %v1812_v22, %v4164_v3  ;;  %v1835_v48 = vmul.f32 %v4164_v3, %v4164_v3  ;;  %v1836_v11 = vmul.f32 %v4167_v15, %v4167_v15 }
 0x7e1   : > { %v1823_v32 = vrot.slane %v1822_v33, 4  ;;  %v1814_v29 = vrot.slane %v1813_v56, 4  ;;  %v1839_v4 = vadd.f32 %v1838_v10, %v1835_v48  ;;  %v1848_v62 = vadd.f32 %v1847_v37, %v1836_v11 }
 0x7e3   : > { %v1824_v42 = vadd.f32 %v1823_v32, %v1822_v33  ;;  %v1815_v31 = vadd.f32 %v1814_v29, %v1813_v56  ;;  %v1840_v63 = vrot.slane %v1839_v4, 4  ;;  %v1849_v40 = vrot.slane %v1848_v62, 4 }
 0x7e5   : > { %v1825_v25 = vrot.slane %v1824_v42, 2  ;;  %v1816_v35 = vrot.slane %v1815_v31, 2  ;;  %v1841_v54 = vadd.f32 %v1840_v63, %v1839_v4  ;;  %v1850_v34 = vadd.f32 %v1849_v40, %v1848_v62 }
 0x7e7   : > { %v1826_v47 = vadd.f32 %v1825_v25, %v1824_v42  ;;  %v1817_v60 = vadd.f32 %v1816_v35, %v1815_v31  ;;  %v1842_v23 = vrot.slane %v1841_v54, 2  ;;  %v1851_v50 = vrot.slane %v1850_v34, 2 }
 0x7e9   : > { %v1827_v51 = vrot.slane %v1826_v47, 1  ;;  %v1818_v8 = vrot.slane %v1817_v60, 1  ;;  %v1843_v44 = vadd.f32 %v1842_v23, %v1841_v54  ;;  %v1852_v2 = vadd.f32 %v1851_v50, %v1850_v34 }
 0x7eb   : > { %v1828_v45 = vadd.f32 %v1827_v51, %v1826_v47  ;;  %v1819_v9 = vadd.f32 %v1818_v8, %v1817_v60  ;;  %v1844_v41 = vrot.slane %v1843_v44, 1  ;;  %v1853_v12 = vrot.slane %v1852_v2, 1 }
 0x7ed   : > { %1881 = vadd.xlane.f32.xlu1 %v1828_v45  ;;  %1855 = vadd.xlane.f32.xlu0 %v1819_v9  ;;  %v1845_v55 = vadd.f32 %v1844_v41, %v1843_v44  ;;  %v1854_v53 = vadd.f32 %v1853_v12, %v1852_v2 }
 0x7f1   : > { %1857 = vadd.xlane.f32.xlu0 %v1845_v55 }
 0x7f5   : > { %1883 = vadd.xlane.f32.xlu0 %v1854_v53 }
 0x87a   : > { %v1856_v49 = vpop.xlane.xlu0 %1855  ;;  %v1882_v27 = vpop.xlane.xlu1 %1881 }
 0x87b   : > { %v4177_v26 = vmul.f32 0.00024414063, %v1856_v49  ;;  %v4179_v0 = vmul.f32 0.00024414063, %v1882_v27 }
 0x87d   : > { %v1861_v22 = vmul.f32 %v4177_v26, %v4177_v26  ;;  %v1887_v48 = vmul.f32 %v4179_v0, %v4179_v0  ;;  %v1874_v42 = vmul.f32 0.0, %v4177_v26  ;;  %v1899_v31 = vmul.f32 0.0, %v4179_v0 }
 0x87e   : > { %v1858_v39 = vpop.xlane.xlu0 %1857 }
 0x87f   : > { %v1860_v10 = vmul.f32 0.00024414063, %v1858_v39  ;;  %v1902_v63 = vadd.f32 %v4179_v0, %v1874_v42  ;;  %v1901_v25 = vadd.f32 %v1899_v31, %v4177_v26  ;;  %v3030_v42 = vld [vmem:[%s4722_s3 + $0x30] sm:$0xff]  ;;  %v3031_v31 = vld [vmem:[%s4722_s3 + $0x38] sm:$0xff] }
 0x881   : > { %v1862_v37 = vsub.f32 %v1860_v10, %v1861_v22  ;;  %v1908_v47 = vsub.f32 %v4121_v46, %v1902_v63  ;;  %v1910_v50 = vsub.f32 %v4127_v28, %v1902_v63  ;;  %v1907_v51 = vsub.f32 %v4118_v43, %v1901_v25 }
 0x882   : > { %v1884_v33 = vpop.xlane.xlu0 %1883  ;;  %v1909_v8 = vsub.f32 %v4124_v1, %v1901_v25  ;;  %v1912_v55 = vsub.f32 %v4151_v14, %v1902_v63  ;;  %v1914_v46 = vsub.f32 %v4167_v15, %v1902_v63  ;;  %v1911_v12 = vsub.f32 %v4148_v21, %v1901_v25  ;;  %v3032_v63 = vld [vmem:[%s4722_s3 + $0x40] sm:$0xff] }
 0x883   : > { %v1863_v56 = vmax.f32 %v1862_v37, 0.0  ;;  %v1886_v11 = vmul.f32 0.00024414063, %v1884_v33  ;;  %v1913_v28 = vsub.f32 %v4164_v3, %v1901_v25  ;;  %v3034_v25 = vld [vmem:[%s4722_s3 + $0x50] sm:$0xff] }
 0x885   : > { %v1864_v32 = vadd.f32 1e-05, %v1863_v56  ;;  %v1888_v29 = vsub.f32 %v1886_v11, %v1887_v48  ;;  %v3024_v11 = vld [vmem:[%s4722_s3] sm:$0xff] }
 0x887   : > { %3016 = vrsqrt.f32 %v1864_v32  ;;  %v1889_v4 = vmax.f32 %v1888_v29, 0.0  ;;  %vm1867_vm6 = vcmp.eq.f32.partialorder %v1864_v32, inf  ;;  %v1870_v54 = vand.u32 2147483648, %v1864_v32  ;;  %v3027_v29 = vld [vmem:[%s4722_s3 + $0x18] sm:$0xff] }
 0x888   : > { %vm1869_vm8 = vcmp.eq.f32.partialorder %v1864_v32, 0.0 }
 0x889   : > { %v1890_v62 = vadd.f32 1e-05, %v1889_v4  ;;  %v3028_v4 = vld [vmem:[%s4722_s3 + $0x20] sm:$0xff] }
 0x88b   : > { %3018 = vrsqrt.f32 %v1890_v62  ;;  %vm1893_vm9 = vcmp.eq.f32.partialorder %v1890_v62, inf  ;;  %v1896_v49 = vand.u32 2147483648, %v1890_v62  ;;  %vm1895_vm10 = vcmp.eq.f32.partialorder %v1890_v62, 0.0 }
 0x891   : > { %v3017_v40 = vpop.eup %3016 }
 0x892   : > { %v1866_v35 = vmul.f32 %v3017_v40, %v1864_v32  ;;  %v1878_v34 = vmul.f32 0.0, %v3017_v40 }
 0x894   : > { %v1868_v60 = vsel %vm1867_vm6, %v1864_v32, %v1866_v35  ;;  %v3026_v32 = vld [vmem:[%s4722_s3 + $0x10] sm:$0xff]  ;;  %v3035_v35 = vld [vmem:[%s4722_s3 + $0x58] sm:$0xff]  ;;  %vm2610_vm6 = vcmask 17408  }
 0x895   : > { %v3019_v23 = vpop.eup %3018  ;;  %v1871_v44 = vsel %vm1869_vm8, %v1870_v54, %v1868_v60 }
 0x896   : > { %v1892_v45 = vmul.f32 %v3019_v23, %v1890_v62  ;;  %v1906_v9 = vadd.f32 %v3019_v23, %v1878_v34  ;;  %v1903_v41 = vmul.f32 0.0, %v3019_v23  ;;  %v4195_v2 = vsel %vm2599_vm5, %v3854_v61, %v1871_v44 }
 0x898   : > { %v4201_v43 = vmul.f32 %v1908_v47, %v1906_v9  ;;  %v4203_v1 = vmul.f32 %v1910_v50, %v1906_v9  ;;  %v1905_v53 = vadd.f32 %v3017_v40, %v1903_v41  ;;  %v4205_v27 = vmul.f32 %v1912_v55, %v1906_v9  ;;  %v3033_v40 = vld [vmem:[%s4722_s3 + $0x48] sm:$0xff] }
 0x899   : > { %v4207_v39 = vmul.f32 %v1914_v46, %v1906_v9  ;;  %v1894_v61 = vsel %vm1893_vm9, %v1890_v62, %v1892_v45  ;;  %v3029_v62 = vld [vmem:[%s4722_s3 + $0x28] sm:$0xff] }
 0x89a   : > { %v2928_v14 = vpack.c.bf16 %v4203_v1, %v4201_v43  ;;  %v4211_v15 = vmul.f32 %v1907_v51, %v1905_v53  ;;  %v4213_v21 = vmul.f32 %v1909_v8, %v1905_v53  ;;  %v1897_v3 = vsel %vm1895_vm10, %v1896_v49, %v1894_v61 }
 0x89b   : > { %v4217_v10 = vmul.f32 %v1911_v12, %v1905_v53  ;;  %v4219_v37 = vmul.f32 %v1913_v28, %v1905_v53  ;;  %v4223_v33 = vsel %vm2599_vm5, %v3875_v30, %v1897_v3  ;;  %v2932_v56 = vpack.c.bf16 %v4207_v39, %v4205_v27  ;;  %v3025_v30 = vld [vmem:[%s4722_s3 + $0x8] sm:$0xff] }
 0x89c   : > { %2929 = vmatprep.subr.bf16.mxu1 %v2928_v14  ;;  %v2930_v22 = vpack.c.bf16 %v4213_v21, %v4211_v15 }
 0x89d   : > { %v2934_v48 = vpack.c.bf16 %v4219_v37, %v4217_v10 }
 0x89e   : > { %2931 = vmatpush1.bf16.msra.mxu1 %v2930_v22 }
 0x89f   : > { %2933 = vmatprep.subr.bf16.mxu1 %v2932_v56 }
 0x8a2   : > { %2935 = vmatpush1.bf16.msra.mxu1 %v2934_v48 }
 0x8a5   : > { %2860 = vmatmul.mubr.msk.f32.vlgmr.msra.gmra.mrb[52].mxu1 %vm620_vm1, %v3024_v11 }
 0x8a6   : > { %1993 = vmatprep.mubr.f32.mxu1 %v4766_v16 }
 0x8a9   : > { %2861 = vmatmul.mubr.msk.f32.gmra.mrb[54].mxu1 %vm620_vm1, %v3025_v30 }
 0x8aa   : > { %1999 = vmatprep.mubr.f32.mxu1 %v4766_v16 }
 0x8ad   : > { %2862 = vmatmul.mubr.msk.f32.gmra.mrb[56].mxu1 %vm620_vm1, %v3026_v32 }
 0x8ae   : > { %2005 = vmatprep.mubr.f32.mxu1 %v4766_v16 }
 0x8b1   : > { %2863 = vmatmul.mubr.msk.f32.gmra.mrb[58].mxu1 %vm620_vm1, %v3027_v29 }
 0x8b2   : > { %2011 = vmatprep.mubr.f32.mxu1 %v4766_v16 }
 0x8b5   : > { %2864 = vmatmul.mubr.msk.f32.gmra.mrb[60].mxu1 %vm620_vm1, %v3028_v4 }
 0x8b6   : > { %2017 = vmatprep.mubr.f32.mxu1 %v4766_v16 }
 0x8b9   : > { %2865 = vmatmul.mubr.msk.f32.gmra.mrb[62].mxu1 %vm620_vm1, %v3029_v62 }
 0x8ba   : > { %2023 = vmatprep.mubr.f32.mxu1 %v4766_v16 }
 0x8bd   : > { %2866 = vmatmul.mubr.msk.f32.gmra.mrb[64].mxu1 %vm620_vm1, %v3030_v42 }
 0x8be   : > { %2029 = vmatprep.mubr.f32.mxu1 %v4766_v16 }
 0x8c1   : > { %2867 = vmatmul.mubr.msk.f32.gmra.mrb[66].mxu1 %vm620_vm1, %v3031_v31 }
 0x8c2   : > { %2035 = vmatprep.mubr.f32.mxu1 %v4766_v16 }
 0x8c5   : > { %2868 = vmatmul.mubr.msk.f32.gmra.mrb[68].mxu1 %vm620_vm1, %v3032_v63 }
 0x8c6   : > { %2041 = vmatprep.mubr.f32.mxu1 %v4766_v16 }
 0x8c9   : > { %2869 = vmatmul.mubr.msk.f32.gmra.mrb[70].mxu1 %vm620_vm1, %v3033_v40 }
 0x8ca   : > { %2047 = vmatprep.mubr.f32.mxu1 %v4766_v16 }
 0x8cd   : > { %2870 = vmatmul.mubr.msk.f32.gmra.mrb[72].mxu1 %vm620_vm1, %v3034_v25 }
 0x8ce   : > { %2053 = vmatprep.mubr.f32.mxu1 %v4766_v16 }
 0x8d1   : > { %2871 = vmatmul.mubr.msk.f32.gmra.mrb[74].mxu1 %vm620_vm1, %v3035_v35 }
 0x8d2   : > { %2589 = vmatprep.mubr.f32.mxu1 %v4766_v16 }
 0x978   : > { %v1989_v54 = vpop.f32.mrb[52].mxu1 }
 0x979   : > { %2060 = vrot.lane.b32.xlu1 %v1989_v54, %s3174_s12  ;;  %v1991_v34 = vpop.f32.mrb[53].mxu1 }
 0x97c   : > { %v1995_v47 = vpop.f32.mrb[54].mxu1 }
 0x97d   : > { %2068 = vrot.lane.b32.xlu1 %v1991_v34, %s3174_s12  ;;  %2062 = vrot.lane.b32.xlu0 %v1995_v47, %s3174_s12  ;;  %v1997_v60 = vpop.f32.mrb[55].mxu1 }
 0x980   : > { %v2001_v23 = vpop.f32.mrb[56].mxu1 }
 0x981   : > { %2070 = vrot.lane.b32.xlu1 %v1997_v60, %s3174_s12  ;;  %2064 = vrot.lane.b32.xlu0 %v2001_v23, %s3174_s12  ;;  %v2003_v50 = vpop.f32.mrb[57].mxu1 }
 0x984   : > { %v2007_v51 = vpop.f32.mrb[58].mxu1 }
 0x985   : > { %2072 = vrot.lane.b32.xlu0 %v2003_v50, %s3174_s12  ;;  %2066 = vrot.lane.b32.xlu1 %v2007_v51, %s3174_s12  ;;  %v2009_v8 = vpop.f32.mrb[59].mxu1 }
 0x988   : > { %v2013_v44 = vpop.f32.mrb[60].mxu1 }
 0x989   : > { %2074 = vrot.lane.b32.xlu1 %v2009_v8, %s3174_s12  ;;  %v2015_v45 = vpop.f32.mrb[61].mxu1 }
 0x98c   : > { %v2019_v9 = vpop.f32.mrb[62].mxu1 }
 0x98d   : > { %v2021_v41 = vpop.f32.mrb[63].mxu1 }
 0x990   : > { %v4297_v55 = vpop.f32.mrb[64].mxu1 }
 0x991   : > { %v4299_v46 = vpop.f32.mrb[65].mxu1 }
 0x994   : > { %v4301_v12 = vpop.f32.mrb[66].mxu1 }
 0x995   : > { %v4303_v28 = vpop.f32.mrb[67].mxu1 }
 0x998   : > { %v2037_v53 = vpop.f32.mrb[68].mxu1 }
 0x999   : > { %2100 = vrot.lane.b32.xlu0 %v2037_v53, %s3175_s13  ;;  %v2039_v49 = vpop.f32.mrb[69].mxu1 }
 0x99c   : > { %v2043_v61 = vpop.f32.mrb[70].mxu1 }
 0x99d   : > { %2108 = vrot.lane.b32.xlu0 %v2039_v49, %s3175_s13  ;;  %2102 = vrot.lane.b32.xlu1 %v2043_v61, %s3175_s13  ;;  %v2045_v14 = vpop.f32.mrb[71].mxu1 }
 0x9a0   : > { %v2049_v3 = vpop.f32.mrb[72].mxu1 }
 0x9a1   : > { %2110 = vrot.lane.b32.xlu1 %v2045_v14, %s3175_s13  ;;  %2104 = vrot.lane.b32.xlu0 %v2049_v3, %s3175_s13  ;;  %v2051_v22 = vpop.f32.mrb[73].mxu1 }
 0x9a4   : > { %v2055_v56 = vpop.f32.mrb[74].mxu1 }
 0x9a5   : > { %2112 = vrot.lane.b32.xlu0 %v2051_v22, %s3175_s13  ;;  %2106 = vrot.lane.b32.xlu1 %v2055_v56, %s3175_s13  ;;  %v2057_v48 = vpop.f32.mrb[75].mxu1 }
 0x9a9   : > { %2114 = vrot.lane.b32.xlu1 %v2057_v48, %s3175_s13 }
 0x9eb   : > { %v2061_v11 = vpop.permute.xlu1 %2060 }
 0x9ef   : > { %v2069_v30 = vpop.permute.xlu1 %2068  ;;  %v2063_v32 = vpop.permute.xlu0 %2062 }
 0x9f0   : > { %v2076_v31 = vsel %vm810_vm7, %v2061_v11, %v2069_v30  ;;  %v2080_v63 = vsel %vm810_vm7, %v2069_v30, %v2061_v11 }
 0x9f1   : > { %v2084_v40 = vmul.f32 %v3522_v38, %v2080_v63  ;;  %v2085_v25 = vmul.f32 %v3526_v52, %v2076_v31 }
 0x9f3   : > { %v2071_v29 = vpop.permute.xlu1 %2070  ;;  %v2065_v4 = vpop.permute.xlu0 %2064  ;;  %v2092_v60 = vadd.f32 %v2084_v40, %v2013_v44  ;;  %v2093_v23 = vadd.f32 %v2085_v25, %v2015_v45 }
 0x9f4   : > { %v2077_v34 = vsel %vm810_vm7, %v2063_v32, %v2071_v29  ;;  %v2081_v47 = vsel %vm810_vm7, %v2071_v29, %v2063_v32 }
 0x9f5   : > { %v2086_v50 = vmul.f32 %v3522_v38, %v2081_v47  ;;  %v2087_v51 = vmul.f32 %v3526_v52, %v2077_v34 }
 0x9f7   : > { %v2067_v62 = vpop.permute.xlu1 %2066  ;;  %v2073_v42 = vpop.permute.xlu0 %2072  ;;  %v2094_v40 = vadd.f32 %v2086_v50, %v2019_v9  ;;  %v2095_v25 = vadd.f32 %v2087_v51, %v2021_v41 }
 0x9f8   : > { %v2078_v49 = vsel %vm810_vm7, %v2065_v4, %v2073_v42  ;;  %v2082_v61 = vsel %vm810_vm7, %v2073_v42, %v2065_v4 }
 0x9f9   : > { %v2088_v48 = vmul.f32 %v3522_v38, %v2082_v61  ;;  %v2089_v11 = vmul.f32 %v3526_v52, %v2078_v49 }
 0x9fb   : > { %v2075_v35 = vpop.permute.xlu1 %2074 }
 0x9fc   : > { %v2079_v44 = vsel %vm810_vm7, %v2067_v62, %v2075_v35  ;;  %v2083_v45 = vsel %vm810_vm7, %v2075_v35, %v2067_v62 }
 0x9fd   : > { %v2090_v42 = vmul.f32 %v3522_v38, %v2083_v45  ;;  %v2091_v31 = vmul.f32 %v3526_v52, %v2079_v44 }
 0x9ff   : > { %v2099_v9 = vadd.f32 %v2091_v31, %v4303_v28 }
 0xa0b   : > { %v2101_v54 = vpop.permute.xlu0 %2100 }
 0xa0f   : > { %v2109_v8 = vpop.permute.xlu0 %2108  ;;  %v2103_v53 = vpop.permute.xlu1 %2102 }
 0xa10   : > { %v2116_v14 = vsel %vm851_vm12, %v2101_v54, %v2109_v8  ;;  %v2120_v3 = vsel %vm851_vm12, %v2109_v8, %v2101_v54 }
 0xa11   : > { %v2124_v22 = vmul.f32 %v3542_v6, %v2116_v14  ;;  %v2125_v56 = vmul.f32 %v3545_v7, %v2120_v3 }
 0xa13   : > { %v2132_v30 = vadd.f32 %v2124_v22, %v2092_v60  ;;  %v2133_v32 = vadd.f32 %v2125_v56, %v2093_v23  ;;  %v2111_v29 = vpop.permute.xlu1 %2110  ;;  %v2105_v4 = vpop.permute.xlu0 %2104  ;;  %v2096_v60 = vadd.f32 %v2088_v48, %v4297_v55  ;;  %v2097_v23 = vadd.f32 %v2089_v11, %v4299_v46 }
 0xa14   : > { %v2117_v63 = vsel %vm851_vm12, %v2103_v53, %v2111_v29  ;;  %v2121_v62 = vsel %vm851_vm12, %v2111_v29, %v2103_v53  ;;  %v2098_v53 = vadd.f32 %v2090_v42, %v4301_v12 }
 0xa15   : > { %v2126_v35 = vmul.f32 %v3542_v6, %v2117_v63  ;;  %v2127_v54 = vmul.f32 %v3545_v7, %v2121_v62  ;;  %v2140_v34 = vadd.f32 %v2132_v30, %v3506_v17  ;;  %v2141_v47 = vadd.f32 %v2133_v32, %v3506_v17 }
 0xa17   : > { %v2134_v8 = vadd.f32 %v2126_v35, %v2094_v40  ;;  %v2135_v49 = vadd.f32 %v2127_v54, %v2095_v25  ;;  %v2113_v61 = vpop.permute.xlu0 %2112  ;;  %v2107_v14 = vpop.permute.xlu1 %2106  ;;  %v2156_v3 = vmul.f32 0.01, %v2140_v34  ;;  %vm2149_vm11 = vcmp.ge.f32.partialorder %v2141_v47, 0.0 }
 0xa18   : > { %v2118_v41 = vsel %vm851_vm12, %v2105_v4, %v2113_v61  ;;  %v2122_v50 = vsel %vm851_vm12, %v2113_v61, %v2105_v4  ;;  %v2157_v44 = vmul.f32 0.01, %v2141_v47  ;;  %vm2148_vm13 = vcmp.ge.f32.partialorder %v2140_v34, 0.0 }
 0xa19   : > { %v2142_v17 = vadd.f32 %v2134_v8, %v3508_v18  ;;  %v2143_v55 = vadd.f32 %v2135_v49, %v3508_v18  ;;  %v2128_v46 = vmul.f32 %v3542_v6, %v2118_v41  ;;  %v2129_v51 = vmul.f32 %v3545_v7, %v2122_v50  ;;  %v3037_v41 = vld [vmem:[%s4724_s5 + $0x8] sm:$0xff]  ;;  %v3038_v50 = vld [vmem:[%s4724_s5 + $0x10] sm:$0xff] }
 0xa1a   : > { %v2165_v4 = vsel %vm2149_vm11, %v2141_v47, %v2157_v44  ;;  %v2164_v25 = vsel %vm2148_vm13, %v2140_v34, %v2156_v3  ;;  %v3043_v3 = vld [vmem:[%s4724_s5 + $0x38] sm:$0xff]  ;;  %v3044_v44 = vld [vmem:[%s4724_s5 + $0x40] sm:$0xff] }
 0xa1b   : > { %v2158_v12 = vmul.f32 0.01, %v2142_v17  ;;  %v2136_v28 = vadd.f32 %v2128_v46, %v2096_v60  ;;  %v2137_v45 = vadd.f32 %v2129_v51, %v2097_v23  ;;  %v2115_v22 = vpop.permute.xlu1 %2114  ;;  %vm2151_vm14 = vcmp.ge.f32.partialorder %v2143_v55, 0.0  ;;  %v3041_v46 = vld [vmem:[%s4724_s5 + $0x28] sm:$0xff]  ;;  %v3042_v51 = vld [vmem:[%s4724_s5 + $0x30] sm:$0xff] }
 0xa1c   : > { %v2119_v56 = vsel %vm851_vm12, %v2107_v14, %v2115_v22  ;;  %v2123_v48 = vsel %vm851_vm12, %v2115_v22, %v2107_v14  ;;  %v2159_v18 = vmul.f32 0.01, %v2143_v55  ;;  %vm2150_vm15 = vcmp.ge.f32.partialorder %v2142_v17, 0.0 }
 0xa1d   : > { %v2144_v11 = vadd.f32 %v2136_v28, %v3510_v19  ;;  %v2145_v30 = vadd.f32 %v2137_v45, %v3510_v19  ;;  %v2130_v32 = vmul.f32 %v3542_v6, %v2119_v56  ;;  %v2131_v29 = vmul.f32 %v3545_v7, %v2123_v48  ;;  %v3046_v28 = vld [vmem:[%s4724_s5 + $0x50] sm:$0xff]  ;;  %v3047_v45 = vld [vmem:[%s4724_s5 + $0x58] sm:$0xff] }
 0xa1e   : > { %v2167_v42 = vsel %vm2151_vm14, %v2143_v55, %v2159_v18  ;;  %v2166_v31 = vsel %vm2150_vm15, %v2142_v17, %v2158_v12  ;;  %v3039_v17 = vld [vmem:[%s4724_s5 + $0x18] sm:$0xff]  ;;  %v3040_v55 = vld [vmem:[%s4724_s5 + $0x20] sm:$0xff]  ;;  %v3045_v12 = vld [vmem:[%s4724_s5 + $0x48] sm:$0xff] }
 0xa1f   : > { %v2138_v63 = vadd.f32 %v2130_v32, %v2098_v53  ;;  %v2139_v62 = vadd.f32 %v2131_v29, %v2099_v9  ;;  %v2936_v40 = vpack.c.bf16 %v2167_v42, %v2165_v4  ;;  %v2938_v35 = vpack.c.bf16 %v2166_v31, %v2164_v25 }
 0xa20   : > { %v2160_v54 = vmul.f32 0.01, %v2144_v11  ;;  %v2161_v19 = vmul.f32 0.01, %v2145_v30  ;;  %vm2153_vm0 = vcmp.ge.f32.partialorder %v2145_v30, 0.0  ;;  %vm2152_vm2 = vcmp.ge.f32.partialorder %v2144_v11, 0.0 }
 0xa21   : > { %v2146_v60 = vadd.f32 %v2138_v63, %v3512_v20  ;;  %v2147_v23 = vadd.f32 %v2139_v62, %v3512_v20  ;;  %2937 = vmatprep.subr.bf16.mxu0 %v2936_v40  ;;  %v3036_v20 = vld [vmem:[%s4724_s5] sm:$0xff] }
 0xa22   : > { %2939 = vmatpush1.bf16.msra.mxu0 %v2938_v35  ;;  %v2169_v49 = vsel %vm2153_vm0, %v2145_v30, %v2161_v19  ;;  %v2168_v14 = vsel %vm2152_vm2, %v2144_v11, %v2160_v54 }
 0xa23   : > { %v2162_v8 = vmul.f32 0.01, %v2146_v60  ;;  %vm2155_vm3 = vcmp.ge.f32.partialorder %v2147_v23, 0.0  ;;  %v2163_v47 = vmul.f32 0.01, %v2147_v23  ;;  %vm2154_vm4 = vcmp.ge.f32.partialorder %v2146_v60, 0.0 }
 0xa25   : > { %v2171_v61 = vsel %vm2155_vm3, %v2147_v23, %v2163_v47  ;;  %v2170_v53 = vsel %vm2154_vm4, %v2146_v60, %v2162_v8 }
 0xa26   : > { %v2940_v34 = vpack.c.bf16 %v2171_v61, %v2169_v49  ;;  %v2942_v9 = vpack.c.bf16 %v2170_v53, %v2168_v14 }
 0xa28   : > { %2941 = vmatprep.subr.bf16.mxu0 %v2940_v34 }
 0xa29   : > { %2943 = vmatpush1.bf16.msra.mxu0 %v2942_v9 }
 0xa2c   : > { %2872 = vmatmul.mubr.msk.f32.vlgmr.msra.gmra.mrb[52].mxu0 %vm620_vm1, %v3036_v20 }
 0xa2d   : > { %2242 = vmatprep.mubr.f32.mxu0 %v4766_v16 }
 0xa30   : > { %2873 = vmatmul.mubr.msk.f32.gmra.mrb[54].mxu0 %vm620_vm1, %v3037_v41 }
 0xa31   : > { %2248 = vmatprep.mubr.f32.mxu0 %v4766_v16 }
 0xa34   : > { %2874 = vmatmul.mubr.msk.f32.gmra.mrb[56].mxu0 %vm620_vm1, %v3038_v50 }
 0xa35   : > { %2254 = vmatprep.mubr.f32.mxu0 %v4766_v16 }
 0xa38   : > { %2875 = vmatmul.mubr.msk.f32.gmra.mrb[58].mxu0 %vm620_vm1, %v3039_v17 }
 0xa39   : > { %2260 = vmatprep.mubr.f32.mxu0 %v4766_v16 }
 0xa3c   : > { %2876 = vmatmul.mubr.msk.f32.gmra.mrb[60].mxu0 %vm620_vm1, %v3040_v55 }
 0xa3d   : > { %2266 = vmatprep.mubr.f32.mxu0 %v4766_v16 }
 0xa40   : > { %2877 = vmatmul.mubr.msk.f32.gmra.mrb[62].mxu0 %vm620_vm1, %v3041_v46 }
 0xa41   : > { %2272 = vmatprep.mubr.f32.mxu0 %v4766_v16 }
 0xa44   : > { %2878 = vmatmul.mubr.msk.f32.gmra.mrb[64].mxu0 %vm620_vm1, %v3042_v51 }
 0xa45   : > { %2278 = vmatprep.mubr.f32.mxu0 %v4766_v16 }
 0xa48   : > { %2879 = vmatmul.mubr.msk.f32.gmra.mrb[66].mxu0 %vm620_vm1, %v3043_v3 }
 0xa49   : > { %2284 = vmatprep.mubr.f32.mxu0 %v4766_v16 }
 0xa4c   : > { %2880 = vmatmul.mubr.msk.f32.gmra.mrb[68].mxu0 %vm620_vm1, %v3044_v44 }
 0xa4d   : > { %2290 = vmatprep.mubr.f32.mxu0 %v4766_v16 }
 0xa50   : > { %2881 = vmatmul.mubr.msk.f32.gmra.mrb[70].mxu0 %vm620_vm1, %v3045_v12 }
 0xa51   : > { %2296 = vmatprep.mubr.f32.mxu0 %v4766_v16 }
 0xa54   : > { %2882 = vmatmul.mubr.msk.f32.gmra.mrb[72].mxu0 %vm620_vm1, %v3046_v28 }
 0xa55   : > { %2302 = vmatprep.mubr.f32.mxu0 %v4766_v16 }
 0xa58   : > { %2883 = vmatmul.mubr.msk.f32.gmra.mrb[74].mxu0 %vm620_vm1, %v3047_v45 }
 0xaff   : > { %v2238_v22 = vpop.f32.mrb[52].mxu0 }
 0xb00   : > { %2309 = vrot.lane.b32.xlu0 %v2238_v22, %s3174_s12  ;;  %v2240_v56 = vpop.f32.mrb[53].mxu0 }
 0xb03   : > { %v2244_v48 = vpop.f32.mrb[54].mxu0 }
 0xb04   : > { %2317 = vrot.lane.b32.xlu0 %v2240_v56, %s3174_s12  ;;  %2311 = vrot.lane.b32.xlu1 %v2244_v48, %s3174_s12  ;;  %v2246_v18 = vpop.f32.mrb[55].mxu0 }
 0xb07   : > { %v2250_v11 = vpop.f32.mrb[56].mxu0 }
 0xb08   : > { %2319 = vrot.lane.b32.xlu1 %v2246_v18, %s3174_s12  ;;  %2313 = vrot.lane.b32.xlu0 %v2250_v11, %s3174_s12  ;;  %v2252_v16 = vpop.f32.mrb[57].mxu0 }
 0xb0b   : > { %v2256_v30 = vpop.f32.mrb[58].mxu0 }
 0xb0c   : > { %2321 = vrot.lane.b32.xlu1 %v2252_v16, %s3174_s12  ;;  %2315 = vrot.lane.b32.xlu0 %v2256_v30, %s3174_s12  ;;  %v2258_v32 = vpop.f32.mrb[59].mxu0 }
 0xb0f   : > { %v2262_v29 = vpop.f32.mrb[60].mxu0 }
 0xb10   : > { %2323 = vrot.lane.b32.xlu1 %v2258_v32, %s3174_s12  ;;  %v2264_v4 = vpop.f32.mrb[61].mxu0  ;;  %s2661_s12 = sshll.u32 %s4584_s19, 4  ;;  %s2662_s12 = int_to_ptr.vmem [resolvable:$true] %s2661_s12 }
 0xb11   : > { %s3048_s26 = scalar_lea.vmem %s2662_s12, 32  ;;  %p3055_p0 = scmp.lt.s32.totalorder %s2662_s12, %s3053_s24 }
 0xb12   : > { %p3049_p11 = scmp.ne.s32.totalorder %s2662_s12, %s3048_s26  ;;  %p3056_p1 = scmp.lt.s32.totalorder %s3054_s0, %s3048_s26 }
 0xb13   : > { %v2268_v42 = vpop.f32.mrb[62].mxu0 }
 0xb14   : > { %v2270_v31 = vpop.f32.mrb[63].mxu0  ;;  %p3050_p12 = pnand %p3049_p11, %p3282_p5  ;;  %p3057_p2 = por %p3056_p1, %p3055_p0 }
 0xb16   : > { %p3051_p13 = pneg %p3050_p12 }
 0xb17   : > { %v4442_v63 = vpop.f32.mrb[64].mxu0 }
 0xb18   : > { %v4444_v62 = vpop.f32.mrb[65].mxu0  ;;  %p3058_p3 = pnand %p3057_p2, %p3051_p13 }
 0xb1b   : > { %v4446_v40 = vpop.f32.mrb[66].mxu0 }
 0xb1c   : > { %v4448_v25 = vpop.f32.mrb[67].mxu0 }
 0xb1f   : > { %v2286_v35 = vpop.f32.mrb[68].mxu0 }
 0xb20   : > { %2349 = vrot.lane.b32.xlu0 %v2286_v35, %s3175_s13  ;;  %v2288_v54 = vpop.f32.mrb[69].mxu0 }
 0xb23   : > { %v2292_v60 = vpop.f32.mrb[70].mxu0 }
 0xb24   : > { %2357 = vrot.lane.b32.xlu0 %v2288_v54, %s3175_s13  ;;  %2351 = vrot.lane.b32.xlu1 %v2292_v60, %s3175_s13  ;;  %v2294_v23 = vpop.f32.mrb[71].mxu0 }
 0xb27   : > { %v2298_v19 = vpop.f32.mrb[72].mxu0 }
 0xb28   : > { %2359 = vrot.lane.b32.xlu1 %v2294_v23, %s3175_s13  ;;  %v2300_v8 = vpop.f32.mrb[73].mxu0  ;;  %2353 = vrot.lane.b32.xlu0 %v2298_v19, %s3175_s13 }
 0xb2b   : > { %v2304_v47 = vpop.f32.mrb[74].mxu0 }
 0xb2c   : > { %2361 = vrot.lane.b32.xlu1 %v2300_v8, %s3175_s13  ;;  %v2306_v49 = vpop.f32.mrb[75].mxu0  ;;  %2355 = vrot.lane.b32.xlu0 %v2304_v47, %s3175_s13 }
 0xb30   : > { %2363 = vrot.lane.b32.xlu1 %v2306_v49, %s3175_s13  ;;  %s4621_s13 = scalar_lea.sflag [#allocation5], %s2626_s25 }
 0xb72   : > { %v2310_v61 = vpop.permute.xlu0 %2309 }
 0xb76   : > { %v2312_v14 = vpop.permute.xlu1 %2311  ;;  %v2318_v53 = vpop.permute.xlu0 %2317 }
 0xb77   : > { %v2325_v50 = vsel %vm810_vm7, %v2310_v61, %v2318_v53  ;;  %v2329_v17 = vsel %vm810_vm7, %v2318_v53, %v2310_v61 }
 0xb78   : > { %v2333_v44 = vmul.f32 %v3522_v38, %v2329_v17  ;;  %v2334_v12 = vmul.f32 %v3526_v52, %v2325_v50 }
 0xb7a   : > { %v2320_v34 = vpop.permute.xlu1 %2319  ;;  %v2314_v9 = vpop.permute.xlu0 %2313  ;;  %v2341_v30 = vadd.f32 %v2333_v44, %v2262_v29  ;;  %v2342_v32 = vadd.f32 %v2334_v12, %v2264_v4 }
 0xb7b   : > { %v2326_v51 = vsel %vm810_vm7, %v2312_v14, %v2320_v34  ;;  %v2330_v3 = vsel %vm810_vm7, %v2320_v34, %v2312_v14 }
 0xb7c   : > { %v2335_v28 = vmul.f32 %v3522_v38, %v2330_v3  ;;  %v2336_v45 = vmul.f32 %v3526_v52, %v2326_v51 }
 0xb7e   : > { %v2322_v20 = vpop.permute.xlu1 %2321  ;;  %v2316_v41 = vpop.permute.xlu0 %2315  ;;  %v2343_v35 = vadd.f32 %v2335_v28, %v2268_v42  ;;  %v2344_v54 = vadd.f32 %v2336_v45, %v2270_v31 }
 0xb7f   : > { %v2327_v60 = vsel %vm810_vm7, %v2314_v9, %v2322_v20  ;;  %v2331_v23 = vsel %vm810_vm7, %v2322_v20, %v2314_v9 }
 0xb80   : > { %v2337_v53 = vmul.f32 %v3522_v38, %v2331_v23  ;;  %v2338_v34 = vmul.f32 %v3526_v52, %v2327_v60 }
 0xb82   : > { %v2324_v55 = vpop.permute.xlu1 %2323  ;;  %v2345_v45 = vadd.f32 %v2337_v53, %v4442_v63 }
 0xb83   : > { %v2328_v47 = vsel %vm810_vm7, %v2316_v41, %v2324_v55  ;;  %v2332_v49 = vsel %vm810_vm7, %v2324_v55, %v2316_v41  ;;  %vm2601_vm7 = vcmask 15360  }
 0xb84   : > { %v2339_v41 = vmul.f32 %v3522_v38, %v2332_v49  ;;  %v2340_v17 = vmul.f32 %v3526_v52, %v2328_v47  ;;  %v2346_v38 = vadd.f32 %v2338_v34, %v4444_v62 }
 0xb86   : > { %v2347_v62 = vadd.f32 %v2339_v41, %v4446_v40 }
 0xb92   : > { %v2350_v46 = vpop.permute.xlu0 %2349 }
 0xb96   : > { %v2358_v22 = vpop.permute.xlu0 %2357  ;;  %v2352_v56 = vpop.permute.xlu1 %2351 }
 0xb97   : > { %v2365_v48 = vsel %vm851_vm12, %v2350_v46, %v2358_v22  ;;  %v2369_v18 = vsel %vm851_vm12, %v2358_v22, %v2350_v46 }
 0xb98   : > { %v2373_v11 = vmul.f32 %v3542_v6, %v2365_v48  ;;  %v2374_v16 = vmul.f32 %v3545_v7, %v2369_v18 }
 0xb9a   : > { %v2360_v19 = vpop.permute.xlu1 %2359  ;;  %v2354_v8 = vpop.permute.xlu0 %2353  ;;  %v2381_v42 = vadd.f32 %v2373_v11, %v2341_v30  ;;  %v2382_v31 = vadd.f32 %v2374_v16, %v2342_v32  ;;  %v2348_v16 = vadd.f32 %v2340_v17, %v4448_v25 }
 0xb9b   : > { %v2366_v29 = vsel %vm851_vm12, %v2352_v56, %v2360_v19  ;;  %v2370_v4 = vsel %vm851_vm12, %v2360_v19, %v2352_v56 }
 0xb9c   : > { %v2375_v61 = vmul.f32 %v3542_v6, %v2366_v29  ;;  %v2376_v14 = vmul.f32 %v3545_v7, %v2370_v4  ;;  %v2389_v51 = vadd.f32 %v2381_v42, %v3723_v36  ;;  %v2390_v3 = vadd.f32 %v2382_v31, %v3723_v36 }
 0xb9e   : > { %v2383_v9 = vadd.f32 %v2375_v61, %v2343_v35  ;;  %v2384_v20 = vadd.f32 %v2376_v14, %v2344_v54  ;;  %v2362_v50 = vpop.permute.xlu1 %2361  ;;  %v2356_v28 = vpop.permute.xlu0 %2355  ;;  %v4519_v30 = vadd.f32 %v2389_v51, %v4211_v15 }
 0xb9f   : > { %v2367_v55 = vsel %vm851_vm12, %v2354_v8, %v2362_v50  ;;  %v2371_v46 = vsel %vm851_vm12, %v2362_v50, %v2354_v8 }
 0xba0   : > { %v2391_v44 = vadd.f32 %v2383_v9, %v3725_v57  ;;  %v2392_v12 = vadd.f32 %v2384_v20, %v3725_v57  ;;  %v2377_v52 = vmul.f32 %v3542_v6, %v2367_v55  ;;  %v2378_v22 = vmul.f32 %v3545_v7, %v2371_v46 }
 0xba2   : > { %v4507_v56 = vadd.f32 %v2391_v44, %v4213_v21  ;;  %v4510_v48 = vadd.f32 %v2392_v12, %v4203_v1  ;;  %v2364_v36 = vpop.permute.xlu1 %2363  ;;  %v2385_v18 = vadd.f32 %v2377_v52, %v2345_v45  ;;  %v2386_v11 = vadd.f32 %v2378_v22, %v2346_v38 }
 0xba3   : > { %v2368_v57 = vsel %vm851_vm12, %v2356_v28, %v2364_v36  ;;  %v2372_v63 = vsel %vm851_vm12, %v2364_v36, %v2356_v28  ;;  %v4522_v21 = vadd.f32 %v2390_v3, %v4201_v43  ;;  %vm2608_vm12 = vcmask 1040384  }
 0xba4   : > { %v2393_v1 = vadd.f32 %v2385_v18, %v3727_v58  ;;  %v2394_v32 = vadd.f32 %v2386_v11, %v3727_v58  ;;  %v2379_v35 = vmul.f32 %v3542_v6, %v2368_v57  ;;  %v2380_v54 = vmul.f32 %v3545_v7, %v2372_v63 }
 0xba5   : > { %v2425_v24 = vmul.f32 %v4507_v56, %v4507_v56  ;;  %v2426_v40 = vmul.f32 %v4510_v48, %v4510_v48  ;;  %v2423_v58 = vmul.f32 %v4519_v30, %v4519_v30  ;;  %v2424_v6 = vmul.f32 %v4522_v21, %v4522_v21 }
 0xba6   : > { %v4533_v15 = vadd.f32 %v2393_v1, %v4217_v10  ;;  %v4536_v43 = vadd.f32 %v2394_v32, %v4205_v27  ;;  %v2387_v25 = vadd.f32 %v2379_v35, %v2347_v62  ;;  %v2388_v60 = vadd.f32 %v2380_v54, %v2348_v16  ;;  %v447_v35 = vld [vmem:[%s4727_s8] sm:$0xf] }
 0xba7   : > { %v2405_v7 = vadd.f32 %v4507_v56, %v4519_v30  ;;  %v2414_v23 = vadd.f32 %v4510_v48, %v4522_v21  ;;  %v2431_v47 = vadd.f32 %v2425_v24, %v2423_v58  ;;  %v2440_v49 = vadd.f32 %v2426_v40, %v2424_v6 }
 0xba8   : > { %v2427_v10 = vmul.f32 %v4533_v15, %v4533_v15  ;;  %v2428_v27 = vmul.f32 %v4536_v43, %v4536_v43  ;;  %v2395_v19 = vadd.f32 %v2387_v25, %v3729_v59  ;;  %v2396_v8 = vadd.f32 %v2388_v60, %v3729_v59 }
 0xba9   : > { %v2415_v42 = vadd.f32 %v2414_v23, %v4536_v43  ;;  %v2406_v31 = vadd.f32 %v2405_v7, %v4533_v15  ;;  %v2603_v60 = vsel %vm2599_vm5, %v3841_v5, %v4179_v0  ;;  %v2600_v6 = vsel %vm2599_vm5, %v3839_v13, %v4177_v26 }
 0xbaa   : > { %v4553_v29 = vadd.f32 %v2395_v19, %v4219_v37  ;;  %v4556_v4 = vadd.f32 %v2396_v8, %v4207_v39  ;;  %v2432_v61 = vadd.f32 %v2431_v47, %v2427_v10  ;;  %v2441_v14 = vadd.f32 %v2440_v49, %v2428_v27 }
 0xbac   : > { %v2416_v53 = vadd.f32 %v2415_v42, %v4556_v4  ;;  %v2407_v34 = vadd.f32 %v2406_v31, %v4553_v29  ;;  %v2429_v59 = vmul.f32 %v4553_v29, %v4553_v29  ;;  %v2430_v37 = vmul.f32 %v4556_v4, %v4556_v4 }
 0xbae   : > { %v2417_v9 = vrot.slane %v2416_v53, 4  ;;  %v2408_v20 = vrot.slane %v2407_v34, 4  ;;  %v2433_v39 = vadd.f32 %v2432_v61, %v2429_v59  ;;  %v2442_v50 = vadd.f32 %v2441_v14, %v2430_v37 }
 0xbb0   : > { %v2418_v41 = vadd.f32 %v2417_v9, %v2416_v53  ;;  %v2409_v17 = vadd.f32 %v2408_v20, %v2407_v34  ;;  %v2434_v55 = vrot.slane %v2433_v39, 4  ;;  %v2443_v46 = vrot.slane %v2442_v50, 4 }
 0xbb2   : > { %v2419_v51 = vrot.slane %v2418_v41, 2  ;;  %v2410_v3 = vrot.slane %v2409_v17, 2  ;;  %v2435_v44 = vadd.f32 %v2434_v55, %v2433_v39  ;;  %v2444_v12 = vadd.f32 %v2443_v46, %v2442_v50 }
 0xbb4   : > { %v2420_v28 = vadd.f32 %v2419_v51, %v2418_v41  ;;  %v2411_v45 = vadd.f32 %v2410_v3, %v2409_v17  ;;  %v2436_v38 = vrot.slane %v2435_v44, 2  ;;  %v2445_v52 = vrot.slane %v2444_v12, 2 }
 0xbb6   : > { %v2421_v22 = vrot.slane %v2420_v28, 1  ;;  %v2412_v36 = vrot.slane %v2411_v45, 1  ;;  %v2437_v18 = vadd.f32 %v2436_v38, %v2435_v44  ;;  %v2446_v62 = vadd.f32 %v2445_v52, %v2444_v12 }
 0xbb8   : > { %v2422_v11 = vadd.f32 %v2421_v22, %v2420_v28  ;;  %v2413_v57 = vadd.f32 %v2412_v36, %v2411_v45  ;;  %v2438_v63 = vrot.slane %v2437_v18, 1  ;;  %v2447_v1 = vrot.slane %v2446_v62, 1 }
 0xbba   : > { %2475 = vadd.xlane.f32.xlu1 %v2422_v11  ;;  %2449 = vadd.xlane.f32.xlu0 %v2413_v57  ;;  %v2439_v16 = vadd.f32 %v2438_v63, %v2437_v18  ;;  %v2448_v32 = vadd.f32 %v2447_v1, %v2446_v62 }
 0xbbe   : > { %2451 = vadd.xlane.f32.xlu0 %v2439_v16 }
 0xbc2   : > { %2477 = vadd.xlane.f32.xlu0 %v2448_v32 }
 0xbcb   : > { %2519 = vperm.xlu1 %3011, %v447_v35  }
 0xc47   : > { %v2476_v54 = vpop.xlane.xlu1 %2475  ;;  %v2450_v24 = vpop.xlane.xlu0 %2449 }
 0xc48   : > { %v2479_v40 = vmul.f32 0.00024414063, %v2476_v54  ;;  %v2453_v25 = vmul.f32 0.00024414063, %v2450_v24 }
 0xc4a   : > { %v2604_v58 = vsel %vm2601_vm7, %v2603_v60, %v2479_v40  ;;  %v2455_v10 = vmul.f32 %v2453_v25, %v2453_v25  ;;  %v2602_v19 = vsel %vm2601_vm7, %v2600_v6, %v2453_v25  ;;  %v2481_v49 = vmul.f32 %v2479_v40, %v2479_v40 }
 0xc4b   : > { %v2606_v7 = vrot.slane %v2604_v58, 7  ;;  %v2452_v23 = vpop.xlane.xlu0 %2451  ;;  %v2468_v14 = vmul.f32 0.0, %v2453_v25  ;;  %v2493_v53 = vmul.f32 0.0, %v2479_v40 }
 0xc4c   : > { %v2454_v27 = vmul.f32 0.00024414063, %v2452_v23 }
 0xc4d   : > { %v2609_v8 = vsel %vm2608_vm12, %v2602_v19, %v2606_v7  ;;  %v2496_v34 = vadd.f32 %v2479_v40, %v2468_v14  ;;  %v2495_v59 = vadd.f32 %v2493_v53, %v2453_v25 }
 0xc4e   : > { %v2456_v47 = vsub.f32 %v2454_v27, %v2455_v10  ;;  %2611 = vst.msk [vmem:[%s4584_s19] sm:$0x3] %vm2610_vm6, %v2609_v8 }
 0xc4f   : > { %v2478_v5 = vpop.xlane.xlu0 %2477  ;;  %v2502_v9 = vsub.f32 %v4522_v21, %v2496_v34  ;;  %v2504_v39 = vsub.f32 %v4510_v48, %v2496_v34  ;;  %v2501_v50 = vsub.f32 %v4519_v30, %v2495_v59  ;;  %v2503_v55 = vsub.f32 %v4507_v56, %v2495_v59 }
 0xc50   : > { %v2457_v0 = vmax.f32 %v2456_v47, 0.0  ;;  %v2480_v13 = vmul.f32 0.00024414063, %v2478_v5  ;;  %v2506_v46 = vsub.f32 %v4536_v43, %v2496_v34  ;;  %v2508_v51 = vsub.f32 %v4556_v4, %v2496_v34 }
 0xc51   : > { %v2505_v3 = vsub.f32 %v4533_v15, %v2495_v59  ;;  %v2507_v21 = vsub.f32 %v4553_v29, %v2495_v59 }
 0xc52   : > { %v2458_v26 = vadd.f32 1e-05, %v2457_v0  ;;  %v2482_v42 = vsub.f32 %v2480_v13, %v2481_v49 }
 0xc54   : > { %3020 = vrsqrt.f32 %v2458_v26  ;;  %v2483_v31 = vmax.f32 %v2482_v42, 0.0  ;;  %vm2461_vm5 = vcmp.eq.f32.partialorder %v2458_v26, inf  ;;  %vm2463_vm8 = vcmp.eq.f32.partialorder %v2458_v26, 0.0 }
 0xc55   : > { %v2464_v48 = vand.u32 2147483648, %v2458_v26 }
 0xc56   : > { %v2484_v61 = vadd.f32 1e-05, %v2483_v31 }
 0xc58   : > { %3022 = vrsqrt.f32 %v2484_v61  ;;  %vm2487_vm9 = vcmp.eq.f32.partialorder %v2484_v61, inf  ;;  %v2490_v36 = vand.u32 2147483648, %v2484_v61  ;;  %vm2489_vm10 = vcmp.eq.f32.partialorder %v2484_v61, 0.0 }
 0xc5e   : > { %v3021_v37 = vpop.eup %3020 }
 0xc5f   : > { %v2472_v20 = vmul.f32 0.0, %v3021_v37  ;;  %v2460_v41 = vmul.f32 %v3021_v37, %v2458_v26 }
 0xc61   : > { %v2462_v52 = vsel %vm2461_vm5, %v2458_v26, %v2460_v41 }
 0xc62   : > { %v3023_v17 = vpop.eup %3022  ;;  %v2465_v11 = vsel %vm2463_vm8, %v2464_v48, %v2462_v52 }
 0xc63   : > { %v2486_v44 = vmul.f32 %v3023_v17, %v2484_v61  ;;  %v2500_v12 = vadd.f32 %v3023_v17, %v2472_v20  ;;  %v2497_v28 = vmul.f32 0.0, %v3023_v17  ;;  %v2613_v35 = vsel %vm2601_vm7, %v4195_v2, %v2465_v11 }
 0xc65   : > { %v2510_v30 = vmul.f32 %v2502_v9, %v2500_v12  ;;  %v2512_v45 = vmul.f32 %v2504_v39, %v2500_v12  ;;  %v2499_v38 = vadd.f32 %v3021_v37, %v2497_v28  ;;  %v2514_v56 = vmul.f32 %v2506_v46, %v2500_v12 }
 0xc66   : > { %v2516_v22 = vmul.f32 %v2508_v51, %v2500_v12  ;;  %v2488_v43 = vsel %vm2487_vm9, %v2484_v61, %v2486_v44 }
 0xc67   : > { %v2944_v4 = vpack.c.bf16 %v2512_v45, %v2510_v30  ;;  %v2509_v18 = vmul.f32 %v2501_v50, %v2499_v38  ;;  %v2511_v15 = vmul.f32 %v2503_v55, %v2499_v38  ;;  %v2491_v57 = vsel %vm2489_vm10, %v2490_v36, %v2488_v43 }
 0xc68   : > { %v2513_v63 = vmul.f32 %v2505_v3, %v2499_v38  ;;  %v2515_v62 = vmul.f32 %v2507_v21, %v2499_v38  ;;  %v2615_v16 = vsel %vm2601_vm7, %v4223_v33, %v2491_v57  ;;  %v2948_v1 = vpack.c.bf16 %v2516_v22, %v2514_v56  ;;  %v446_v33 = vld [vmem:[%s4726_s7] sm:$0xf] }
 0xc69   : > { %2945 = vmatprep.subr.bf16.mxu1 %v2944_v4  ;;  %v2946_v29 = vpack.c.bf16 %v2511_v15, %v2509_v18  ;;  %v2617_v32 = vrot.slane %v2615_v16, 7 }
 0xc6a   : > { %v2950_v24 = vpack.c.bf16 %v2515_v62, %v2513_v63 }
 0xc6b   : > { %2947 = vmatpush1.bf16.msra.mxu1 %v2946_v29  ;;  %v2619_v54 = vsel %vm2608_vm12, %v2613_v35, %v2617_v32 }
 0xc6c   : > { %2949 = vmatprep.subr.bf16.mxu1 %v2948_v1  ;;  %2620 = vst.msk [vmem:[%s4603_s23] sm:$0x3] %vm2610_vm6, %v2619_v54 }
 0xc6f   : > { %2951 = vmatpush1.bf16.msra.mxu1 %v2950_v24 }
 0xc72   : > { %2884 = vmatmul.mubr.msk.f32.vlgmr.msra.gmra.mrb[76].mxu1 %vm620_vm1, %v446_v33 }
 0xc73   : > { %3061 = shalt.err (!%p3058_p3)
}
 0xc74   : > { %s3062_s19 = scalar_lea.hbm %s4618_s22, 32  ;;  %s3066_s29 = scalar_lea.hbm %s4729_s10, 64 }
 0xc75   : > { %p3063_p4 = scmp.ne.s32.totalorder %s4618_s22, %s3062_s19  ;;  %p3067_p9 = scmp.lt.u32.totalorder %s4618_s22, %s4729_s10 }
 0xc76   : > { %p3068_p10 = scmp.lt.u32.totalorder %s3066_s29, %s3062_s19  ;;  %p3070_p12 = scmp.lt.u32.totalorder %s3062_s19, %s4618_s22 }
 0xc77   : > { %p3064_p7 = pnand %p3063_p4, %p3282_p5 }
 0xc78   : > { %p3069_p11 = por %p3068_p10, %p3067_p9 }
 0xc79   : > { %p3065_p8 = pneg %p3064_p7 }
 0xc7a   : > { %p3071_p13 = por %p3070_p12, %p3069_p11 }
 0xc7c   : > { %p3072_p0 = pnand %p3071_p13, %p3065_p8 }
 0xc7e   : > { %3075 = shalt.err (!%p3072_p0)
}
 0xc7f   : > { %2955 = dma.vmem_to_hbm [thread:$0]  (%p3282_p5), %s2662_s12, 32, %s4618_s22, %s4621_s13  }
 0xc80   : > { %s4646_s25 = scalar_lea.hbm %s4730_s11, %s2891_s30  ;;  %s2674_s14 = sshll.u32 %s4603_s23, 4  ;;  %s2675_s14 = int_to_ptr.vmem [resolvable:$true] %s2674_s14 }
 0xc81   : > { %s3076_s19 = scalar_lea.vmem %s2675_s14, 32  ;;  %s3178_s29 = smov [#allocation6]  }
 0xc82   : > { %p3077_p1 = scmp.ne.s32.totalorder %s2675_s14, %s3076_s19  ;;  %s3080_s16 = sshll.u32 %s3178_s29, 4  ;;  %s3081_s16 = int_to_ptr.vmem [resolvable:$false] %s3080_s16 }
 0xc83   : > { %s3082_s24 = scalar_lea.vmem %s3081_s16, 64  ;;  %p3083_p4 = scmp.lt.s32.totalorder %s2675_s14, %s3081_s16 }
 0xc84   : > { %p3078_p2 = pnand %p3077_p1, %p3282_p5  ;;  %p3084_p7 = scmp.lt.s32.totalorder %s3082_s24, %s3076_s19 }
 0xc86   : > { %p3079_p3 = pneg %p3078_p2  ;;  %p3085_p8 = por %p3084_p7, %p3083_p4 }
 0xc88   : > { %p3086_p9 = pnand %p3085_p8, %p3079_p3 }
 0xc8a   : > { %3089 = shalt.err (!%p3086_p9)
}
 0xc8b   : > { %s3090_s23 = scalar_lea.hbm %s4646_s25, 32  ;;  %s3094_s12 = scalar_lea.hbm %s4730_s11, 64 }
 0xc8c   : > { %p3091_p10 = scmp.ne.s32.totalorder %s4646_s25, %s3090_s23  ;;  %p3095_p13 = scmp.lt.u32.totalorder %s4646_s25, %s4730_s11 }
 0xc8d   : > { %p3096_p0 = scmp.lt.u32.totalorder %s3094_s12, %s3090_s23  ;;  %p3098_p2 = scmp.lt.u32.totalorder %s3090_s23, %s4646_s25 }
 0xc8e   : > { %p3092_p11 = pnand %p3091_p10, %p3282_p5 }
 0xc8f   : > { %p3097_p1 = por %p3096_p0, %p3095_p13 }
 0xc90   : > { %p3093_p12 = pneg %p3092_p11 }
 0xc91   : > { %p3099_p3 = por %p3098_p2, %p3097_p1 }
 0xc93   : > { %p3100_p4 = pnand %p3099_p3, %p3093_p12 }
 0xc95   : > { %3103 = shalt.err (!%p3100_p4)
}
 0xc96   : > { %2956 = dma.vmem_to_hbm [thread:$0]  (%p3282_p5), %s2675_s14, 32, %s4646_s25, %s4621_s13   ;;  %v2520_v2 = vpop.permute.xlu1 %2519 }
 0xc97   : > { %s2798_s19 = sshll.u32 %s4570_s15, 3  ;;  %s2895_s24 = sshll.u32 %s3263_s21, 7 }
 0xc98   : > { %s384_s29 = scalar_lea.vmem [#allocation2], %s2798_s19  ;;  %s4674_s22 = scalar_lea.hbm %s4728_s9, %s2895_s24 }
 0xc99   : > { %s2645_s16 = sshll.u32 %s384_s29, 4  ;;  %s2622_s13 = scalar_lea.sflag [#allocation3], %s4570_s15  ;;  %s4669_s16 = int_to_ptr.vmem [resolvable:$true] %s2645_s16 }
 0xc9a   : > { %s3104_s25 = scalar_lea.vmem %s4669_s16, 128  ;;  %s3179_s21 = smov [#allocation2]  }
 0xc9b   : > { %p3105_p7 = scmp.ne.s32.totalorder %s4669_s16, %s3104_s25  ;;  %s3108_s14 = sshll.u32 %s3179_s21, 4  ;;  %s3109_s14 = int_to_ptr.vmem [resolvable:$false] %s3108_s14 }
 0xc9c   : > { %s3110_s12 = scalar_lea.vmem %s3109_s14, 256  ;;  %p3111_p10 = scmp.lt.s32.totalorder %s4669_s16, %s3109_s14 }
 0xc9d   : > { %p3106_p8 = pnand %p3105_p7, %p3282_p5  ;;  %p3112_p11 = scmp.lt.s32.totalorder %s3110_s12, %s3104_s25 }
 0xc9f   : > { %p3107_p9 = pneg %p3106_p8  ;;  %p3113_p12 = por %p3112_p11, %p3111_p10 }
 0xca1   : > { %p3114_p13 = pnand %p3113_p12, %p3107_p9 }
 0xd45   : > { %v2591_v40 = vpop.f32.mrb[76].mxu1 }
 0xd46   : > { %v2592_v25 = vadd.f32 %v2591_v40, %v2520_v2  ;;  %v2593_v60 = vpop.f32.mrb[77].mxu1 }
 0xd47   : > { %v2594_v58 = vadd.f32 %v2593_v60, %v2520_v2 }
 0xd48   : > { %2596 = vst [vmem:[%s384_s29] sm:$0xf] %v2592_v25 }
 0xd49   : > { %2885 = vst [vmem:[%s384_s29 + $0x4] sm:$0xf] %v2594_v58 }
 0xd4a   : > { %3117 = shalt.err (!%p3114_p13)
}
 0xd4b   : > { %s3118_s0 = scalar_lea.hbm %s4674_s22, 128  ;;  %s3122_s29 = scalar_lea.hbm %s4728_s9, 256 }
 0xd4c   : > { %p3119_p0 = scmp.ne.s32.totalorder %s4674_s22, %s3118_s0  ;;  %p3123_p3 = scmp.lt.u32.totalorder %s4674_s22, %s4728_s9 }
 0xd4d   : > { %p3124_p4 = scmp.lt.u32.totalorder %s3122_s29, %s3118_s0  ;;  %p3126_p8 = scmp.lt.u32.totalorder %s3118_s0, %s4674_s22 }
 0xd4e   : > { %p3120_p1 = pnand %p3119_p0, %p3282_p5 }
 0xd4f   : > { %p3125_p7 = por %p3124_p4, %p3123_p3 }
 0xd50   : > { %p3121_p2 = pneg %p3120_p1 }
 0xd51   : > { %p3127_p9 = por %p3126_p8, %p3125_p7 }
 0xd53   : > { %p3128_p10 = pnand %p3127_p9, %p3121_p2 }
 0xd55   : > { %3131 = shalt.err (!%p3128_p10)
}
 0xd56   : > { %s3180_s30 = smov 64   ;;  %s3181_s25 = smov 4  }
 0xd57   : > { %2954 = dma.vmem_to_hbm [thread:$0]  (%p3282_p5), %s4669_s16, 128, %s4674_s22, %s2622_s13, %s3180_s30, %s3180_s30, %s3181_s25  }
 0xd58 PF: > { %p2970_p11 = scmp.ge.s32.totalorder %s3170_s20, 2  ;;  %s2686_s21 = sand.u32 1, %s3158_s17  }
 0xd59   : > { %s2687_s14 = scalar_lea.sflag [#allocation3], %s2686_s21 }
 0xd5a   : > { %p2961_p12 = pnand %p2970_p11, %p3286_p6 }
 0xd5c   : > { %3149 = dma.done.wait (!%p2961_p12), %s2687_s14, 128  }
 0xd5d   : > { %3151 = vsyncadd (!%p2961_p12), %s2687_s14, 4294967168  ;;  %s4778_s12 = sadd.s32 4294967294, %s3170_s20  }
 0xd5e   : > { %s2695_s0 = sand.u32 1, %s4778_s12  }
 0xd5f   : > { %s2696_s26 = scalar_lea.sflag [#allocation5], %s2695_s0 }
 0xd60   : > { %3153 = dma.done.wait (!%p2961_p12), %s2696_s26, 64  }
 0xd61   : > { %3155 = vsyncadd (!%p2961_p12), %s2696_s26, 4294967232  ;;  %s4779_s20 = sld [smem:[#allocation10_spill]]  ;;  %s4780_s27 = sld [smem:[#allocation9_spill]] }
 0xd62   : > { %s4781_s19 = sld [smem:[#allocation11_spill]]  ;;  %s4782_s17 = smov %s3162_s18 }
 0xd67   : > { %p25_p5 = scmp.ge.s32.totalorder %s4779_s20, 4   ;;  %s4783_s18 = smov %s4780_s27 }
 0xd69   :  { %27 = sbr.rel (!%p25_p5) target bundleno = 7 (0x7), region = 125 }
 0xd70   :  { %2710 = vsyncpa [#allocation3], 1 }
 0xd71   :  { %2712 = vsyncpa [#allocation3 + $0x1], 1 }
 0xd72   :  { %2713 = vsyncpa [#allocation5], 1 }
 0xd73   :  { %2715 = vsyncpa [#allocation5 + $0x1], 1 }

</bundles_post_ra>
